<compile_context>
chip_gen: v7x
topology: tpu7x:2x2x1
jax: 0.10.0
libtpu: 0.0.40
codegen_flags: <defaults>
</compile_context>

<pallas_src>
import jax
import jax.numpy as jnp
from jax.experimental import pallas as pl
from jax.experimental.pallas import tpu as pltpu

# ------------------------- configuration (DecoderConfig) ----------------------
HIDDEN = 128          # config.hidden_dim
LATENT = 64           # config.latent_dim
PRED_HIDDEN = 64      # config.predictor_hidden_dim
NUM_LAYERS = 2        # config.num_layers
LN_EPS = 1e-5

BIAS_MIN, BIAS_MAX = 0.0, 1000.0
DEG_MIN, DEG_MAX = 1, 50
COEFF_MIN, COEFF_MAX = -100.0, 100.0

CONSTRAINT_FEAT_DIM = 16
VARIABLE_FEAT_DIM = 9


def _vmem_specs(n):
    return [pl.BlockSpec(memory_space=pltpu.MemorySpace.VMEM) for _ in range(n)]


# =============================================================================
# Fused kernel: projections + NUM_LAYERS hetero GraphConv + 4 predictor MLPs
#
# PyG GraphConv(in, out, aggr='add') bipartite semantics:
#   out_dst = (sum_{src in N(dst)} x_src) @ W_rel + b_rel + x_dst @ W_root
# HeteroConv(aggr='sum') has one edge type per destination type here, so the
# cross-edge-type aggregation is the identity.  ReLU after each layer,
# dropout = identity (eval).
#
# Predictor MLP (shared structure, stacked params, index i in 0..3):
#   Linear(192,64) [split into feat/latent halves] -> LayerNorm -> ReLU
#   -> Linear(64,32) -> LayerNorm -> ReLU -> Linear(32,1) -> Sigmoid
#   i = 0: bias, 1: degree, 2: connection logits, 3: weights
# =============================================================================
def fused_decoder_kernel(
        xc_ref, xv_ref, onehot_ref, mc_lat_ref, lat_v_ref, adj_cv_ref,
        wc_proj_ref, bc_proj_ref, wv_proj_ref, bv_proj_ref,
        wrel_cv_ref, wroot_cv_ref, brel_cv_ref,
        wrel_vc_ref, wroot_vc_ref, brel_vc_ref,
        pw1h_ref, pw1l_ref, pb1_ref, pg1_ref, pbe1_ref,
        pw2_ref, pb2_ref, pg2_ref, pbe2_ref, pw3_ref, pb3_ref,
        cons_out_ref, var_out_ref):
    bf16 = jnp.bfloat16
    f32 = jnp.float32

    # ---- feature projections (constraint_proj / variable_proj) ----
    hc = jnp.dot(xc_ref[...].astype(bf16), wc_proj_ref[...].astype(bf16),
                 preferred_element_type=f32) + bc_proj_ref[...]
    hv = jnp.dot(xv_ref[...].astype(bf16), wv_proj_ref[...].astype(bf16),
                 preferred_element_type=f32) + bv_proj_ref[...]

    # 0/1 adjacency: bf16 cast is lossless; single orientation [Nc, Nv].
    adj_bf = adj_cv_ref[...].astype(bf16)

    # ---- NUM_LAYERS hetero GraphConv layers (static unroll) ----
    for l in range(NUM_LAYERS):
        hc_bf = hc.astype(bf16)
        hv_bf = hv.astype(bf16)
        wrel_cv = wrel_cv_ref[l].astype(bf16)     # read each param once / layer
        wroot_cv = wroot_cv_ref[l].astype(bf16)
        brel_cv = brel_cv_ref[l]
        wrel_vc = wrel_vc_ref[l].astype(bf16)
        wroot_vc = wroot_vc_ref[l].astype(bf16)
        brel_vc = brel_vc_ref[l]

        # ('constraint','connects','variable'): dst = variable.
        # agg_v[v] = sum_c adj_cv[c, v] * hc[c]  -> transposed-LHS contraction.
        agg_v = jax.lax.dot_general(
            adj_bf, hc_bf,
            dimension_numbers=(((0,), (0,)), ((), ())),
            preferred_element_type=f32)                               # [Nv, H]
        new_hv = (jnp.dot(agg_v.astype(bf16), wrel_cv, preferred_element_type=f32)
                  + brel_cv
                  + jnp.dot(hv_bf, wroot_cv, preferred_element_type=f32))

        # ('variable','connected_by','constraint'): dst = constraint.
        agg_c = jnp.dot(adj_bf, hv_bf, preferred_element_type=f32)    # [Nc, H]
        new_hc = (jnp.dot(agg_c.astype(bf16), wrel_vc, preferred_element_type=f32)
                  + brel_vc
                  + jnp.dot(hc_bf, wroot_vc, preferred_element_type=f32))

        # ReLU (dropout identity in eval)
        hc = jnp.maximum(new_hc, 0.0)
        hv = jnp.maximum(new_hv, 0.0)

    # ---- masked-constraint row via one-hot select (0/1 weights, f32 exact) ----
    cons_feat = jnp.dot(onehot_ref[...], hc, preferred_element_type=f32)  # [1, H]
    mc_lat = mc_lat_ref[...]                                              # [1, LAT]
    lat_v = lat_v_ref[...]                                                # [Nv, LAT]

    def predictor(i, feat, lat):
        # first linear split across the (feature, latent) halves of the input
        h = (jnp.dot(feat.astype(bf16), pw1h_ref[i].astype(bf16),
                     preferred_element_type=f32)
             + jnp.dot(lat.astype(bf16), pw1l_ref[i].astype(bf16),
                       preferred_element_type=f32)
             + pb1_ref[i])
        mu = jnp.mean(h, axis=-1, keepdims=True)
        var = jnp.mean((h - mu) ** 2, axis=-1, keepdims=True)
        h = (h - mu) * jax.lax.rsqrt(var + LN_EPS) * pg1_ref[i] + pbe1_ref[i]
        h = jnp.maximum(h, 0.0)

        h2 = jnp.dot(h.astype(bf16), pw2_ref[i].astype(bf16),
                     preferred_element_type=f32) + pb2_ref[i]
        mu2 = jnp.mean(h2, axis=-1, keepdims=True)
        var2 = jnp.mean((h2 - mu2) ** 2, axis=-1, keepdims=True)
        h2 = (h2 - mu2) * jax.lax.rsqrt(var2 + LN_EPS) * pg2_ref[i] + pbe2_ref[i]
        h2 = jnp.maximum(h2, 0.0)

        out = jnp.dot(h2.astype(bf16), pw3_ref[i].astype(bf16),
                      preferred_element_type=f32) + pb3_ref[i]
        return jax.nn.sigmoid(out)                                    # [N, 1]

    # packed outputs: constraint path [1, 2], variable path [Nv, 2]
    cons_out_ref[:, 0:1] = predictor(0, cons_feat, mc_lat)   # bias (normalized)
    cons_out_ref[:, 1:2] = predictor(1, cons_feat, mc_lat)   # degree (normalized)
    var_out_ref[:, 0:1] = predictor(2, hv, lat_v)            # connection logits
    var_out_ref[:, 1:2] = predictor(3, hv, lat_v)            # edge weights (normalized)


def run_fused_decoder(cons_x, var_x, onehot, mc_lat, latent_v, adj_cv, params):
    n_var = var_x.shape[0]
    g = params['gnn']
    p = params['pred']
    inputs = (cons_x, var_x, onehot, mc_lat, latent_v, adj_cv,
              g['wc_proj'], g['bc_proj'], g['wv_proj'], g['bv_proj'],
              g['wrel_cv'], g['wroot_cv'], g['brel_cv'],
              g['wrel_vc'], g['wroot_vc'], g['brel_vc'],
              p['w1h'], p['w1l'], p['b1'], p['g1'], p['be1'],
              p['w2'], p['b2'], p['g2'], p['be2'], p['w3'], p['b3'])
    return pl.pallas_call(
        fused_decoder_kernel,
        out_shape=(jax.ShapeDtypeStruct((1, 2), jnp.float32),
                   jax.ShapeDtypeStruct((n_var, 2), jnp.float32)),
        in_specs=_vmem_specs(len(inputs)),
        out_specs=tuple(_vmem_specs(2)),
    )(*inputs)


# ----------------------------- parameter creation -----------------------------
def init_linear(key, d_in, d_out, scale=0.1):
    kw, _ = jax.random.split(key)
    w = jax.random.normal(kw, (d_in, d_out), jnp.float32) * scale
    b = jnp.zeros((1, d_out), jnp.float32)
    return w, b


def init_predictor(key, d_feat, d_lat):
    k1a, k1b, k2, k3 = jax.random.split(key, 4)
    # w1 of the original [d_feat + d_lat, 64] is split into the feature and
    # latent halves so the kernel never materializes the concatenated input.
    w1h = jax.random.normal(k1a, (d_feat, PRED_HIDDEN), jnp.float32) * 0.1
    w1l = jax.random.normal(k1b, (d_lat, PRED_HIDDEN), jnp.float32) * 0.1
    b1 = jnp.zeros((1, PRED_HIDDEN), jnp.float32)
    w2, b2 = init_linear(k2, PRED_HIDDEN, PRED_HIDDEN // 2)
    w3, b3 = init_linear(k3, PRED_HIDDEN // 2, 1)
    return {'w1h': w1h, 'w1l': w1l, 'b1': b1,
            'g1': jnp.ones((1, PRED_HIDDEN), jnp.float32),
            'be1': jnp.zeros((1, PRED_HIDDEN), jnp.float32),
            'w2': w2, 'b2': b2,
            'g2': jnp.ones((1, PRED_HIDDEN // 2), jnp.float32),
            'be2': jnp.zeros((1, PRED_HIDDEN // 2), jnp.float32),
            'w3': w3, 'b3': b3}


def stack_predictor_params(plist):
    # order: 0 = bias, 1 = degree, 2 = logits, 3 = weights
    return {k: jnp.stack([p[k] for p in plist]) for k in plist[0]}


def init_gnn_params(key):
    keys = jax.random.split(key, 2 + 4 * NUM_LAYERS)
    wc_proj, bc_proj = init_linear(keys[0], CONSTRAINT_FEAT_DIM, HIDDEN)
    wv_proj, bv_proj = init_linear(keys[1], VARIABLE_FEAT_DIM, HIDDEN)
    wrel_cv, wroot_cv, brel_cv = [], [], []
    wrel_vc, wroot_vc, brel_vc = [], [], []
    for l in range(NUM_LAYERS):
        base = 2 + 4 * l
        w, b = init_linear(keys[base + 0], HIDDEN, HIDDEN)
        wrel_cv.append(w); brel_cv.append(b)
        w, _ = init_linear(keys[base + 1], HIDDEN, HIDDEN)
        wroot_cv.append(w)                     # lin_root has no bias in PyG GraphConv
        w, b = init_linear(keys[base + 2], HIDDEN, HIDDEN)
        wrel_vc.append(w); brel_vc.append(b)
        w, _ = init_linear(keys[base + 3], HIDDEN, HIDDEN)
        wroot_vc.append(w)
    return {'wc_proj': wc_proj, 'bc_proj': bc_proj,
            'wv_proj': wv_proj, 'bv_proj': bv_proj,
            'wrel_cv': jnp.stack(wrel_cv), 'wroot_cv': jnp.stack(wroot_cv),
            'brel_cv': jnp.stack(brel_cv),
            'wrel_vc': jnp.stack(wrel_vc), 'wroot_vc': jnp.stack(wroot_vc),
            'brel_vc': jnp.stack(brel_vc)}


# ------------------------------ decoder forward --------------------------------
@jax.jit
def decoder_core(cons_x, var_x, adj_cv_incidence, latent_c, latent_v,
                 masked_id, params):
    n_cons = cons_x.shape[0]
    n_var = var_x.shape[0]

    adj_cv = adj_cv_incidence.astype(jnp.float32)                      # [Nc, Nv]
    onehot = jax.nn.one_hot(masked_id, n_cons,
                            dtype=jnp.float32).reshape(1, n_cons)      # [1, Nc]
    mc_lat = jax.lax.dynamic_slice_in_dim(latent_c, masked_id, 1, axis=0)  # [1, LAT]

    cons_out, var_out = run_fused_decoder(cons_x, var_x, onehot, mc_lat,
                                          latent_v, adj_cv, params)

    predicted_bias = cons_out[:, 0:1]                                  # [1, 1]
    degree_norm = cons_out[:, 1:2]                                     # [1, 1]
    predicted_degree = jnp.round(
        DEG_MIN + degree_norm * (DEG_MAX - DEG_MIN)).astype(jnp.int32)
    connection_logits = var_out[:, 0:1]                                # [Nv, 1]
    all_weights = var_out[:, 1:2]                                      # [Nv, 1]

    # ---- top-k connection selection, all on-device, STATIC top-k size ----
    k_top = min(n_var, DEG_MAX)                    # static upper bound on k
    max_reasonable_k = min(n_var // 4, 50)
    min_reasonable_k = max(1, min(3, n_var))
    pred_k = jnp.maximum(1, predicted_degree[0, 0])
    constrained_k = jnp.maximum(min_reasonable_k,
                                jnp.minimum(pred_k, max_reasonable_k))
    k_eff = jnp.clip(constrained_k, 1, n_var)

    _, topk_idx = jax.lax.top_k(connection_logits[:, 0], k_top)
    valid = (jnp.arange(k_top) < k_eff).astype(jnp.float32)
    mask_flat = jnp.zeros((n_var,), jnp.float32).at[topk_idx].set(valid)
    connection_mask = mask_flat[:, None]                               # [Nv, 1]

    return {'predicted_bias': predicted_bias,
            'degree_normalized': degree_norm,
            'predicted_degree': predicted_degree,
            'connection_logits': connection_logits,
            'connection_mask': connection_mask,
            'all_weights': all_weights,
            'topk_idx': topk_idx,
            'k_eff': k_eff}


def g2milp_decoder_forward(cons_x, var_x, adj_cv_incidence,
                           latent_c, latent_v, masked_constraint_id, params):
    core = decoder_core(cons_x, var_x, adj_cv_incidence, latent_c, latent_v,
                        jnp.int32(masked_constraint_id), params)

    # Dynamic-shape packaging of the connected-edge weights (matches the
    # PyTorch WeightsPredictor: weights of connected variables, ascending
    # index order).  The only host read happens HERE, after all device work
    # has already been enqueued — no mid-forward pipeline stall.
    kv = int(jax.device_get(core['k_eff']))
    connected_idx = jnp.sort(core['topk_idx'][:kv])
    predicted_weights = core['all_weights'][connected_idx]             # [k, 1]

    return {'predicted_bias': core['predicted_bias'],
            'predicted_degree': core['predicted_degree'],
            'connection_logits': core['connection_logits'],
            'connection_mask': core['connection_mask'],
            'predicted_weights': predicted_weights,
            'bias_normalized': core['predicted_bias'],
            'degree_normalized': core['degree_normalized']}


# ------------------------------------ main --------------------------------------
if __name__ == "__main__":
    key = jax.random.PRNGKey(0)
    k_param, k_data = jax.random.split(key)

    # parameters (deterministic synthetic init)
    kg, kb, kd, kl, kw = jax.random.split(k_param, 5)
    pred_list = [init_predictor(kb, HIDDEN, LATENT),   # bias
                 init_predictor(kd, HIDDEN, LATENT),   # degree
                 init_predictor(kl, HIDDEN, LATENT),   # logits
                 init_predictor(kw, HIDDEN, LATENT)]   # weights
    params = {'gnn': init_gnn_params(kg),
              'pred': stack_predictor_params(pred_list)}

    # small synthetic bipartite MILP graph
    N_CONS, N_VAR = 8, 16
    kc, kv, ka, klc, klv = jax.random.split(k_data, 5)
    cons_x = jax.random.normal(kc, (N_CONS, CONSTRAINT_FEAT_DIM), jnp.float32)
    var_x = jax.random.normal(kv, (N_VAR, VARIABLE_FEAT_DIM), jnp.float32)
    adj = (jax.random.uniform(ka, (N_CONS, N_VAR)) < 0.3).astype(jnp.float32)
    latent_c = jax.random.normal(klc, (N_CONS, LATENT), jnp.float32)
    latent_v = jax.random.normal(klv, (N_VAR, LATENT), jnp.float32)
    masked_constraint_id = 2

    out = g2milp_decoder_forward(cons_x, var_x, adj, latent_c, latent_v,
                                 masked_constraint_id, params)
    jax.block_until_ready(list(out.values()))

    # sanity shape checks
    assert out['predicted_bias'].shape == (1, 1)
    assert out['predicted_degree'].shape == (1, 1)
    assert out['connection_logits'].shape == (N_VAR, 1)
    assert out['connection_mask'].shape == (N_VAR, 1)
    assert out['predicted_weights'].ndim == 2
    assert out['predicted_weights'].shape[1] == 1
    assert out['predicted_weights'].shape[0] >= 1

    print("KERNEL_OK")
</pallas_src>

<mosaic_0001>
module attributes {stable_mosaic.version = 11 : i64} {
  func.func @fused_decoder_kernel(%arg0: memref<8x16xf32, #tpu.memory_space<vmem>>, %arg1: memref<16x9xf32, #tpu.memory_space<vmem>>, %arg2: memref<1x8xf32, #tpu.memory_space<vmem>>, %arg3: memref<1x64xf32, #tpu.memory_space<vmem>>, %arg4: memref<16x64xf32, #tpu.memory_space<vmem>>, %arg5: memref<8x16xf32, #tpu.memory_space<vmem>>, %arg6: memref<16x128xf32, #tpu.memory_space<vmem>>, %arg7: memref<1x128xf32, #tpu.memory_space<vmem>>, %arg8: memref<9x128xf32, #tpu.memory_space<vmem>>, %arg9: memref<1x128xf32, #tpu.memory_space<vmem>>, %arg10: memref<2x128x128xf32, #tpu.memory_space<vmem>>, %arg11: memref<2x128x128xf32, #tpu.memory_space<vmem>>, %arg12: memref<2x1x128xf32, #tpu.memory_space<vmem>>, %arg13: memref<2x128x128xf32, #tpu.memory_space<vmem>>, %arg14: memref<2x128x128xf32, #tpu.memory_space<vmem>>, %arg15: memref<2x1x128xf32, #tpu.memory_space<vmem>>, %arg16: memref<4x128x64xf32, #tpu.memory_space<vmem>>, %arg17: memref<4x64x64xf32, #tpu.memory_space<vmem>>, %arg18: memref<4x1x64xf32, #tpu.memory_space<vmem>>, %arg19: memref<4x1x64xf32, #tpu.memory_space<vmem>>, %arg20: memref<4x1x64xf32, #tpu.memory_space<vmem>>, %arg21: memref<4x64x32xf32, #tpu.memory_space<vmem>>, %arg22: memref<4x1x32xf32, #tpu.memory_space<vmem>>, %arg23: memref<4x1x32xf32, #tpu.memory_space<vmem>>, %arg24: memref<4x1x32xf32, #tpu.memory_space<vmem>>, %arg25: memref<4x32x1xf32, #tpu.memory_space<vmem>>, %arg26: memref<4x1x1xf32, #tpu.memory_space<vmem>>, %arg27: memref<1x2xf32, #tpu.memory_space<vmem>>, %arg28: memref<16x2xf32, #tpu.memory_space<vmem>>) attributes {dimension_semantics = [], scalar_prefetch = 0 : i64, scratch_operands = 0 : i64, tpu.core_type = #tpu.core_type<tc>} {
    %c0 = arith.constant 0 : index
    %c0_0 = arith.constant 0 : index
    %0 = vector.load %arg0[%c0, %c0_0] : memref<8x16xf32, #tpu.memory_space<vmem>>, vector<8x16xf32>
    %1 = arith.truncf %0 : vector<8x16xf32> to vector<8x16xbf16>
    %c0_1 = arith.constant 0 : index
    %c0_2 = arith.constant 0 : index
    %2 = vector.load %arg6[%c0_1, %c0_2] : memref<16x128xf32, #tpu.memory_space<vmem>>, vector<16x128xf32>
    %3 = arith.truncf %2 : vector<16x128xf32> to vector<16x128xbf16>
    %cst = arith.constant dense<0.000000e+00> : vector<8x128xf32>
    %4 = tpu.matmul %1, %3, %cst {dimension_numbers = #tpu.dot_dimension_numbers<[1], [0], [0], [1], [0, 0, 1, 1], [], []>} : vector<8x16xbf16>, vector<16x128xbf16>, vector<8x128xf32> -> vector<8x128xf32>
    %c0_3 = arith.constant 0 : index
    %c0_4 = arith.constant 0 : index
    %5 = vector.load %arg7[%c0_3, %c0_4] : memref<1x128xf32, #tpu.memory_space<vmem>>, vector<1x128xf32>
    %6 = vector.broadcast %5 : vector<1x128xf32> to vector<8x128xf32>
    %7 = arith.addf %4, %6 : vector<8x128xf32>
    %c0_5 = arith.constant 0 : index
    %c0_6 = arith.constant 0 : index
    %8 = vector.load %arg1[%c0_5, %c0_6] : memref<16x9xf32, #tpu.memory_space<vmem>>, vector<16x9xf32>
    %9 = arith.truncf %8 : vector<16x9xf32> to vector<16x9xbf16>
    %c0_7 = arith.constant 0 : index
    %c0_8 = arith.constant 0 : index
    %10 = vector.load %arg8[%c0_7, %c0_8] : memref<9x128xf32, #tpu.memory_space<vmem>>, vector<9x128xf32>
    %11 = arith.truncf %10 : vector<9x128xf32> to vector<9x128xbf16>
    %cst_9 = arith.constant dense<0.000000e+00> : vector<16x128xf32>
    %12 = tpu.matmul %9, %11, %cst_9 {dimension_numbers = #tpu.dot_dimension_numbers<[1], [0], [0], [1], [0, 0, 1, 1], [], []>} : vector<16x9xbf16>, vector<9x128xbf16>, vector<16x128xf32> -> vector<16x128xf32>
    %c0_10 = arith.constant 0 : index
    %c0_11 = arith.constant 0 : index
    %13 = vector.load %arg9[%c0_10, %c0_11] : memref<1x128xf32, #tpu.memory_space<vmem>>, vector<1x128xf32>
    %14 = vector.broadcast %13 : vector<1x128xf32> to vector<16x128xf32>
    %15 = arith.addf %12, %14 : vector<16x128xf32>
    %c0_12 = arith.constant 0 : index
    %c0_13 = arith.constant 0 : index
    %16 = vector.load %arg5[%c0_12, %c0_13] : memref<8x16xf32, #tpu.memory_space<vmem>>, vector<8x16xf32>
    %17 = arith.truncf %16 : vector<8x16xf32> to vector<8x16xbf16>
    %18 = arith.truncf %7 : vector<8x128xf32> to vector<8x128xbf16>
    %19 = arith.truncf %15 : vector<16x128xf32> to vector<16x128xbf16>
    %c0_14 = arith.constant 0 : index
    %c0_15 = arith.constant 0 : index
    %c0_16 = arith.constant 0 : index
    %20 = vector.load %arg10[%c0_14, %c0_15, %c0_16] : memref<2x128x128xf32, #tpu.memory_space<vmem>>, vector<1x128x128xf32>
    %21 = vector.shape_cast %20 : vector<1x128x128xf32> to vector<128x128xf32>
    %22 = arith.truncf %21 : vector<128x128xf32> to vector<128x128xbf16>
    %c0_17 = arith.constant 0 : index
    %c0_18 = arith.constant 0 : index
    %c0_19 = arith.constant 0 : index
    %23 = vector.load %arg11[%c0_17, %c0_18, %c0_19] : memref<2x128x128xf32, #tpu.memory_space<vmem>>, vector<1x128x128xf32>
    %24 = vector.shape_cast %23 : vector<1x128x128xf32> to vector<128x128xf32>
    %25 = arith.truncf %24 : vector<128x128xf32> to vector<128x128xbf16>
    %c0_20 = arith.constant 0 : index
    %c0_21 = arith.constant 0 : index
    %c0_22 = arith.constant 0 : index
    %26 = vector.load %arg12[%c0_20, %c0_21, %c0_22] : memref<2x1x128xf32, #tpu.memory_space<vmem>>, vector<1x1x128xf32>
    %27 = vector.shape_cast %26 : vector<1x1x128xf32> to vector<1x128xf32>
    %c0_23 = arith.constant 0 : index
    %c0_24 = arith.constant 0 : index
    %c0_25 = arith.constant 0 : index
    %28 = vector.load %arg13[%c0_23, %c0_24, %c0_25] : memref<2x128x128xf32, #tpu.memory_space<vmem>>, vector<1x128x128xf32>
    %29 = vector.shape_cast %28 : vector<1x128x128xf32> to vector<128x128xf32>
    %30 = arith.truncf %29 : vector<128x128xf32> to vector<128x128xbf16>
    %c0_26 = arith.constant 0 : index
    %c0_27 = arith.constant 0 : index
    %c0_28 = arith.constant 0 : index
    %31 = vector.load %arg14[%c0_26, %c0_27, %c0_28] : memref<2x128x128xf32, #tpu.memory_space<vmem>>, vector<1x128x128xf32>
    %32 = vector.shape_cast %31 : vector<1x128x128xf32> to vector<128x128xf32>
    %33 = arith.truncf %32 : vector<128x128xf32> to vector<128x128xbf16>
    %c0_29 = arith.constant 0 : index
    %c0_30 = arith.constant 0 : index
    %c0_31 = arith.constant 0 : index
    %34 = vector.load %arg15[%c0_29, %c0_30, %c0_31] : memref<2x1x128xf32, #tpu.memory_space<vmem>>, vector<1x1x128xf32>
    %35 = vector.shape_cast %34 : vector<1x1x128xf32> to vector<1x128xf32>
    %cst_32 = arith.constant dense<0.000000e+00> : vector<16x128xf32>
    %36 = tpu.matmul %17, %18, %cst_32 {dimension_numbers = #tpu.dot_dimension_numbers<[0], [0], [1], [1], [0, 1, 1, 1], [], []>} : vector<8x16xbf16>, vector<8x128xbf16>, vector<16x128xf32> -> vector<16x128xf32>
    %37 = arith.truncf %36 : vector<16x128xf32> to vector<16x128xbf16>
    %cst_33 = arith.constant dense<0.000000e+00> : vector<16x128xf32>
    %38 = tpu.matmul %37, %22, %cst_33 {dimension_numbers = #tpu.dot_dimension_numbers<[1], [0], [0], [1], [0, 0, 1, 1], [], []>} : vector<16x128xbf16>, vector<128x128xbf16>, vector<16x128xf32> -> vector<16x128xf32>
    %39 = vector.broadcast %27 : vector<1x128xf32> to vector<16x128xf32>
    %40 = arith.addf %38, %39 : vector<16x128xf32>
    %cst_34 = arith.constant dense<0.000000e+00> : vector<16x128xf32>
    %41 = tpu.matmul %19, %25, %cst_34 {dimension_numbers = #tpu.dot_dimension_numbers<[1], [0], [0], [1], [0, 0, 1, 1], [], []>} : vector<16x128xbf16>, vector<128x128xbf16>, vector<16x128xf32> -> vector<16x128xf32>
    %42 = arith.addf %40, %41 : vector<16x128xf32>
    %cst_35 = arith.constant dense<0.000000e+00> : vector<8x128xf32>
    %43 = tpu.matmul %17, %19, %cst_35 {dimension_numbers = #tpu.dot_dimension_numbers<[1], [0], [0], [1], [0, 0, 1, 1], [], []>} : vector<8x16xbf16>, vector<16x128xbf16>, vector<8x128xf32> -> vector<8x128xf32>
    %44 = arith.truncf %43 : vector<8x128xf32> to vector<8x128xbf16>
    %cst_36 = arith.constant dense<0.000000e+00> : vector<8x128xf32>
    %45 = tpu.matmul %44, %30, %cst_36 {dimension_numbers = #tpu.dot_dimension_numbers<[1], [0], [0], [1], [0, 0, 1, 1], [], []>} : vector<8x128xbf16>, vector<128x128xbf16>, vector<8x128xf32> -> vector<8x128xf32>
    %46 = vector.broadcast %35 : vector<1x128xf32> to vector<8x128xf32>
    %47 = arith.addf %45, %46 : vector<8x128xf32>
    %cst_37 = arith.constant dense<0.000000e+00> : vector<8x128xf32>
    %48 = tpu.matmul %18, %33, %cst_37 {dimension_numbers = #tpu.dot_dimension_numbers<[1], [0], [0], [1], [0, 0, 1, 1], [], []>} : vector<8x128xbf16>, vector<128x128xbf16>, vector<8x128xf32> -> vector<8x128xf32>
    %49 = arith.addf %47, %48 : vector<8x128xf32>
    %cst_38 = arith.constant 0.000000e+00 : f32
    %50 = vector.broadcast %cst_38 : f32 to vector<8x128xf32>
    %51 = arith.maximumf %49, %50 : vector<8x128xf32>
    %cst_39 = arith.constant 0.000000e+00 : f32
    %52 = vector.broadcast %cst_39 : f32 to vector<16x128xf32>
    %53 = arith.maximumf %42, %52 : vector<16x128xf32>
    %54 = arith.truncf %51 : vector<8x128xf32> to vector<8x128xbf16>
    %55 = arith.truncf %53 : vector<16x128xf32> to vector<16x128xbf16>
    %c1 = arith.constant 1 : index
    %c0_40 = arith.constant 0 : index
    %c0_41 = arith.constant 0 : index
    %56 = vector.load %arg10[%c1, %c0_40, %c0_41] : memref<2x128x128xf32, #tpu.memory_space<vmem>>, vector<1x128x128xf32>
    %57 = vector.shape_cast %56 : vector<1x128x128xf32> to vector<128x128xf32>
    %58 = arith.truncf %57 : vector<128x128xf32> to vector<128x128xbf16>
    %c1_42 = arith.constant 1 : index
    %c0_43 = arith.constant 0 : index
    %c0_44 = arith.constant 0 : index
    %59 = vector.load %arg11[%c1_42, %c0_43, %c0_44] : memref<2x128x128xf32, #tpu.memory_space<vmem>>, vector<1x128x128xf32>
    %60 = vector.shape_cast %59 : vector<1x128x128xf32> to vector<128x128xf32>
    %61 = arith.truncf %60 : vector<128x128xf32> to vector<128x128xbf16>
    %c1_45 = arith.constant 1 : index
    %c0_46 = arith.constant 0 : index
    %c0_47 = arith.constant 0 : index
    %62 = vector.load %arg12[%c1_45, %c0_46, %c0_47] : memref<2x1x128xf32, #tpu.memory_space<vmem>>, vector<1x1x128xf32>
    %63 = vector.shape_cast %62 : vector<1x1x128xf32> to vector<1x128xf32>
    %c1_48 = arith.constant 1 : index
    %c0_49 = arith.constant 0 : index
    %c0_50 = arith.constant 0 : index
    %64 = vector.load %arg13[%c1_48, %c0_49, %c0_50] : memref<2x128x128xf32, #tpu.memory_space<vmem>>, vector<1x128x128xf32>
    %65 = vector.shape_cast %64 : vector<1x128x128xf32> to vector<128x128xf32>
    %66 = arith.truncf %65 : vector<128x128xf32> to vector<128x128xbf16>
    %c1_51 = arith.constant 1 : index
    %c0_52 = arith.constant 0 : index
    %c0_53 = arith.constant 0 : index
    %67 = vector.load %arg14[%c1_51, %c0_52, %c0_53] : memref<2x128x128xf32, #tpu.memory_space<vmem>>, vector<1x128x128xf32>
    %68 = vector.shape_cast %67 : vector<1x128x128xf32> to vector<128x128xf32>
    %69 = arith.truncf %68 : vector<128x128xf32> to vector<128x128xbf16>
    %c1_54 = arith.constant 1 : index
    %c0_55 = arith.constant 0 : index
    %c0_56 = arith.constant 0 : index
    %70 = vector.load %arg15[%c1_54, %c0_55, %c0_56] : memref<2x1x128xf32, #tpu.memory_space<vmem>>, vector<1x1x128xf32>
    %71 = vector.shape_cast %70 : vector<1x1x128xf32> to vector<1x128xf32>
    %cst_57 = arith.constant dense<0.000000e+00> : vector<16x128xf32>
    %72 = tpu.matmul %17, %54, %cst_57 {dimension_numbers = #tpu.dot_dimension_numbers<[0], [0], [1], [1], [0, 1, 1, 1], [], []>} : vector<8x16xbf16>, vector<8x128xbf16>, vector<16x128xf32> -> vector<16x128xf32>
    %73 = arith.truncf %72 : vector<16x128xf32> to vector<16x128xbf16>
    %cst_58 = arith.constant dense<0.000000e+00> : vector<16x128xf32>
    %74 = tpu.matmul %73, %58, %cst_58 {dimension_numbers = #tpu.dot_dimension_numbers<[1], [0], [0], [1], [0, 0, 1, 1], [], []>} : vector<16x128xbf16>, vector<128x128xbf16>, vector<16x128xf32> -> vector<16x128xf32>
    %75 = vector.broadcast %63 : vector<1x128xf32> to vector<16x128xf32>
    %76 = arith.addf %74, %75 : vector<16x128xf32>
    %cst_59 = arith.constant dense<0.000000e+00> : vector<16x128xf32>
    %77 = tpu.matmul %55, %61, %cst_59 {dimension_numbers = #tpu.dot_dimension_numbers<[1], [0], [0], [1], [0, 0, 1, 1], [], []>} : vector<16x128xbf16>, vector<128x128xbf16>, vector<16x128xf32> -> vector<16x128xf32>
    %78 = arith.addf %76, %77 : vector<16x128xf32>
    %cst_60 = arith.constant dense<0.000000e+00> : vector<8x128xf32>
    %79 = tpu.matmul %17, %55, %cst_60 {dimension_numbers = #tpu.dot_dimension_numbers<[1], [0], [0], [1], [0, 0, 1, 1], [], []>} : vector<8x16xbf16>, vector<16x128xbf16>, vector<8x128xf32> -> vector<8x128xf32>
    %80 = arith.truncf %79 : vector<8x128xf32> to vector<8x128xbf16>
    %cst_61 = arith.constant dense<0.000000e+00> : vector<8x128xf32>
    %81 = tpu.matmul %80, %66, %cst_61 {dimension_numbers = #tpu.dot_dimension_numbers<[1], [0], [0], [1], [0, 0, 1, 1], [], []>} : vector<8x128xbf16>, vector<128x128xbf16>, vector<8x128xf32> -> vector<8x128xf32>
    %82 = vector.broadcast %71 : vector<1x128xf32> to vector<8x128xf32>
    %83 = arith.addf %81, %82 : vector<8x128xf32>
    %cst_62 = arith.constant dense<0.000000e+00> : vector<8x128xf32>
    %84 = tpu.matmul %54, %69, %cst_62 {dimension_numbers = #tpu.dot_dimension_numbers<[1], [0], [0], [1], [0, 0, 1, 1], [], []>} : vector<8x128xbf16>, vector<128x128xbf16>, vector<8x128xf32> -> vector<8x128xf32>
    %85 = arith.addf %83, %84 : vector<8x128xf32>
    %cst_63 = arith.constant 0.000000e+00 : f32
    %86 = vector.broadcast %cst_63 : f32 to vector<8x128xf32>
    %87 = arith.maximumf %85, %86 : vector<8x128xf32>
    %cst_64 = arith.constant 0.000000e+00 : f32
    %88 = vector.broadcast %cst_64 : f32 to vector<16x128xf32>
    %89 = arith.maximumf %78, %88 : vector<16x128xf32>
    %c0_65 = arith.constant 0 : index
    %c0_66 = arith.constant 0 : index
    %90 = vector.load %arg2[%c0_65, %c0_66] : memref<1x8xf32, #tpu.memory_space<vmem>>, vector<1x8xf32>
    %cst_67 = arith.constant dense<0.000000e+00> : vector<1x128xf32>
    %91 = tpu.matmul %90, %87, %cst_67 {dimension_numbers = #tpu.dot_dimension_numbers<[1], [0], [0], [1], [0, 0, 1, 1], [], []>} : vector<1x8xf32>, vector<8x128xf32>, vector<1x128xf32> -> vector<1x128xf32>
    %c0_68 = arith.constant 0 : index
    %c0_69 = arith.constant 0 : index
    %92 = vector.load %arg3[%c0_68, %c0_69] : memref<1x64xf32, #tpu.memory_space<vmem>>, vector<1x64xf32>
    %c0_70 = arith.constant 0 : index
    %c0_71 = arith.constant 0 : index
    %93 = vector.load %arg4[%c0_70, %c0_71] : memref<16x64xf32, #tpu.memory_space<vmem>>, vector<16x64xf32>
    %94 = arith.truncf %91 : vector<1x128xf32> to vector<1x128xbf16>
    %c0_72 = arith.constant 0 : index
    %c0_73 = arith.constant 0 : index
    %c0_74 = arith.constant 0 : index
    %95 = vector.load %arg16[%c0_72, %c0_73, %c0_74] : memref<4x128x64xf32, #tpu.memory_space<vmem>>, vector<1x128x64xf32>
    %96 = vector.shape_cast %95 : vector<1x128x64xf32> to vector<128x64xf32>
    %97 = arith.truncf %96 : vector<128x64xf32> to vector<128x64xbf16>
    %cst_75 = arith.constant dense<0.000000e+00> : vector<1x64xf32>
    %98 = tpu.matmul %94, %97, %cst_75 {dimension_numbers = #tpu.dot_dimension_numbers<[1], [0], [0], [1], [0, 0, 1, 1], [], []>} : vector<1x128xbf16>, vector<128x64xbf16>, vector<1x64xf32> -> vector<1x64xf32>
    %99 = arith.truncf %92 : vector<1x64xf32> to vector<1x64xbf16>
    %c0_76 = arith.constant 0 : index
    %c0_77 = arith.constant 0 : index
    %c0_78 = arith.constant 0 : index
    %100 = vector.load %arg17[%c0_76, %c0_77, %c0_78] : memref<4x64x64xf32, #tpu.memory_space<vmem>>, vector<1x64x64xf32>
    %101 = vector.shape_cast %100 : vector<1x64x64xf32> to vector<64x64xf32>
    %102 = arith.truncf %101 : vector<64x64xf32> to vector<64x64xbf16>
    %cst_79 = arith.constant dense<0.000000e+00> : vector<1x64xf32>
    %103 = tpu.matmul %99, %102, %cst_79 {dimension_numbers = #tpu.dot_dimension_numbers<[1], [0], [0], [1], [0, 0, 1, 1], [], []>} : vector<1x64xbf16>, vector<64x64xbf16>, vector<1x64xf32> -> vector<1x64xf32>
    %104 = arith.addf %98, %103 : vector<1x64xf32>
    %c0_80 = arith.constant 0 : index
    %c0_81 = arith.constant 0 : index
    %c0_82 = arith.constant 0 : index
    %105 = vector.load %arg18[%c0_80, %c0_81, %c0_82] : memref<4x1x64xf32, #tpu.memory_space<vmem>>, vector<1x1x64xf32>
    %106 = vector.shape_cast %105 : vector<1x1x64xf32> to vector<1x64xf32>
    %107 = arith.addf %104, %106 : vector<1x64xf32>
    %cst_83 = arith.constant dense<0.000000e+00> : vector<1xf32>
    %108 = vector.multi_reduction <add>, %107, %cst_83 [1] : vector<1x64xf32> to vector<1xf32>
    %109 = vector.shape_cast %108 : vector<1xf32> to vector<1x1xf32>
    %cst_84 = arith.constant 6.400000e+01 : f32
    %110 = vector.broadcast %cst_84 : f32 to vector<1x1xf32>
    %111 = arith.divf %109, %110 : vector<1x1xf32>
    %112 = vector.broadcast %111 : vector<1x1xf32> to vector<1x64xf32>
    %113 = arith.subf %107, %112 : vector<1x64xf32>
    %114 = arith.mulf %113, %113 : vector<1x64xf32>
    %cst_85 = arith.constant dense<0.000000e+00> : vector<1xf32>
    %115 = vector.multi_reduction <add>, %114, %cst_85 [1] : vector<1x64xf32> to vector<1xf32>
    %116 = vector.shape_cast %115 : vector<1xf32> to vector<1x1xf32>
    %cst_86 = arith.constant 6.400000e+01 : f32
    %117 = vector.broadcast %cst_86 : f32 to vector<1x1xf32>
    %118 = arith.divf %116, %117 : vector<1x1xf32>
    %119 = vector.broadcast %111 : vector<1x1xf32> to vector<1x64xf32>
    %120 = arith.subf %107, %119 : vector<1x64xf32>
    %cst_87 = arith.constant 9.99999974E-6 : f32
    %121 = vector.broadcast %cst_87 : f32 to vector<1x1xf32>
    %122 = arith.addf %118, %121 : vector<1x1xf32>
    %123 = math.rsqrt %122 : vector<1x1xf32>
    %124 = vector.broadcast %123 : vector<1x1xf32> to vector<1x64xf32>
    %125 = arith.mulf %120, %124 : vector<1x64xf32>
    %c0_88 = arith.constant 0 : index
    %c0_89 = arith.constant 0 : index
    %c0_90 = arith.constant 0 : index
    %126 = vector.load %arg19[%c0_88, %c0_89, %c0_90] : memref<4x1x64xf32, #tpu.memory_space<vmem>>, vector<1x1x64xf32>
    %127 = vector.shape_cast %126 : vector<1x1x64xf32> to vector<1x64xf32>
    %128 = arith.mulf %125, %127 : vector<1x64xf32>
    %c0_91 = arith.constant 0 : index
    %c0_92 = arith.constant 0 : index
    %c0_93 = arith.constant 0 : index
    %129 = vector.load %arg20[%c0_91, %c0_92, %c0_93] : memref<4x1x64xf32, #tpu.memory_space<vmem>>, vector<1x1x64xf32>
    %130 = vector.shape_cast %129 : vector<1x1x64xf32> to vector<1x64xf32>
    %131 = arith.addf %128, %130 : vector<1x64xf32>
    %cst_94 = arith.constant 0.000000e+00 : f32
    %132 = vector.broadcast %cst_94 : f32 to vector<1x64xf32>
    %133 = arith.maximumf %131, %132 : vector<1x64xf32>
    %134 = arith.truncf %133 : vector<1x64xf32> to vector<1x64xbf16>
    %c0_95 = arith.constant 0 : index
    %c0_96 = arith.constant 0 : index
    %c0_97 = arith.constant 0 : index
    %135 = vector.load %arg21[%c0_95, %c0_96, %c0_97] : memref<4x64x32xf32, #tpu.memory_space<vmem>>, vector<1x64x32xf32>
    %136 = vector.shape_cast %135 : vector<1x64x32xf32> to vector<64x32xf32>
    %137 = arith.truncf %136 : vector<64x32xf32> to vector<64x32xbf16>
    %cst_98 = arith.constant dense<0.000000e+00> : vector<1x32xf32>
    %138 = tpu.matmul %134, %137, %cst_98 {dimension_numbers = #tpu.dot_dimension_numbers<[1], [0], [0], [1], [0, 0, 1, 1], [], []>} : vector<1x64xbf16>, vector<64x32xbf16>, vector<1x32xf32> -> vector<1x32xf32>
    %c0_99 = arith.constant 0 : index
    %c0_100 = arith.constant 0 : index
    %c0_101 = arith.constant 0 : index
    %139 = vector.load %arg22[%c0_99, %c0_100, %c0_101] : memref<4x1x32xf32, #tpu.memory_space<vmem>>, vector<1x1x32xf32>
    %140 = vector.shape_cast %139 : vector<1x1x32xf32> to vector<1x32xf32>
    %141 = arith.addf %138, %140 : vector<1x32xf32>
    %cst_102 = arith.constant dense<0.000000e+00> : vector<1xf32>
    %142 = vector.multi_reduction <add>, %141, %cst_102 [1] : vector<1x32xf32> to vector<1xf32>
    %143 = vector.shape_cast %142 : vector<1xf32> to vector<1x1xf32>
    %cst_103 = arith.constant 3.200000e+01 : f32
    %144 = vector.broadcast %cst_103 : f32 to vector<1x1xf32>
    %145 = arith.divf %143, %144 : vector<1x1xf32>
    %146 = vector.broadcast %145 : vector<1x1xf32> to vector<1x32xf32>
    %147 = arith.subf %141, %146 : vector<1x32xf32>
    %148 = arith.mulf %147, %147 : vector<1x32xf32>
    %cst_104 = arith.constant dense<0.000000e+00> : vector<1xf32>
    %149 = vector.multi_reduction <add>, %148, %cst_104 [1] : vector<1x32xf32> to vector<1xf32>
    %150 = vector.shape_cast %149 : vector<1xf32> to vector<1x1xf32>
    %cst_105 = arith.constant 3.200000e+01 : f32
    %151 = vector.broadcast %cst_105 : f32 to vector<1x1xf32>
    %152 = arith.divf %150, %151 : vector<1x1xf32>
    %153 = vector.broadcast %145 : vector<1x1xf32> to vector<1x32xf32>
    %154 = arith.subf %141, %153 : vector<1x32xf32>
    %cst_106 = arith.constant 9.99999974E-6 : f32
    %155 = vector.broadcast %cst_106 : f32 to vector<1x1xf32>
    %156 = arith.addf %152, %155 : vector<1x1xf32>
    %157 = math.rsqrt %156 : vector<1x1xf32>
    %158 = vector.broadcast %157 : vector<1x1xf32> to vector<1x32xf32>
    %159 = arith.mulf %154, %158 : vector<1x32xf32>
    %c0_107 = arith.constant 0 : index
    %c0_108 = arith.constant 0 : index
    %c0_109 = arith.constant 0 : index
    %160 = vector.load %arg23[%c0_107, %c0_108, %c0_109] : memref<4x1x32xf32, #tpu.memory_space<vmem>>, vector<1x1x32xf32>
    %161 = vector.shape_cast %160 : vector<1x1x32xf32> to vector<1x32xf32>
    %162 = arith.mulf %159, %161 : vector<1x32xf32>
    %c0_110 = arith.constant 0 : index
    %c0_111 = arith.constant 0 : index
    %c0_112 = arith.constant 0 : index
    %163 = vector.load %arg24[%c0_110, %c0_111, %c0_112] : memref<4x1x32xf32, #tpu.memory_space<vmem>>, vector<1x1x32xf32>
    %164 = vector.shape_cast %163 : vector<1x1x32xf32> to vector<1x32xf32>
    %165 = arith.addf %162, %164 : vector<1x32xf32>
    %cst_113 = arith.constant 0.000000e+00 : f32
    %166 = vector.broadcast %cst_113 : f32 to vector<1x32xf32>
    %167 = arith.maximumf %165, %166 : vector<1x32xf32>
    %168 = arith.truncf %167 : vector<1x32xf32> to vector<1x32xbf16>
    %c0_114 = arith.constant 0 : index
    %c0_115 = arith.constant 0 : index
    %c0_116 = arith.constant 0 : index
    %169 = vector.load %arg25[%c0_114, %c0_115, %c0_116] : memref<4x32x1xf32, #tpu.memory_space<vmem>>, vector<1x32x1xf32>
    %170 = vector.shape_cast %169 : vector<1x32x1xf32> to vector<32x1xf32>
    %171 = arith.truncf %170 : vector<32x1xf32> to vector<32x1xbf16>
    %cst_117 = arith.constant dense<0.000000e+00> : vector<1x1xf32>
    %172 = tpu.matmul %168, %171, %cst_117 {dimension_numbers = #tpu.dot_dimension_numbers<[1], [0], [0], [1], [0, 0, 1, 1], [], []>} : vector<1x32xbf16>, vector<32x1xbf16>, vector<1x1xf32> -> vector<1x1xf32>
    %c0_118 = arith.constant 0 : index
    %c0_119 = arith.constant 0 : index
    %c0_120 = arith.constant 0 : index
    %173 = vector.load %arg26[%c0_118, %c0_119, %c0_120] : memref<4x1x1xf32, #tpu.memory_space<vmem>>, vector<1x1x1xf32>
    %174 = vector.shape_cast %173 : vector<1x1x1xf32> to vector<1x1xf32>
    %175 = arith.addf %172, %174 : vector<1x1xf32>
    %176 = arith.negf %175 : vector<1x1xf32>
    %177 = math.exp %176 : vector<1x1xf32>
    %cst_121 = arith.constant 1.000000e+00 : f32
    %178 = vector.broadcast %cst_121 : f32 to vector<1x1xf32>
    %179 = arith.addf %178, %177 : vector<1x1xf32>
    %180 = arith.divf %178, %179 : vector<1x1xf32>
    %c0_122 = arith.constant 0 : index
    %c0_123 = arith.constant 0 : index
    %181 = vector.load %arg27[%c0_122, %c0_123] : memref<1x2xf32, #tpu.memory_space<vmem>>, vector<1x1xf32>
    tpu.vector_store %arg27[%c0_122, %c0_123], %180 {strides = array<i32>} : memref<1x2xf32, #tpu.memory_space<vmem>>, vector<1x1xf32>,
    %182 = arith.truncf %91 : vector<1x128xf32> to vector<1x128xbf16>
    %c1_124 = arith.constant 1 : index
    %c0_125 = arith.constant 0 : index
    %c0_126 = arith.constant 0 : index
    %183 = vector.load %arg16[%c1_124, %c0_125, %c0_126] : memref<4x128x64xf32, #tpu.memory_space<vmem>>, vector<1x128x64xf32>
    %184 = vector.shape_cast %183 : vector<1x128x64xf32> to vector<128x64xf32>
    %185 = arith.truncf %184 : vector<128x64xf32> to vector<128x64xbf16>
    %cst_127 = arith.constant dense<0.000000e+00> : vector<1x64xf32>
    %186 = tpu.matmul %182, %185, %cst_127 {dimension_numbers = #tpu.dot_dimension_numbers<[1], [0], [0], [1], [0, 0, 1, 1], [], []>} : vector<1x128xbf16>, vector<128x64xbf16>, vector<1x64xf32> -> vector<1x64xf32>
    %187 = arith.truncf %92 : vector<1x64xf32> to vector<1x64xbf16>
    %c1_128 = arith.constant 1 : index
    %c0_129 = arith.constant 0 : index
    %c0_130 = arith.constant 0 : index
    %188 = vector.load %arg17[%c1_128, %c0_129, %c0_130] : memref<4x64x64xf32, #tpu.memory_space<vmem>>, vector<1x64x64xf32>
    %189 = vector.shape_cast %188 : vector<1x64x64xf32> to vector<64x64xf32>
    %190 = arith.truncf %189 : vector<64x64xf32> to vector<64x64xbf16>
    %cst_131 = arith.constant dense<0.000000e+00> : vector<1x64xf32>
    %191 = tpu.matmul %187, %190, %cst_131 {dimension_numbers = #tpu.dot_dimension_numbers<[1], [0], [0], [1], [0, 0, 1, 1], [], []>} : vector<1x64xbf16>, vector<64x64xbf16>, vector<1x64xf32> -> vector<1x64xf32>
    %192 = arith.addf %186, %191 : vector<1x64xf32>
    %c1_132 = arith.constant 1 : index
    %c0_133 = arith.constant 0 : index
    %c0_134 = arith.constant 0 : index
    %193 = vector.load %arg18[%c1_132, %c0_133, %c0_134] : memref<4x1x64xf32, #tpu.memory_space<vmem>>, vector<1x1x64xf32>
    %194 = vector.shape_cast %193 : vector<1x1x64xf32> to vector<1x64xf32>
    %195 = arith.addf %192, %194 : vector<1x64xf32>
    %cst_135 = arith.constant dense<0.000000e+00> : vector<1xf32>
    %196 = vector.multi_reduction <add>, %195, %cst_135 [1] : vector<1x64xf32> to vector<1xf32>
    %197 = vector.shape_cast %196 : vector<1xf32> to vector<1x1xf32>
    %cst_136 = arith.constant 6.400000e+01 : f32
    %198 = vector.broadcast %cst_136 : f32 to vector<1x1xf32>
    %199 = arith.divf %197, %198 : vector<1x1xf32>
    %200 = vector.broadcast %199 : vector<1x1xf32> to vector<1x64xf32>
    %201 = arith.subf %195, %200 : vector<1x64xf32>
    %202 = arith.mulf %201, %201 : vector<1x64xf32>
    %cst_137 = arith.constant dense<0.000000e+00> : vector<1xf32>
    %203 = vector.multi_reduction <add>, %202, %cst_137 [1] : vector<1x64xf32> to vector<1xf32>
    %204 = vector.shape_cast %203 : vector<1xf32> to vector<1x1xf32>
    %cst_138 = arith.constant 6.400000e+01 : f32
    %205 = vector.broadcast %cst_138 : f32 to vector<1x1xf32>
    %206 = arith.divf %204, %205 : vector<1x1xf32>
    %207 = vector.broadcast %199 : vector<1x1xf32> to vector<1x64xf32>
    %208 = arith.subf %195, %207 : vector<1x64xf32>
    %cst_139 = arith.constant 9.99999974E-6 : f32
    %209 = vector.broadcast %cst_139 : f32 to vector<1x1xf32>
    %210 = arith.addf %206, %209 : vector<1x1xf32>
    %211 = math.rsqrt %210 : vector<1x1xf32>
    %212 = vector.broadcast %211 : vector<1x1xf32> to vector<1x64xf32>
    %213 = arith.mulf %208, %212 : vector<1x64xf32>
    %c1_140 = arith.constant 1 : index
    %c0_141 = arith.constant 0 : index
    %c0_142 = arith.constant 0 : index
    %214 = vector.load %arg19[%c1_140, %c0_141, %c0_142] : memref<4x1x64xf32, #tpu.memory_space<vmem>>, vector<1x1x64xf32>
    %215 = vector.shape_cast %214 : vector<1x1x64xf32> to vector<1x64xf32>
    %216 = arith.mulf %213, %215 : vector<1x64xf32>
    %c1_143 = arith.constant 1 : index
    %c0_144 = arith.constant 0 : index
    %c0_145 = arith.constant 0 : index
    %217 = vector.load %arg20[%c1_143, %c0_144, %c0_145] : memref<4x1x64xf32, #tpu.memory_space<vmem>>, vector<1x1x64xf32>
    %218 = vector.shape_cast %217 : vector<1x1x64xf32> to vector<1x64xf32>
    %219 = arith.addf %216, %218 : vector<1x64xf32>
    %cst_146 = arith.constant 0.000000e+00 : f32
    %220 = vector.broadcast %cst_146 : f32 to vector<1x64xf32>
    %221 = arith.maximumf %219, %220 : vector<1x64xf32>
    %222 = arith.truncf %221 : vector<1x64xf32> to vector<1x64xbf16>
    %c1_147 = arith.constant 1 : index
    %c0_148 = arith.constant 0 : index
    %c0_149 = arith.constant 0 : index
    %223 = vector.load %arg21[%c1_147, %c0_148, %c0_149] : memref<4x64x32xf32, #tpu.memory_space<vmem>>, vector<1x64x32xf32>
    %224 = vector.shape_cast %223 : vector<1x64x32xf32> to vector<64x32xf32>
    %225 = arith.truncf %224 : vector<64x32xf32> to vector<64x32xbf16>
    %cst_150 = arith.constant dense<0.000000e+00> : vector<1x32xf32>
    %226 = tpu.matmul %222, %225, %cst_150 {dimension_numbers = #tpu.dot_dimension_numbers<[1], [0], [0], [1], [0, 0, 1, 1], [], []>} : vector<1x64xbf16>, vector<64x32xbf16>, vector<1x32xf32> -> vector<1x32xf32>
    %c1_151 = arith.constant 1 : index
    %c0_152 = arith.constant 0 : index
    %c0_153 = arith.constant 0 : index
    %227 = vector.load %arg22[%c1_151, %c0_152, %c0_153] : memref<4x1x32xf32, #tpu.memory_space<vmem>>, vector<1x1x32xf32>
    %228 = vector.shape_cast %227 : vector<1x1x32xf32> to vector<1x32xf32>
    %229 = arith.addf %226, %228 : vector<1x32xf32>
    %cst_154 = arith.constant dense<0.000000e+00> : vector<1xf32>
    %230 = vector.multi_reduction <add>, %229, %cst_154 [1] : vector<1x32xf32> to vector<1xf32>
    %231 = vector.shape_cast %230 : vector<1xf32> to vector<1x1xf32>
    %cst_155 = arith.constant 3.200000e+01 : f32
    %232 = vector.broadcast %cst_155 : f32 to vector<1x1xf32>
    %233 = arith.divf %231, %232 : vector<1x1xf32>
    %234 = vector.broadcast %233 : vector<1x1xf32> to vector<1x32xf32>
    %235 = arith.subf %229, %234 : vector<1x32xf32>
    %236 = arith.mulf %235, %235 : vector<1x32xf32>
    %cst_156 = arith.constant dense<0.000000e+00> : vector<1xf32>
    %237 = vector.multi_reduction <add>, %236, %cst_156 [1] : vector<1x32xf32> to vector<1xf32>
    %238 = vector.shape_cast %237 : vector<1xf32> to vector<1x1xf32>
    %cst_157 = arith.constant 3.200000e+01 : f32
    %239 = vector.broadcast %cst_157 : f32 to vector<1x1xf32>
    %240 = arith.divf %238, %239 : vector<1x1xf32>
    %241 = vector.broadcast %233 : vector<1x1xf32> to vector<1x32xf32>
    %242 = arith.subf %229, %241 : vector<1x32xf32>
    %cst_158 = arith.constant 9.99999974E-6 : f32
    %243 = vector.broadcast %cst_158 : f32 to vector<1x1xf32>
    %244 = arith.addf %240, %243 : vector<1x1xf32>
    %245 = math.rsqrt %244 : vector<1x1xf32>
    %246 = vector.broadcast %245 : vector<1x1xf32> to vector<1x32xf32>
    %247 = arith.mulf %242, %246 : vector<1x32xf32>
    %c1_159 = arith.constant 1 : index
    %c0_160 = arith.constant 0 : index
    %c0_161 = arith.constant 0 : index
    %248 = vector.load %arg23[%c1_159, %c0_160, %c0_161] : memref<4x1x32xf32, #tpu.memory_space<vmem>>, vector<1x1x32xf32>
    %249 = vector.shape_cast %248 : vector<1x1x32xf32> to vector<1x32xf32>
    %250 = arith.mulf %247, %249 : vector<1x32xf32>
    %c1_162 = arith.constant 1 : index
    %c0_163 = arith.constant 0 : index
    %c0_164 = arith.constant 0 : index
    %251 = vector.load %arg24[%c1_162, %c0_163, %c0_164] : memref<4x1x32xf32, #tpu.memory_space<vmem>>, vector<1x1x32xf32>
    %252 = vector.shape_cast %251 : vector<1x1x32xf32> to vector<1x32xf32>
    %253 = arith.addf %250, %252 : vector<1x32xf32>
    %cst_165 = arith.constant 0.000000e+00 : f32
    %254 = vector.broadcast %cst_165 : f32 to vector<1x32xf32>
    %255 = arith.maximumf %253, %254 : vector<1x32xf32>
    %256 = arith.truncf %255 : vector<1x32xf32> to vector<1x32xbf16>
    %c1_166 = arith.constant 1 : index
    %c0_167 = arith.constant 0 : index
    %c0_168 = arith.constant 0 : index
    %257 = vector.load %arg25[%c1_166, %c0_167, %c0_168] : memref<4x32x1xf32, #tpu.memory_space<vmem>>, vector<1x32x1xf32>
    %258 = vector.shape_cast %257 : vector<1x32x1xf32> to vector<32x1xf32>
    %259 = arith.truncf %258 : vector<32x1xf32> to vector<32x1xbf16>
    %cst_169 = arith.constant dense<0.000000e+00> : vector<1x1xf32>
    %260 = tpu.matmul %256, %259, %cst_169 {dimension_numbers = #tpu.dot_dimension_numbers<[1], [0], [0], [1], [0, 0, 1, 1], [], []>} : vector<1x32xbf16>, vector<32x1xbf16>, vector<1x1xf32> -> vector<1x1xf32>
    %c1_170 = arith.constant 1 : index
    %c0_171 = arith.constant 0 : index
    %c0_172 = arith.constant 0 : index
    %261 = vector.load %arg26[%c1_170, %c0_171, %c0_172] : memref<4x1x1xf32, #tpu.memory_space<vmem>>, vector<1x1x1xf32>
    %262 = vector.shape_cast %261 : vector<1x1x1xf32> to vector<1x1xf32>
    %263 = arith.addf %260, %262 : vector<1x1xf32>
    %264 = arith.negf %263 : vector<1x1xf32>
    %265 = math.exp %264 : vector<1x1xf32>
    %cst_173 = arith.constant 1.000000e+00 : f32
    %266 = vector.broadcast %cst_173 : f32 to vector<1x1xf32>
    %267 = arith.addf %266, %265 : vector<1x1xf32>
    %268 = arith.divf %266, %267 : vector<1x1xf32>
    %c0_174 = arith.constant 0 : index
    %c1_175 = arith.constant 1 : index
    %269 = vector.load %arg27[%c0_174, %c1_175] : memref<1x2xf32, #tpu.memory_space<vmem>>, vector<1x1xf32>
    tpu.vector_store %arg27[%c0_174, %c1_175], %268 {strides = array<i32>} : memref<1x2xf32, #tpu.memory_space<vmem>>, vector<1x1xf32>,
    %270 = arith.truncf %89 : vector<16x128xf32> to vector<16x128xbf16>
    %c2 = arith.constant 2 : index
    %c0_176 = arith.constant 0 : index
    %c0_177 = arith.constant 0 : index
    %271 = vector.load %arg16[%c2, %c0_176, %c0_177] : memref<4x128x64xf32, #tpu.memory_space<vmem>>, vector<1x128x64xf32>
    %272 = vector.shape_cast %271 : vector<1x128x64xf32> to vector<128x64xf32>
    %273 = arith.truncf %272 : vector<128x64xf32> to vector<128x64xbf16>
    %cst_178 = arith.constant dense<0.000000e+00> : vector<16x64xf32>
    %274 = tpu.matmul %270, %273, %cst_178 {dimension_numbers = #tpu.dot_dimension_numbers<[1], [0], [0], [1], [0, 0, 1, 1], [], []>} : vector<16x128xbf16>, vector<128x64xbf16>, vector<16x64xf32> -> vector<16x64xf32>
    %275 = arith.truncf %93 : vector<16x64xf32> to vector<16x64xbf16>
    %c2_179 = arith.constant 2 : index
    %c0_180 = arith.constant 0 : index
    %c0_181 = arith.constant 0 : index
    %276 = vector.load %arg17[%c2_179, %c0_180, %c0_181] : memref<4x64x64xf32, #tpu.memory_space<vmem>>, vector<1x64x64xf32>
    %277 = vector.shape_cast %276 : vector<1x64x64xf32> to vector<64x64xf32>
    %278 = arith.truncf %277 : vector<64x64xf32> to vector<64x64xbf16>
    %cst_182 = arith.constant dense<0.000000e+00> : vector<16x64xf32>
    %279 = tpu.matmul %275, %278, %cst_182 {dimension_numbers = #tpu.dot_dimension_numbers<[1], [0], [0], [1], [0, 0, 1, 1], [], []>} : vector<16x64xbf16>, vector<64x64xbf16>, vector<16x64xf32> -> vector<16x64xf32>
    %280 = arith.addf %274, %279 : vector<16x64xf32>
    %c2_183 = arith.constant 2 : index
    %c0_184 = arith.constant 0 : index
    %c0_185 = arith.constant 0 : index
    %281 = vector.load %arg18[%c2_183, %c0_184, %c0_185] : memref<4x1x64xf32, #tpu.memory_space<vmem>>, vector<1x1x64xf32>
    %282 = vector.shape_cast %281 : vector<1x1x64xf32> to vector<1x64xf32>
    %283 = vector.broadcast %282 : vector<1x64xf32> to vector<16x64xf32>
    %284 = arith.addf %280, %283 : vector<16x64xf32>
    %cst_186 = arith.constant dense<0.000000e+00> : vector<16xf32>
    %285 = vector.multi_reduction <add>, %284, %cst_186 [1] : vector<16x64xf32> to vector<16xf32>
    %286 = vector.shape_cast %285 : vector<16xf32> to vector<16x1xf32>
    %cst_187 = arith.constant 6.400000e+01 : f32
    %287 = vector.broadcast %cst_187 : f32 to vector<16x1xf32>
    %288 = arith.divf %286, %287 : vector<16x1xf32>
    %289 = vector.broadcast %288 : vector<16x1xf32> to vector<16x64xf32>
    %290 = arith.subf %284, %289 : vector<16x64xf32>
    %291 = arith.mulf %290, %290 : vector<16x64xf32>
    %cst_188 = arith.constant dense<0.000000e+00> : vector<16xf32>
    %292 = vector.multi_reduction <add>, %291, %cst_188 [1] : vector<16x64xf32> to vector<16xf32>
    %293 = vector.shape_cast %292 : vector<16xf32> to vector<16x1xf32>
    %cst_189 = arith.constant 6.400000e+01 : f32
    %294 = vector.broadcast %cst_189 : f32 to vector<16x1xf32>
    %295 = arith.divf %293, %294 : vector<16x1xf32>
    %296 = vector.broadcast %288 : vector<16x1xf32> to vector<16x64xf32>
    %297 = arith.subf %284, %296 : vector<16x64xf32>
    %cst_190 = arith.constant 9.99999974E-6 : f32
    %298 = vector.broadcast %cst_190 : f32 to vector<16x1xf32>
    %299 = arith.addf %295, %298 : vector<16x1xf32>
    %300 = math.rsqrt %299 : vector<16x1xf32>
    %301 = vector.broadcast %300 : vector<16x1xf32> to vector<16x64xf32>
    %302 = arith.mulf %297, %301 : vector<16x64xf32>
    %c2_191 = arith.constant 2 : index
    %c0_192 = arith.constant 0 : index
    %c0_193 = arith.constant 0 : index
    %303 = vector.load %arg19[%c2_191, %c0_192, %c0_193] : memref<4x1x64xf32, #tpu.memory_space<vmem>>, vector<1x1x64xf32>
    %304 = vector.shape_cast %303 : vector<1x1x64xf32> to vector<1x64xf32>
    %305 = vector.broadcast %304 : vector<1x64xf32> to vector<16x64xf32>
    %306 = arith.mulf %302, %305 : vector<16x64xf32>
    %c2_194 = arith.constant 2 : index
    %c0_195 = arith.constant 0 : index
    %c0_196 = arith.constant 0 : index
    %307 = vector.load %arg20[%c2_194, %c0_195, %c0_196] : memref<4x1x64xf32, #tpu.memory_space<vmem>>, vector<1x1x64xf32>
    %308 = vector.shape_cast %307 : vector<1x1x64xf32> to vector<1x64xf32>
    %309 = vector.broadcast %308 : vector<1x64xf32> to vector<16x64xf32>
    %310 = arith.addf %306, %309 : vector<16x64xf32>
    %cst_197 = arith.constant 0.000000e+00 : f32
    %311 = vector.broadcast %cst_197 : f32 to vector<16x64xf32>
    %312 = arith.maximumf %310, %311 : vector<16x64xf32>
    %313 = arith.truncf %312 : vector<16x64xf32> to vector<16x64xbf16>
    %c2_198 = arith.constant 2 : index
    %c0_199 = arith.constant 0 : index
    %c0_200 = arith.constant 0 : index
    %314 = vector.load %arg21[%c2_198, %c0_199, %c0_200] : memref<4x64x32xf32, #tpu.memory_space<vmem>>, vector<1x64x32xf32>
    %315 = vector.shape_cast %314 : vector<1x64x32xf32> to vector<64x32xf32>
    %316 = arith.truncf %315 : vector<64x32xf32> to vector<64x32xbf16>
    %cst_201 = arith.constant dense<0.000000e+00> : vector<16x32xf32>
    %317 = tpu.matmul %313, %316, %cst_201 {dimension_numbers = #tpu.dot_dimension_numbers<[1], [0], [0], [1], [0, 0, 1, 1], [], []>} : vector<16x64xbf16>, vector<64x32xbf16>, vector<16x32xf32> -> vector<16x32xf32>
    %c2_202 = arith.constant 2 : index
    %c0_203 = arith.constant 0 : index
    %c0_204 = arith.constant 0 : index
    %318 = vector.load %arg22[%c2_202, %c0_203, %c0_204] : memref<4x1x32xf32, #tpu.memory_space<vmem>>, vector<1x1x32xf32>
    %319 = vector.shape_cast %318 : vector<1x1x32xf32> to vector<1x32xf32>
    %320 = vector.broadcast %319 : vector<1x32xf32> to vector<16x32xf32>
    %321 = arith.addf %317, %320 : vector<16x32xf32>
    %cst_205 = arith.constant dense<0.000000e+00> : vector<16xf32>
    %322 = vector.multi_reduction <add>, %321, %cst_205 [1] : vector<16x32xf32> to vector<16xf32>
    %323 = vector.shape_cast %322 : vector<16xf32> to vector<16x1xf32>
    %cst_206 = arith.constant 3.200000e+01 : f32
    %324 = vector.broadcast %cst_206 : f32 to vector<16x1xf32>
    %325 = arith.divf %323, %324 : vector<16x1xf32>
    %326 = vector.broadcast %325 : vector<16x1xf32> to vector<16x32xf32>
    %327 = arith.subf %321, %326 : vector<16x32xf32>
    %328 = arith.mulf %327, %327 : vector<16x32xf32>
    %cst_207 = arith.constant dense<0.000000e+00> : vector<16xf32>
    %329 = vector.multi_reduction <add>, %328, %cst_207 [1] : vector<16x32xf32> to vector<16xf32>
    %330 = vector.shape_cast %329 : vector<16xf32> to vector<16x1xf32>
    %cst_208 = arith.constant 3.200000e+01 : f32
    %331 = vector.broadcast %cst_208 : f32 to vector<16x1xf32>
    %332 = arith.divf %330, %331 : vector<16x1xf32>
    %333 = vector.broadcast %325 : vector<16x1xf32> to vector<16x32xf32>
    %334 = arith.subf %321, %333 : vector<16x32xf32>
    %cst_209 = arith.constant 9.99999974E-6 : f32
    %335 = vector.broadcast %cst_209 : f32 to vector<16x1xf32>
    %336 = arith.addf %332, %335 : vector<16x1xf32>
    %337 = math.rsqrt %336 : vector<16x1xf32>
    %338 = vector.broadcast %337 : vector<16x1xf32> to vector<16x32xf32>
    %339 = arith.mulf %334, %338 : vector<16x32xf32>
    %c2_210 = arith.constant 2 : index
    %c0_211 = arith.constant 0 : index
    %c0_212 = arith.constant 0 : index
    %340 = vector.load %arg23[%c2_210, %c0_211, %c0_212] : memref<4x1x32xf32, #tpu.memory_space<vmem>>, vector<1x1x32xf32>
    %341 = vector.shape_cast %340 : vector<1x1x32xf32> to vector<1x32xf32>
    %342 = vector.broadcast %341 : vector<1x32xf32> to vector<16x32xf32>
    %343 = arith.mulf %339, %342 : vector<16x32xf32>
    %c2_213 = arith.constant 2 : index
    %c0_214 = arith.constant 0 : index
    %c0_215 = arith.constant 0 : index
    %344 = vector.load %arg24[%c2_213, %c0_214, %c0_215] : memref<4x1x32xf32, #tpu.memory_space<vmem>>, vector<1x1x32xf32>
    %345 = vector.shape_cast %344 : vector<1x1x32xf32> to vector<1x32xf32>
    %346 = vector.broadcast %345 : vector<1x32xf32> to vector<16x32xf32>
    %347 = arith.addf %343, %346 : vector<16x32xf32>
    %cst_216 = arith.constant 0.000000e+00 : f32
    %348 = vector.broadcast %cst_216 : f32 to vector<16x32xf32>
    %349 = arith.maximumf %347, %348 : vector<16x32xf32>
    %350 = arith.truncf %349 : vector<16x32xf32> to vector<16x32xbf16>
    %c2_217 = arith.constant 2 : index
    %c0_218 = arith.constant 0 : index
    %c0_219 = arith.constant 0 : index
    %351 = vector.load %arg25[%c2_217, %c0_218, %c0_219] : memref<4x32x1xf32, #tpu.memory_space<vmem>>, vector<1x32x1xf32>
    %352 = vector.shape_cast %351 : vector<1x32x1xf32> to vector<32x1xf32>
    %353 = arith.truncf %352 : vector<32x1xf32> to vector<32x1xbf16>
    %cst_220 = arith.constant dense<0.000000e+00> : vector<16x1xf32>
    %354 = tpu.matmul %350, %353, %cst_220 {dimension_numbers = #tpu.dot_dimension_numbers<[1], [0], [0], [1], [0, 0, 1, 1], [], []>} : vector<16x32xbf16>, vector<32x1xbf16>, vector<16x1xf32> -> vector<16x1xf32>
    %c2_221 = arith.constant 2 : index
    %c0_222 = arith.constant 0 : index
    %c0_223 = arith.constant 0 : index
    %355 = vector.load %arg26[%c2_221, %c0_222, %c0_223] : memref<4x1x1xf32, #tpu.memory_space<vmem>>, vector<1x1x1xf32>
    %356 = vector.shape_cast %355 : vector<1x1x1xf32> to vector<1x1xf32>
    %357 = vector.broadcast %356 : vector<1x1xf32> to vector<16x1xf32>
    %358 = arith.addf %354, %357 : vector<16x1xf32>
    %359 = arith.negf %358 : vector<16x1xf32>
    %360 = math.exp %359 : vector<16x1xf32>
    %cst_224 = arith.constant 1.000000e+00 : f32
    %361 = vector.broadcast %cst_224 : f32 to vector<16x1xf32>
    %362 = arith.addf %361, %360 : vector<16x1xf32>
    %363 = arith.divf %361, %362 : vector<16x1xf32>
    %c0_225 = arith.constant 0 : index
    %c0_226 = arith.constant 0 : index
    %364 = vector.load %arg28[%c0_225, %c0_226] : memref<16x2xf32, #tpu.memory_space<vmem>>, vector<16x1xf32>
    tpu.vector_store %arg28[%c0_225, %c0_226], %363 {strides = array<i32>} : memref<16x2xf32, #tpu.memory_space<vmem>>, vector<16x1xf32>,
    %365 = arith.truncf %89 : vector<16x128xf32> to vector<16x128xbf16>
    %c3 = arith.constant 3 : index
    %c0_227 = arith.constant 0 : index
    %c0_228 = arith.constant 0 : index
    %366 = vector.load %arg16[%c3, %c0_227, %c0_228] : memref<4x128x64xf32, #tpu.memory_space<vmem>>, vector<1x128x64xf32>
    %367 = vector.shape_cast %366 : vector<1x128x64xf32> to vector<128x64xf32>
    %368 = arith.truncf %367 : vector<128x64xf32> to vector<128x64xbf16>
    %cst_229 = arith.constant dense<0.000000e+00> : vector<16x64xf32>
    %369 = tpu.matmul %365, %368, %cst_229 {dimension_numbers = #tpu.dot_dimension_numbers<[1], [0], [0], [1], [0, 0, 1, 1], [], []>} : vector<16x128xbf16>, vector<128x64xbf16>, vector<16x64xf32> -> vector<16x64xf32>
    %370 = arith.truncf %93 : vector<16x64xf32> to vector<16x64xbf16>
    %c3_230 = arith.constant 3 : index
    %c0_231 = arith.constant 0 : index
    %c0_232 = arith.constant 0 : index
    %371 = vector.load %arg17[%c3_230, %c0_231, %c0_232] : memref<4x64x64xf32, #tpu.memory_space<vmem>>, vector<1x64x64xf32>
    %372 = vector.shape_cast %371 : vector<1x64x64xf32> to vector<64x64xf32>
    %373 = arith.truncf %372 : vector<64x64xf32> to vector<64x64xbf16>
    %cst_233 = arith.constant dense<0.000000e+00> : vector<16x64xf32>
    %374 = tpu.matmul %370, %373, %cst_233 {dimension_numbers = #tpu.dot_dimension_numbers<[1], [0], [0], [1], [0, 0, 1, 1], [], []>} : vector<16x64xbf16>, vector<64x64xbf16>, vector<16x64xf32> -> vector<16x64xf32>
    %375 = arith.addf %369, %374 : vector<16x64xf32>
    %c3_234 = arith.constant 3 : index
    %c0_235 = arith.constant 0 : index
    %c0_236 = arith.constant 0 : index
    %376 = vector.load %arg18[%c3_234, %c0_235, %c0_236] : memref<4x1x64xf32, #tpu.memory_space<vmem>>, vector<1x1x64xf32>
    %377 = vector.shape_cast %376 : vector<1x1x64xf32> to vector<1x64xf32>
    %378 = vector.broadcast %377 : vector<1x64xf32> to vector<16x64xf32>
    %379 = arith.addf %375, %378 : vector<16x64xf32>
    %cst_237 = arith.constant dense<0.000000e+00> : vector<16xf32>
    %380 = vector.multi_reduction <add>, %379, %cst_237 [1] : vector<16x64xf32> to vector<16xf32>
    %381 = vector.shape_cast %380 : vector<16xf32> to vector<16x1xf32>
    %cst_238 = arith.constant 6.400000e+01 : f32
    %382 = vector.broadcast %cst_238 : f32 to vector<16x1xf32>
    %383 = arith.divf %381, %382 : vector<16x1xf32>
    %384 = vector.broadcast %383 : vector<16x1xf32> to vector<16x64xf32>
    %385 = arith.subf %379, %384 : vector<16x64xf32>
    %386 = arith.mulf %385, %385 : vector<16x64xf32>
    %cst_239 = arith.constant dense<0.000000e+00> : vector<16xf32>
    %387 = vector.multi_reduction <add>, %386, %cst_239 [1] : vector<16x64xf32> to vector<16xf32>
    %388 = vector.shape_cast %387 : vector<16xf32> to vector<16x1xf32>
    %cst_240 = arith.constant 6.400000e+01 : f32
    %389 = vector.broadcast %cst_240 : f32 to vector<16x1xf32>
    %390 = arith.divf %388, %389 : vector<16x1xf32>
    %391 = vector.broadcast %383 : vector<16x1xf32> to vector<16x64xf32>
    %392 = arith.subf %379, %391 : vector<16x64xf32>
    %cst_241 = arith.constant 9.99999974E-6 : f32
    %393 = vector.broadcast %cst_241 : f32 to vector<16x1xf32>
    %394 = arith.addf %390, %393 : vector<16x1xf32>
    %395 = math.rsqrt %394 : vector<16x1xf32>
    %396 = vector.broadcast %395 : vector<16x1xf32> to vector<16x64xf32>
    %397 = arith.mulf %392, %396 : vector<16x64xf32>
    %c3_242 = arith.constant 3 : index
    %c0_243 = arith.constant 0 : index
    %c0_244 = arith.constant 0 : index
    %398 = vector.load %arg19[%c3_242, %c0_243, %c0_244] : memref<4x1x64xf32, #tpu.memory_space<vmem>>, vector<1x1x64xf32>
    %399 = vector.shape_cast %398 : vector<1x1x64xf32> to vector<1x64xf32>
    %400 = vector.broadcast %399 : vector<1x64xf32> to vector<16x64xf32>
    %401 = arith.mulf %397, %400 : vector<16x64xf32>
    %c3_245 = arith.constant 3 : index
    %c0_246 = arith.constant 0 : index
    %c0_247 = arith.constant 0 : index
    %402 = vector.load %arg20[%c3_245, %c0_246, %c0_247] : memref<4x1x64xf32, #tpu.memory_space<vmem>>, vector<1x1x64xf32>
    %403 = vector.shape_cast %402 : vector<1x1x64xf32> to vector<1x64xf32>
    %404 = vector.broadcast %403 : vector<1x64xf32> to vector<16x64xf32>
    %405 = arith.addf %401, %404 : vector<16x64xf32>
    %cst_248 = arith.constant 0.000000e+00 : f32
    %406 = vector.broadcast %cst_248 : f32 to vector<16x64xf32>
    %407 = arith.maximumf %405, %406 : vector<16x64xf32>
    %408 = arith.truncf %407 : vector<16x64xf32> to vector<16x64xbf16>
    %c3_249 = arith.constant 3 : index
    %c0_250 = arith.constant 0 : index
    %c0_251 = arith.constant 0 : index
    %409 = vector.load %arg21[%c3_249, %c0_250, %c0_251] : memref<4x64x32xf32, #tpu.memory_space<vmem>>, vector<1x64x32xf32>
    %410 = vector.shape_cast %409 : vector<1x64x32xf32> to vector<64x32xf32>
    %411 = arith.truncf %410 : vector<64x32xf32> to vector<64x32xbf16>
    %cst_252 = arith.constant dense<0.000000e+00> : vector<16x32xf32>
    %412 = tpu.matmul %408, %411, %cst_252 {dimension_numbers = #tpu.dot_dimension_numbers<[1], [0], [0], [1], [0, 0, 1, 1], [], []>} : vector<16x64xbf16>, vector<64x32xbf16>, vector<16x32xf32> -> vector<16x32xf32>
    %c3_253 = arith.constant 3 : index
    %c0_254 = arith.constant 0 : index
    %c0_255 = arith.constant 0 : index
    %413 = vector.load %arg22[%c3_253, %c0_254, %c0_255] : memref<4x1x32xf32, #tpu.memory_space<vmem>>, vector<1x1x32xf32>
    %414 = vector.shape_cast %413 : vector<1x1x32xf32> to vector<1x32xf32>
    %415 = vector.broadcast %414 : vector<1x32xf32> to vector<16x32xf32>
    %416 = arith.addf %412, %415 : vector<16x32xf32>
    %cst_256 = arith.constant dense<0.000000e+00> : vector<16xf32>
    %417 = vector.multi_reduction <add>, %416, %cst_256 [1] : vector<16x32xf32> to vector<16xf32>
    %418 = vector.shape_cast %417 : vector<16xf32> to vector<16x1xf32>
    %cst_257 = arith.constant 3.200000e+01 : f32
    %419 = vector.broadcast %cst_257 : f32 to vector<16x1xf32>
    %420 = arith.divf %418, %419 : vector<16x1xf32>
    %421 = vector.broadcast %420 : vector<16x1xf32> to vector<16x32xf32>
    %422 = arith.subf %416, %421 : vector<16x32xf32>
    %423 = arith.mulf %422, %422 : vector<16x32xf32>
    %cst_258 = arith.constant dense<0.000000e+00> : vector<16xf32>
    %424 = vector.multi_reduction <add>, %423, %cst_258 [1] : vector<16x32xf32> to vector<16xf32>
    %425 = vector.shape_cast %424 : vector<16xf32> to vector<16x1xf32>
    %cst_259 = arith.constant 3.200000e+01 : f32
    %426 = vector.broadcast %cst_259 : f32 to vector<16x1xf32>
    %427 = arith.divf %425, %426 : vector<16x1xf32>
    %428 = vector.broadcast %420 : vector<16x1xf32> to vector<16x32xf32>
    %429 = arith.subf %416, %428 : vector<16x32xf32>
    %cst_260 = arith.constant 9.99999974E-6 : f32
    %430 = vector.broadcast %cst_260 : f32 to vector<16x1xf32>
    %431 = arith.addf %427, %430 : vector<16x1xf32>
    %432 = math.rsqrt %431 : vector<16x1xf32>
    %433 = vector.broadcast %432 : vector<16x1xf32> to vector<16x32xf32>
    %434 = arith.mulf %429, %433 : vector<16x32xf32>
    %c3_261 = arith.constant 3 : index
    %c0_262 = arith.constant 0 : index
    %c0_263 = arith.constant 0 : index
    %435 = vector.load %arg23[%c3_261, %c0_262, %c0_263] : memref<4x1x32xf32, #tpu.memory_space<vmem>>, vector<1x1x32xf32>
    %436 = vector.shape_cast %435 : vector<1x1x32xf32> to vector<1x32xf32>
    %437 = vector.broadcast %436 : vector<1x32xf32> to vector<16x32xf32>
    %438 = arith.mulf %434, %437 : vector<16x32xf32>
    %c3_264 = arith.constant 3 : index
    %c0_265 = arith.constant 0 : index
    %c0_266 = arith.constant 0 : index
    %439 = vector.load %arg24[%c3_264, %c0_265, %c0_266] : memref<4x1x32xf32, #tpu.memory_space<vmem>>, vector<1x1x32xf32>
    %440 = vector.shape_cast %439 : vector<1x1x32xf32> to vector<1x32xf32>
    %441 = vector.broadcast %440 : vector<1x32xf32> to vector<16x32xf32>
    %442 = arith.addf %438, %441 : vector<16x32xf32>
    %cst_267 = arith.constant 0.000000e+00 : f32
    %443 = vector.broadcast %cst_267 : f32 to vector<16x32xf32>
    %444 = arith.maximumf %442, %443 : vector<16x32xf32>
    %445 = arith.truncf %444 : vector<16x32xf32> to vector<16x32xbf16>
    %c3_268 = arith.constant 3 : index
    %c0_269 = arith.constant 0 : index
    %c0_270 = arith.constant 0 : index
    %446 = vector.load %arg25[%c3_268, %c0_269, %c0_270] : memref<4x32x1xf32, #tpu.memory_space<vmem>>, vector<1x32x1xf32>
    %447 = vector.shape_cast %446 : vector<1x32x1xf32> to vector<32x1xf32>
    %448 = arith.truncf %447 : vector<32x1xf32> to vector<32x1xbf16>
    %cst_271 = arith.constant dense<0.000000e+00> : vector<16x1xf32>
    %449 = tpu.matmul %445, %448, %cst_271 {dimension_numbers = #tpu.dot_dimension_numbers<[1], [0], [0], [1], [0, 0, 1, 1], [], []>} : vector<16x32xbf16>, vector<32x1xbf16>, vector<16x1xf32> -> vector<16x1xf32>
    %c3_272 = arith.constant 3 : index
    %c0_273 = arith.constant 0 : index
    %c0_274 = arith.constant 0 : index
    %450 = vector.load %arg26[%c3_272, %c0_273, %c0_274] : memref<4x1x1xf32, #tpu.memory_space<vmem>>, vector<1x1x1xf32>
    %451 = vector.shape_cast %450 : vector<1x1x1xf32> to vector<1x1xf32>
    %452 = vector.broadcast %451 : vector<1x1xf32> to vector<16x1xf32>
    %453 = arith.addf %449, %452 : vector<16x1xf32>
    %454 = arith.negf %453 : vector<16x1xf32>
    %455 = math.exp %454 : vector<16x1xf32>
    %cst_275 = arith.constant 1.000000e+00 : f32
    %456 = vector.broadcast %cst_275 : f32 to vector<16x1xf32>
    %457 = arith.addf %456, %455 : vector<16x1xf32>
    %458 = arith.divf %456, %457 : vector<16x1xf32>
    %c0_276 = arith.constant 0 : index
    %c1_277 = arith.constant 1 : index
    %459 = vector.load %arg28[%c0_276, %c1_277] : memref<16x2xf32, #tpu.memory_space<vmem>>, vector<16x1xf32>
    tpu.vector_store %arg28[%c0_276, %c1_277], %458 {strides = array<i32>} : memref<16x2xf32, #tpu.memory_space<vmem>>, vector<16x1xf32>,
    return
  }
}

</mosaic_0001>

<bundles_post_ra>
// kernel: decoder_core.1
= control target key start
LH: loop header
LB: loop body
LE: loop exit
PB: predicated region body
PF: predicated region fallthrough
CT: control target
= control target key end

     0   :  { %s4937_s0 = inlined_call_operand.vmem [shape: f32[8,16], index: 0, kind: input, shape index: {}]   ;;  %s4938_s1 = inlined_call_operand.vmem [shape: f32[16,9], index: 1, kind: input, shape index: {}]   ;;  %s4939_s2 = inlined_call_operand.vmem [shape: f32[1,8], index: 2, kind: input, shape index: {}]   ;;  %s4940_s3 = inlined_call_operand.vmem [shape: f32[1,64], index: 3, kind: input, shape index: {}]   ;;  %s4941_s4 = inlined_call_operand.vmem [shape: f32[16,64], index: 4, kind: input, shape index: {}]   ;;  %s4942_s5 = inlined_call_operand.vmem [shape: f32[8,16], index: 5, kind: input, shape index: {}]   ;;  %s4943_s6 = inlined_call_operand.vmem [shape: f32[16,128], index: 6, kind: input, shape index: {}]   ;;  %s4944_s7 = inlined_call_operand.vmem [shape: f32[1,128], index: 7, kind: input, shape index: {}]   ;;  %s4945_s8 = inlined_call_operand.hbm [shape: f32[9,128], index: 8, kind: input, shape index: {}]   ;;  %s4946_s9 = inlined_call_operand.vmem [shape: f32[1,128], index: 9, kind: input, shape index: {}]   ;;  %s4947_s10 = inlined_call_operand.vmem [shape: f32[2,128,128], index: 10, kind: input, shape index: {}]   ;;  %s4948_s11 = inlined_call_operand.vmem [shape: f32[2,128,128], index: 11, kind: input, shape index: {}]   ;;  %s4949_s12 = inlined_call_operand.vmem [shape: f32[2,1,128], index: 12, kind: input, shape index: {}]   ;;  %s4950_s13 = inlined_call_operand.vmem [shape: f32[2,128,128], index: 13, kind: input, shape index: {}]   ;;  %s4951_s14 = inlined_call_operand.vmem [shape: f32[2,128,128], index: 14, kind: input, shape index: {}]   ;;  %s4952_s15 = inlined_call_operand.vmem [shape: f32[2,1,128], index: 15, kind: input, shape index: {}]   ;;  %s4953_s16 = inlined_call_operand.vmem [shape: f32[4,128,64], index: 16, kind: input, shape index: {}]   ;;  %s4954_s17 = inlined_call_operand.vmem [shape: f32[4,64,64], index: 17, kind: input, shape index: {}]   ;;  %s4955_s18 = inlined_call_operand.vmem [shape: f32[4,1,64], index: 18, kind: input, shape index: {}]   ;;  %s4956_s19 = inlined_call_operand.hbm [shape: f32[4,1,64], index: 19, kind: input, shape index: {}]   ;;  %s4957_s20 = inlined_call_operand.hbm [shape: f32[4,1,64], index: 20, kind: input, shape index: {}]   ;;  %s4958_s21 = inlined_call_operand.vmem [shape: f32[4,64,32], index: 21, kind: input, shape index: {}]   ;;  %s4959_s22 = inlined_call_operand.hbm [shape: f32[4,1,32], index: 22, kind: input, shape index: {}]   ;;  %s4960_s23 = inlined_call_operand.hbm [shape: f32[4,1,32], index: 23, kind: input, shape index: {}]   ;;  %s4961_s24 = inlined_call_operand.hbm [shape: f32[4,1,32], index: 24, kind: input, shape index: {}]   ;;  %s4962_s25 = inlined_call_operand.vmem [shape: f32[4,32,1], index: 25, kind: input, shape index: {}]   ;;  %s4963_s26 = inlined_call_operand.vmem [shape: f32[4,1,1], index: 26, kind: input, shape index: {}]   ;;  %s4964_s27 = inlined_call_operand.vmem [shape: f32[1,2], index: 27, kind: output, shape index: {0}]   ;;  %s4965_s28 = inlined_call_operand.vmem [shape: f32[16,2], index: 28, kind: output, shape index: {1}]  }
   0x1   :  { %4976 = sst [smem:[#allocation16_spill]] %s4937_s0 }
   0x2   :  { %4977 = sst [smem:[#allocation17_spill]] %s4938_s1 }
   0x3   :  { %4978 = sst [smem:[#allocation18_spill]] %s4939_s2 }
   0x4   :  { %4979 = sst [smem:[#allocation19_spill]] %s4940_s3 }
   0x5   :  { %4980 = sst [smem:[#allocation20_spill]] %s4941_s4 }
   0x6   :  { %4981 = sst [smem:[#allocation21_spill]] %s4942_s5 }
   0x7   :  { %4982 = sst [smem:[#allocation22_spill]] %s4943_s6 }
   0x8   :  { %4983 = sst [smem:[#allocation23_spill]] %s4944_s7 }
   0x9   :  { %4984 = sst [smem:[#allocation24_spill]] %s4945_s8 }
   0xa   :  { %4985 = sst [smem:[#allocation25_spill]] %s4946_s9 }
   0xb   :  { %4986 = sst [smem:[#allocation26_spill]] %s4947_s10 }
   0xc   :  { %4987 = sst [smem:[#allocation27_spill]] %s4948_s11 }
   0xd   :  { %4988 = sst [smem:[#allocation28_spill]] %s4949_s12 }
   0xe   :  { %4989 = sst [smem:[#allocation29_spill]] %s4965_s28 }
   0xf   :  { %34 = vsyncpa [#allocation3], 0 }
  0x10   :  { %35 = vsyncpa [#allocation5], 0 }
  0x11   :  { %36 = vsyncpa [#allocation8], 0 }
  0x12   :  { %37 = vsyncpa [#allocation11], 0  ;;  %s3489_s8 = smov [#allocation4]   ;;  %s3349_s3 = scalar_lea.hbm %s4956_s19, 64 }
  0x13   :  { %s91_s5 = sshll.u32 %s3489_s8, 4  ;;  %p3350_p0 = scmp.ne.s32.totalorder %s4956_s19, %s3349_s3  ;;  %s92_s5 = int_to_ptr.vmem [resolvable:$true] %s91_s5 }
  0x14   :  { %p3353_p1 = scmp.lt.u32.totalorder %s3349_s3, %s4956_s19 }
  0x16   :  { %p3355_p2 = pnand %p3353_p1, %p3350_p0 }
  0x18   :  { %3358 = shalt.err (!%p3355_p2)
}
  0x19   :  { %s3359_s29 = scalar_lea.vmem %s92_s5, 64  ;;  %p3364_p4 = scmp.lt.s32.totalorder %s92_s5, %s92_s5 }
  0x1a   :  { %p3360_p3 = scmp.ne.s32.totalorder %s92_s5, %s3359_s29  ;;  %p3365_p5 = scmp.lt.s32.totalorder %s3359_s29, %s3359_s29 }
  0x1c   :  { %p3366_p6 = por %p3365_p5, %p3364_p4 }
  0x1e   :  { %p3367_p7 = pnand %p3366_p6, %p3360_p3 }
  0x20   :  { %3370 = shalt.err (!%p3367_p7)
}
  0x21   :  { %s4974_s2 = smov 16   ;;  %s3491_s7 = smov 1  }
  0x22   :  { %97 = dma.hbm_to_vmem [thread:$0]  %s4956_s19, 64, %s92_s5, [#allocation5], %s4974_s2, %s4974_s2, %s3491_s7  }
  0x23   :  { %s3492_s4 = smov [#allocation7]   ;;  %s3493_s9 = smov [#allocation2]  }
  0x24   :  { %s117_s8 = sshll.u32 %s3492_s4, 4  ;;  %s59_s30 = sshll.u32 %s3493_s9, 4  ;;  %s118_s8 = int_to_ptr.vmem [resolvable:$true] %s117_s8  ;;  %s60_s30 = int_to_ptr.vmem [resolvable:$true] %s59_s30 }
  0x25   :  { %s3371_s10 = scalar_lea.hbm %s4959_s22, 64 }
  0x26   :  { %p3372_p8 = scmp.ne.s32.totalorder %s4959_s22, %s3371_s10  ;;  %p3375_p9 = scmp.lt.u32.totalorder %s3371_s10, %s4959_s22 }
  0x28   :  { %p3377_p10 = pnand %p3375_p9, %p3372_p8 }
  0x2a   :  { %3380 = shalt.err (!%p3377_p10)
}
  0x2b   :  { %s3381_s19 = scalar_lea.vmem %s118_s8, 64  ;;  %p3386_p12 = scmp.lt.s32.totalorder %s118_s8, %s118_s8 }
  0x2c   :  { %p3382_p11 = scmp.ne.s32.totalorder %s118_s8, %s3381_s19  ;;  %p3387_p13 = scmp.lt.s32.totalorder %s3381_s19, %s3381_s19 }
  0x2e   :  { %p3388_p0 = por %p3387_p13, %p3386_p12 }
  0x30   :  { %p3389_p1 = pnand %p3388_p0, %p3382_p11 }
  0x32   :  { %3392 = shalt.err (!%p3389_p1)
}
  0x33   :  { %123 = dma.hbm_to_vmem [thread:$0]  %s4959_s22, 64, %s118_s8, [#allocation8], %s4974_s2, %s4974_s2, %s3491_s7  }
  0x34   :  { %s4990_s4 = sld [smem:[#allocation24_spill]] }
  0x3a   :  { %s3393_s9 = scalar_lea.hbm %s4990_s4, 256 }
  0x3b   :  { %p3394_p2 = scmp.ne.s32.totalorder %s4990_s4, %s3393_s9  ;;  %p3397_p3 = scmp.lt.u32.totalorder %s3393_s9, %s4990_s4 }
  0x3d   :  { %p3399_p4 = pnand %p3397_p3, %p3394_p2 }
  0x3f   :  { %3402 = shalt.err (!%p3399_p4)
}
  0x40   :  { %s3403_s11 = scalar_lea.vmem %s60_s30, 256  ;;  %p3408_p6 = scmp.lt.s32.totalorder %s60_s30, %s60_s30 }
  0x41   :  { %p3404_p5 = scmp.ne.s32.totalorder %s60_s30, %s3403_s11  ;;  %p3409_p7 = scmp.lt.s32.totalorder %s3403_s11, %s3403_s11 }
  0x43   :  { %p3410_p8 = por %p3409_p7, %p3408_p6 }
  0x45   :  { %p3411_p9 = pnand %p3410_p8, %p3404_p5 }
  0x47   :  { %3414 = shalt.err (!%p3411_p9)
}
  0x48   :  { %s3494_s22 = smov 128   ;;  %s3495_s8 = smov 8  }
  0x49   :  { %65 = dma.hbm_to_vmem [thread:$0]  %s4990_s4, 256, %s60_s30, [#allocation3], %s3494_s22, %s3494_s22, %s3495_s8  }
  0x4a   :  { %s3496_s5 = smov [#allocation6]   ;;  %s3497_s1 = smov [#allocation9]  }
  0x4b   :  { %s103_s12 = sshll.u32 %s3496_s5, 4  ;;  %s129_s28 = sshll.u32 %s3497_s1, 4  ;;  %s104_s12 = int_to_ptr.vmem [resolvable:$true] %s103_s12  ;;  %s130_s28 = int_to_ptr.vmem [resolvable:$true] %s129_s28 }
  0x4c   :  { %s3415_s6 = scalar_lea.hbm %s4957_s20, 64 }
  0x4d   :  { %p3416_p10 = scmp.ne.s32.totalorder %s4957_s20, %s3415_s6  ;;  %p3419_p11 = scmp.lt.u32.totalorder %s3415_s6, %s4957_s20 }
  0x4f   :  { %p3421_p12 = pnand %p3419_p11, %p3416_p10 }
  0x51   :  { %3424 = shalt.err (!%p3421_p12)
}
  0x52   :  { %s3425_s30 = scalar_lea.vmem %s104_s12, 64  ;;  %p3430_p0 = scmp.lt.s32.totalorder %s104_s12, %s104_s12 }
  0x53   :  { %p3426_p13 = scmp.ne.s32.totalorder %s104_s12, %s3425_s30  ;;  %p3431_p1 = scmp.lt.s32.totalorder %s3425_s30, %s3425_s30 }
  0x55   :  { %p3432_p2 = por %p3431_p1, %p3430_p0 }
  0x57   :  { %p3433_p3 = pnand %p3432_p2, %p3426_p13 }
  0x59   :  { %3436 = shalt.err (!%p3433_p3)
}
  0x5a   :  { %s4991_s4 = smov 16   ;;  %s3437_s19 = scalar_lea.hbm %s4960_s23, 64 }
  0x5b   :  { %109 = dma.hbm_to_vmem [thread:$0]  %s4957_s20, 64, %s104_s12, [#allocation5], %s4991_s4, %s4991_s4, %s3491_s7  }
  0x5c   :  { %p3438_p4 = scmp.ne.s32.totalorder %s4960_s23, %s3437_s19  ;;  %p3441_p5 = scmp.lt.u32.totalorder %s3437_s19, %s4960_s23 }
  0x5e   :  { %p3443_p6 = pnand %p3441_p5, %p3438_p4 }
  0x60   :  { %3446 = shalt.err (!%p3443_p6)
}
  0x61   :  { %s3447_s6 = scalar_lea.vmem %s130_s28, 64  ;;  %p3452_p8 = scmp.lt.s32.totalorder %s130_s28, %s130_s28 }
  0x62   :  { %p3448_p7 = scmp.ne.s32.totalorder %s130_s28, %s3447_s6  ;;  %p3453_p9 = scmp.lt.s32.totalorder %s3447_s6, %s3447_s6 }
  0x64   :  { %p3454_p10 = por %p3453_p9, %p3452_p8 }
  0x66   :  { %p3455_p11 = pnand %p3454_p10, %p3448_p7 }
  0x68   :  { %3458 = shalt.err (!%p3455_p11)
}
  0x69   :  { %135 = dma.hbm_to_vmem [thread:$0]  %s4960_s23, 64, %s130_s28, [#allocation8], %s4991_s4, %s4991_s4, %s3491_s7  }
  0x6a   :  { %s3498_s10 = smov [#allocation10]   ;;  %s3459_s22 = scalar_lea.hbm %s4961_s24, 64 }
  0x6b   :  { %s141_s0 = sshll.u32 %s3498_s10, 4  ;;  %p3460_p12 = scmp.ne.s32.totalorder %s4961_s24, %s3459_s22  ;;  %s142_s0 = int_to_ptr.vmem [resolvable:$true] %s141_s0 }
  0x6c   :  { %p3463_p13 = scmp.lt.u32.totalorder %s3459_s22, %s4961_s24 }
  0x6e   :  { %p3465_p0 = pnand %p3463_p13, %p3460_p12 }
  0x70   :  { %3468 = shalt.err (!%p3465_p0)
}
  0x71   :  { %s3469_s5 = scalar_lea.vmem %s142_s0, 64  ;;  %p3474_p2 = scmp.lt.s32.totalorder %s142_s0, %s142_s0 }
  0x72   :  { %p3470_p1 = scmp.ne.s32.totalorder %s142_s0, %s3469_s5  ;;  %p3475_p3 = scmp.lt.s32.totalorder %s3469_s5, %s3469_s5 }
  0x74   :  { %p3476_p4 = por %p3475_p3, %p3474_p2 }
  0x76   :  { %p3477_p5 = pnand %p3476_p4, %p3470_p1 }
  0x78   :  { %3480 = shalt.err (!%p3477_p5)
}
  0x79   :  { %147 = dma.hbm_to_vmem [thread:$0]  %s4961_s24, 64, %s142_s0, [#allocation11], %s4991_s4, %s4991_s4, %s3491_s7  }
  0x7a   :  { %3481 = dma.done.wait [#allocation3], 256  }
  0x7b   :  { %3482 = vsyncadd [#allocation3], 4294967040 }
  0x7c   :  { %3483 = dma.done.wait [#allocation5], 128  }
  0x7d   :  { %3484 = vsyncadd [#allocation5], 4294967168 }
  0x7e   :  { %3485 = dma.done.wait [#allocation8], 128  }
  0x7f   :  { %3486 = vsyncadd [#allocation8], 4294967168 }
  0x80   :  { %3487 = dma.done.wait [#allocation11], 64  }
  0x81   :  { %3488 = vsyncadd [#allocation11], 4294967232  ;;  %v3499_v0 = vmov 0.0   ;;  %vm3500_vm0 = vmmov 0   ;;  %vm244_vm1 = vcmask 1043456   ;;  %vm245_vm2 = vcmask 1044480  }
  0x82   :  { %2856 = vmatprep.subr.bf16.mxu0 %v3499_v0  ;;  %2858 = vmatprep.mubr.msk.bf16.mxu0 %vm3500_vm0, %v3499_v0  ;;  %v3501_v1 = vmov 65535   ;;  %s4992_s1 = sld [smem:[#allocation22_spill]]  ;;  %s4993_s12 = sld [smem:[#allocation16_spill]]  ;;  %v230_v7 = vld [vmem:[#allocation2] sm:$0xff]  ;;  %v231_v8 = vld [vmem:[#allocation2 + $0x8] sm:$0x1] }
  0x83   :  { %2862 = vmatprep.subr.bf16.mxu1 %v3499_v0  ;;  %2864 = vmatprep.mubr.msk.bf16.mxu1 %vm3500_vm0, %v3499_v0  ;;  %v246_v2 = vsel %vm244_vm1, 4294967295, %v3501_v1  ;;  %v232_v11 = vpack.c.bf16 %v231_v8, %v230_v7  ;;  %s4994_s11 = sld [smem:[#allocation17_spill]]  ;;  %s4995_s2 = sld [smem:[#allocation21_spill]]  ;;  %vm183_vm3 = vcmask 130048   ;;  %vm240_vm4 = vcmask 72704   ;;  %v345_v56 = vld [vmem:[%s4950_s13] sm:$0xff] }
  0x84   :  { %v247_v9 = vsel %vm245_vm2, %v246_v2, 0  ;;  %s4996_s23 = sld [smem:[#allocation26_spill]]  ;;  %s4997_s10 = sld [smem:[#allocation23_spill]]  ;;  %vm410_vm5 = vcmask 64512   ;;  %v346_v57 = vld [vmem:[%s4950_s13 + $0x8] sm:$0xff]  ;;  %v347_v59 = vld [vmem:[%s4950_s13 + $0x10] sm:$0xff] }
  0x85   :  { %v249_v16 = vand.u32 %v247_v9, %v232_v11  ;;  %s4998_s30 = sld [smem:[#allocation25_spill]]  ;;  %v361_v58 = vpack.c.bf16 %v346_v57, %v345_v56  ;;  %v348_v60 = vld [vmem:[%s4950_s13 + $0x18] sm:$0xff]  ;;  %v349_v62 = vld [vmem:[%s4950_s13 + $0x20] sm:$0xff]  ;;  %v350_v63 = vld [vmem:[%s4950_s13 + $0x28] sm:$0xff]  ;;  %s4999_s22 = sld [smem:[#allocation27_spill]]  ;;  %vm1170_vm6 = vcmask 523264  }
  0x86   :  { %v362_v61 = vpack.c.bf16 %v348_v60, %v347_v59  ;;  %v363_v1 = vpack.c.bf16 %v350_v63, %v349_v62  ;;  %v351_v2 = vld [vmem:[%s4950_s13 + $0x30] sm:$0xff]  ;;  %v356_v9 = vld [vmem:[%s4950_s13 + $0x58] sm:$0xff]  ;;  %v377_v63 = vld [vmem:[%s4951_s14 + $0x40] sm:$0xff]  ;;  %s5000_s3 = sld [smem:[#allocation28_spill]]  ;;  %s5002_s24 = sld [smem:[#allocation19_spill]]  ;;  %vm1256_vm7 = vcmask 516096  }
  0x87   :  { %2863 = vmatpush3.bf16.msra.mxu1 %v249_v16  ;;  %v355_v8 = vld [vmem:[%s4950_s13 + $0x50] sm:$0xff]  ;;  %v358_v16 = vld [vmem:[%s4950_s13 + $0x68] sm:$0xff]  ;;  %vm1333_vm8 = vcmask 253952   ;;  %vm1361_vm9 = vcmask 261120   ;;  %vm1411_vm10 = vcmask 0   ;;  %vm2067_vm11 = vcmask 7168  }
  0x88   :  { %v173_v3 = vld [vmem:[%s4992_s1] sm:$0xff]  ;;  %v174_v4 = vld [vmem:[%s4992_s1 + $0x8] sm:$0xff]  ;;  %2874 = vmatprep.subr.bf16.mxu1 %v3499_v0  ;;  %v375_v57 = vld [vmem:[%s4951_s14 + $0x30] sm:$0xff]  ;;  %s5001_s1 = sld [smem:[#allocation18_spill]]  ;;  %vm1696_vm12 = vcmask 8200   ;;  %vm2442_vm13 = vcmask 15368  }
  0x89   :  { %v171_v5 = vld [vmem:[%s4993_s12] sm:$0xff]  ;;  %v175_v6 = vpack.c.bf16 %v174_v4, %v173_v3  ;;  %v228_v13 = vld [vmem:[%s4994_s11 + $0x8] sm:$0xff]  ;;  %v352_v3 = vld [vmem:[%s4950_s13 + $0x38] sm:$0xff]  ;;  %s5003_s12 = sld [smem:[#allocation20_spill]] }
  0x8a   :  { %v172_v10 = vpack.c.bf16 %v171_v5, %v171_v5  ;;  %v227_v12 = vld [vmem:[%s4994_s11] sm:$0xff]  ;;  %v297_v19 = vld [vmem:[%s4996_s23 + $0x8] sm:$0xff]  ;;  %v298_v20 = vld [vmem:[%s4996_s23 + $0x10] sm:$0xff]  ;;  %v364_v4 = vpack.c.bf16 %v352_v3, %v351_v2 }
  0x8b   :  { %v292_v14 = vld [vmem:[%s4995_s2] sm:$0xff]  ;;  %2857 = vmatpush3.bf16.msra.mxu0 %v175_v6  ;;  %v229_v17 = vpack.c.bf16 %v228_v13, %v227_v12  ;;  %v299_v22 = vld [vmem:[%s4996_s23 + $0x18] sm:$0xff]  ;;  %v301_v25 = vld [vmem:[%s4996_s23 + $0x28] sm:$0xff] }
  0x8c   :  { %v3759_v15 = vpack.c.bf16 %v292_v14, %v292_v14  ;;  %2868 = vmatprep.subr.bf16.mxu0 %v3499_v0  ;;  %v296_v18 = vld [vmem:[%s4996_s23] sm:$0xff]  ;;  %v313_v23 = vpack.c.bf16 %v299_v22, %v298_v20  ;;  %v302_v27 = vld [vmem:[%s4996_s23 + $0x30] sm:$0xff]  ;;  %v303_v28 = vld [vmem:[%s4996_s23 + $0x38] sm:$0xff] }
  0x8d   :  { %2865 = vmatmul.mubr.msk.bf16.vlgmr.msra.gmra.mrb[0].mxu1 %vm240_vm4, %v229_v17  ;;  %v312_v21 = vpack.c.bf16 %v297_v19, %v296_v18  ;;  %v300_v24 = vld [vmem:[%s4996_s23 + $0x20] sm:$0xff]  ;;  %v315_v29 = vpack.c.bf16 %v303_v28, %v302_v27  ;;  %v305_v31 = vld [vmem:[%s4996_s23 + $0x48] sm:$0xff]  ;;  %v306_v33 = vld [vmem:[%s4996_s23 + $0x50] sm:$0xff] }
  0x8e   :  { %394 = vxpose.xlu0.c.b16.start.end [1/1] (short) (narrow) %v3759_v15, 16  ;;  %2859 = vmatmul.mubr.msk.bf16.vlgmr.msra.gmra.mrb[0].mxu0 %vm183_vm3, %v172_v10  ;;  %v314_v26 = vpack.c.bf16 %v301_v25, %v300_v24  ;;  %v304_v30 = vld [vmem:[%s4996_s23 + $0x40] sm:$0xff]  ;;  %v307_v34 = vld [vmem:[%s4996_s23 + $0x58] sm:$0xff]  ;;  %v309_v37 = vld [vmem:[%s4996_s23 + $0x68] sm:$0xff]  ;;  %v366_v10 = vpack.c.bf16 %v356_v9, %v355_v8 }
  0x8f   :  { %2870 = vmatprep.mubr.msk.bf16.mxu0 %vm3500_vm0, %v3499_v0  ;;  %2890 = vmatprep.mubr.msk.bf16.mxu1 %vm3500_vm0, %v3499_v0  ;;  %v316_v32 = vpack.c.bf16 %v305_v31, %v304_v30  ;;  %v317_v35 = vpack.c.bf16 %v307_v34, %v306_v33  ;;  %v308_v36 = vld [vmem:[%s4996_s23 + $0x60] sm:$0xff]  ;;  %v354_v6 = vld [vmem:[%s4950_s13 + $0x48] sm:$0xff]  ;;  %v310_v11 = vld [vmem:[%s4996_s23 + $0x70] sm:$0xff] }
  0x90   :  { %2875 = vmatpush3.bf16.msra.mxu1 %v312_v21  ;;  %v318_v38 = vpack.c.bf16 %v309_v37, %v308_v36  ;;  %v2457_v39 = vld [vmem:[%s4997_s10] ss:$0 sm:$0xff]  ;;  %v311_v12 = vld [vmem:[%s4996_s23 + $0x78] sm:$0xff]  ;;  %v359_v18 = vld [vmem:[%s4950_s13 + $0x70] sm:$0xff] }
  0x91   :  { %2876 = vmatprep.subr.bf16.mxu1 %v3499_v0  ;;  %v2459_v43 = vld [vmem:[%s4998_s30] ss:$0 sm:$0xff]  ;;  %v319_v13 = vpack.c.bf16 %v311_v12, %v310_v11  ;;  %v360_v19 = vld [vmem:[%s4950_s13 + $0x78] sm:$0xff]  ;;  %v321_v22 = vld [vmem:[%s4999_s22 + $0x8] sm:$0xff] }
  0x92   :  { %v353_v5 = vld [vmem:[%s4950_s13 + $0x40] sm:$0xff]  ;;  %v368_v20 = vpack.c.bf16 %v360_v19, %v359_v18  ;;  %v323_v30 = vld [vmem:[%s4999_s22 + $0x18] sm:$0xff]  ;;  %v330_v60 = vld [vmem:[%s4999_s22 + $0x50] sm:$0xff] }
  0x93   :  { %v365_v7 = vpack.c.bf16 %v354_v6, %v353_v5  ;;  %v357_v14 = vld [vmem:[%s4950_s13 + $0x60] sm:$0xff]  ;;  %v379_v6 = vld [vmem:[%s4951_s14 + $0x50] sm:$0xff]  ;;  %v384_v18 = vld [vmem:[%s4951_s14 + $0x78] sm:$0xff] }
  0x94   :  { %2877 = vmatpush3.bf16.msra.mxu1 %v313_v23  ;;  %v367_v17 = vpack.c.bf16 %v358_v16, %v357_v14  ;;  %v320_v21 = vld [vmem:[%s4999_s22] sm:$0xff]  ;;  %v334_v9 = vld [vmem:[%s4999_s22 + $0x70] sm:$0xff] }
  0x95   :  { %2878 = vmatprep.subr.bf16.mxu1 %v3499_v0  ;;  %v369_v31 = vld [vmem:[%s4951_s14] sm:$0xff] }
  0x96   :  { %v324_v34 = vld [vmem:[%s4999_s22 + $0x20] sm:$0xff] }
  0x97   :  { %v332_v3 = vld [vmem:[%s4999_s22 + $0x60] sm:$0xff] }
  0x98   :  { %2879 = vmatpush3.bf16.msra.mxu1 %v314_v26  ;;  %v336_v26 = vpack.c.bf16 %v321_v22, %v320_v21  ;;  %v381_v12 = vld [vmem:[%s4951_s14 + $0x60] sm:$0xff] }
  0x99   :  { %2880 = vmatprep.subr.bf16.mxu1 %v3499_v0 }
  0x9c   :  { %2881 = vmatpush3.bf16.msra.mxu1 %v315_v29  ;;  %v322_v29 = vld [vmem:[%s4999_s22 + $0x10] sm:$0xff] }
  0x9d   :  { %2882 = vmatprep.subr.bf16.mxu1 %v3499_v0  ;;  %v337_v33 = vpack.c.bf16 %v323_v30, %v322_v29  ;;  %v2498_v29 = vld [vmem:[%s4950_s13 + $0x80] sm:$0xff]  ;;  %v2499_v30 = vld [vmem:[%s4950_s13 + $0x88] sm:$0xff] }
  0xa0   :  { %2883 = vmatpush3.bf16.msra.mxu1 %v316_v32  ;;  %v370_v32 = vld [vmem:[%s4951_s14 + $0x8] sm:$0xff] }
  0xa1   :  { %2884 = vmatprep.subr.bf16.mxu1 %v3499_v0  ;;  %v385_v37 = vpack.c.bf16 %v370_v32, %v369_v31 }
  0xa4   :  { %2885 = vmatpush3.bf16.msra.mxu1 %v317_v35  ;;  %v325_v35 = vld [vmem:[%s4999_s22 + $0x28] sm:$0xff] }
  0xa5   :  { %2886 = vmatprep.subr.bf16.mxu1 %v3499_v0 }
  0xa8   :  { %2887 = vmatpush3.bf16.msra.mxu1 %v318_v38 }
  0xa9   :  { %2888 = vmatprep.subr.bf16.mxu1 %v3499_v0 }
  0xac   :  { %2889 = vmatpush3.bf16.msra.mxu1 %v319_v13  ;;  %v382_v13 = vld [vmem:[%s4951_s14 + $0x68] sm:$0xff] }
  0xad   :  { %2894 = vmatprep.subr.bf16.mxu1 %v3499_v0  ;;  %v391_v16 = vpack.c.bf16 %v382_v13, %v381_v12 }
  0xf4   :  { %v3828_v52 = vpop.trf.xlu0 }
 0x160   :  { %v285_v47 = vpop.f32.mrb[0].mxu1 }
 0x161   :  { %v221_v40 = vpop.f32.mrb[0].mxu0  ;;  %v286_v48 = vadd.f32 %v2459_v43, %v285_v47  ;;  %v2866_v49 = vpop.f32.mrb[1].mxu1 }
 0x162   :  { %v222_v41 = vadd.f32 %v2457_v39, %v221_v40  ;;  %v2860_v42 = vpop.f32.mrb[1].mxu0  ;;  %v288_v51 = vpop.f32.mrb[2].mxu1  ;;  %v371_v39 = vld [vmem:[%s4951_s14 + $0x10] sm:$0xff]  ;;  %v372_v40 = vld [vmem:[%s4951_s14 + $0x18] sm:$0xff]  ;;  %v373_v49 = vld [vmem:[%s4951_s14 + $0x20] sm:$0xff] }
 0x163   :  { %v224_v44 = vpop.f32.mrb[2].mxu0  ;;  %v289_v53 = vadd.f32 %v2459_v43, %v288_v51  ;;  %v2867_v54 = vpop.f32.mrb[3].mxu1  ;;  %v338_v42 = vpack.c.bf16 %v325_v35, %v324_v34 }
 0x164   :  { %v3824_v45 = vpack.c.bf16 %v222_v41, %v222_v41  ;;  %v2861_v46 = vpop.f32.mrb[3].mxu0  ;;  %v326_v44 = vld [vmem:[%s4999_s22 + $0x30] sm:$0xff]  ;;  %v329_v54 = vld [vmem:[%s4999_s22 + $0x48] sm:$0xff] }
 0x165   :  { %v3831_v55 = vpack.c.bf16 %v289_v53, %v286_v48  ;;  %v327_v46 = vld [vmem:[%s4999_s22 + $0x38] sm:$0xff]  ;;  %v386_v48 = vpack.c.bf16 %v372_v40, %v371_v39  ;;  %v328_v53 = vld [vmem:[%s4999_s22 + $0x40] sm:$0xff] }
 0x166   :  { %v415_v50 = vsel %vm244_vm1, %v3824_v45, 0  ;;  %v339_v51 = vpack.c.bf16 %v327_v46, %v326_v44  ;;  %v340_v59 = vpack.c.bf16 %v329_v54, %v328_v53  ;;  %v2501_v39 = vld [vmem:[%s4950_s13 + $0x98] sm:$0xff]  ;;  %v2504_v53 = vld [vmem:[%s4950_s13 + $0xb0] sm:$0xff] }
 0x167   :  { %2869 = vmatpush3.bf16.msra.mxu0 %v415_v50  ;;  %v374_v50 = vld [vmem:[%s4951_s14 + $0x28] sm:$0xff]  ;;  %v2505_v54 = vld [vmem:[%s4950_s13 + $0xb8] sm:$0xff] }
 0x168   :  { %2914 = vmatprep.subr.bf16.mxu0 %v3499_v0  ;;  %v387_v56 = vpack.c.bf16 %v374_v50, %v373_v49  ;;  %v2468_v49 = vld [vmem:[%s4996_s23 + $0x98] sm:$0xff] }
 0x16a   :  { %2871 = vmatmul.mubr.msk.bf16.vlgmr.msra.gmra.mrb[4].mxu0 %vm410_vm5, %v3828_v52 }
 0x16b   :  { %2915 = vmatpush3.bf16.msra.mxu0 %v3831_v55  ;;  %2916 = vmatprep.mubr.msk.bf16.mxu0 %vm3500_vm0, %v3499_v0 }
 0x16c   :  { %2920 = vmatprep.subr.bf16.mxu0 %v3499_v0 }
 0x172   :  { %2917 = vmatmul.mubr.msk.bf16.vlgmr.msra.gmra.mrb[8].mxu0 %vm183_vm3, %v3759_v15 }
 0x173   :  { %2921 = vmatpush3.bf16.msra.mxu0 %v361_v58  ;;  %2936 = vmatprep.mubr.msk.bf16.mxu0 %vm3500_vm0, %v3499_v0  ;;  %v376_v58 = vld [vmem:[%s4951_s14 + $0x38] sm:$0xff] }
 0x174   :  { %2922 = vmatprep.subr.bf16.mxu0 %v3499_v0  ;;  %v388_v62 = vpack.c.bf16 %v376_v58, %v375_v57  ;;  %v757_v57 = vpack.c.bf16 %v2505_v54, %v2504_v53  ;;  %v2485_v53 = vld [vmem:[%s4999_s22 + $0xa0] sm:$0xff]  ;;  %v2486_v54 = vld [vmem:[%s4999_s22 + $0xa8] sm:$0xff] }
 0x177   :  { %2923 = vmatpush3.bf16.msra.mxu0 %v362_v61  ;;  %v331_v61 = vld [vmem:[%s4999_s22 + $0x58] sm:$0xff] }
 0x178   :  { %2924 = vmatprep.subr.bf16.mxu0 %v3499_v0  ;;  %v341_v2 = vpack.c.bf16 %v331_v61, %v330_v60  ;;  %v2507_v60 = vld [vmem:[%s4950_s13 + $0xc8] sm:$0xff]  ;;  %v2471_v61 = vld [vmem:[%s4996_s23 + $0xb0] sm:$0xff] }
 0x17b   :  { %2925 = vmatpush3.bf16.msra.mxu0 %v363_v1  ;;  %v378_v1 = vld [vmem:[%s4951_s14 + $0x48] sm:$0xff] }
 0x17c   :  { %2926 = vmatprep.subr.bf16.mxu0 %v3499_v0  ;;  %v389_v5 = vpack.c.bf16 %v378_v1, %v377_v63 }
 0x17f   :  { %2927 = vmatpush3.bf16.msra.mxu0 %v364_v4  ;;  %v333_v4 = vld [vmem:[%s4999_s22 + $0x68] sm:$0xff] }
 0x180   :  { %2928 = vmatprep.subr.bf16.mxu0 %v3499_v0  ;;  %v342_v8 = vpack.c.bf16 %v333_v4, %v332_v3  ;;  %v2509_v3 = vld [vmem:[%s4950_s13 + $0xd8] sm:$0xff]  ;;  %v2473_v4 = vld [vmem:[%s4996_s23 + $0xc0] sm:$0xff] }
 0x183   :  { %2929 = vmatpush3.bf16.msra.mxu0 %v365_v7  ;;  %v380_v7 = vld [vmem:[%s4951_s14 + $0x58] sm:$0xff] }
 0x184   :  { %2930 = vmatprep.subr.bf16.mxu0 %v3499_v0  ;;  %v390_v11 = vpack.c.bf16 %v380_v7, %v379_v6 }
 0x187   :  { %2931 = vmatpush3.bf16.msra.mxu0 %v366_v10  ;;  %v335_v10 = vld [vmem:[%s4999_s22 + $0x78] sm:$0xff] }
 0x188   :  { %2932 = vmatprep.subr.bf16.mxu0 %v3499_v0  ;;  %v343_v14 = vpack.c.bf16 %v335_v10, %v334_v9  ;;  %v2511_v9 = vld [vmem:[%s4950_s13 + $0xe8] sm:$0xff]  ;;  %v2475_v10 = vld [vmem:[%s4996_s23 + $0xd0] sm:$0xff] }
 0x18b   :  { %2933 = vmatpush3.bf16.msra.mxu0 %v367_v17  ;;  %v383_v17 = vld [vmem:[%s4951_s14 + $0x70] sm:$0xff] }
 0x18c   :  { %2934 = vmatprep.subr.bf16.mxu0 %v3499_v0  ;;  %v392_v19 = vpack.c.bf16 %v384_v18, %v383_v17  ;;  %v2477_v18 = vld [vmem:[%s4996_s23 + $0xe0] sm:$0xff] }
 0x18f   :  { %2935 = vmatpush3.bf16.msra.mxu0 %v368_v20  ;;  %v2462_v20 = vld [vmem:[%s5000_s3] ss:$0 sm:$0xff] }
 0x190   :  { %2940 = vmatprep.subr.bf16.mxu0 %v3499_v0 }
 0x23d   :  { %v451_v23 = vpop.f32.mrb[4].mxu0 }
 0x23e   :  { %v2872_v24 = vpop.f32.mrb[5].mxu0 }
 0x23f   :  { %v454_v25 = vpop.f32.mrb[6].mxu0 }
 0x240   :  { %v458_v27 = vpack.c.bf16 %v454_v25, %v451_v23  ;;  %v2873_v28 = vpop.f32.mrb[7].mxu0 }
 0x242   :  { %2891 = vmatmul.mubr.bf16.vlgmr.msra.gmra.mrb[4].mxu1 %v458_v27 }
 0x243   :  { %2895 = vmatpush3.bf16.msra.mxu1 %v336_v26  ;;  %2910 = vmatprep.mubr.msk.bf16.mxu1 %vm3500_vm0, %v3499_v0  ;;  %v2464_v26 = vld [vmem:[%s4952_s15] ss:$0 sm:$0xff] }
 0x244   :  { %2896 = vmatprep.subr.bf16.mxu1 %v3499_v0 }
 0x245   :  { %v586_v36 = vpop.f32.mrb[8].mxu0 }
 0x246   :  { %v592_v38 = vpack.c.bf16 %v586_v36, %v586_v36  ;;  %v2918_v41 = vpop.f32.mrb[9].mxu0 }
 0x247   :  { %2897 = vmatpush3.bf16.msra.mxu1 %v337_v33  ;;  %v589_v43 = vpop.f32.mrb[10].mxu0  ;;  %v2465_v41 = vld [vmem:[%s4996_s23 + $0x80] sm:$0xff] }
 0x248   :  { %2937 = vmatmul.mubr.bf16.vlgmr.msra.gmra.mrb[12].mxu0 %v592_v38  ;;  %2898 = vmatprep.subr.bf16.mxu1 %v3499_v0  ;;  %v2919_v47 = vpop.f32.mrb[11].mxu0  ;;  %v2500_v38 = vld [vmem:[%s4950_s13 + $0x90] sm:$0xff] }
 0x249   :  { %2941 = vmatpush3.bf16.msra.mxu0 %v385_v37  ;;  %2956 = vmatprep.mubr.msk.bf16.mxu0 %vm3500_vm0, %v3499_v0  ;;  %v754_v37 = vpack.c.bf16 %v2499_v30, %v2498_v29  ;;  %v755_v44 = vpack.c.bf16 %v2501_v39, %v2500_v38  ;;  %v2502_v47 = vld [vmem:[%s4950_s13 + $0xa0] sm:$0xff]  ;;  %v2517_v29 = vld [vmem:[%s4951_s14 + $0x98] sm:$0xff]  ;;  %v2519_v38 = vld [vmem:[%s4951_s14 + $0xa8] sm:$0xff] }
 0x24a   :  { %2942 = vmatprep.subr.bf16.mxu0 %v3499_v0 }
 0x24b   :  { %2899 = vmatpush3.bf16.msra.mxu1 %v338_v42  ;;  %v2466_v42 = vld [vmem:[%s4996_s23 + $0x88] sm:$0xff] }
 0x24c   :  { %2900 = vmatprep.subr.bf16.mxu1 %v3499_v0  ;;  %v702_v46 = vpack.c.bf16 %v2466_v42, %v2465_v41 }
 0x24d   :  { %2943 = vmatpush3.bf16.msra.mxu0 %v386_v48  ;;  %v2467_v48 = vld [vmem:[%s4996_s23 + $0x90] sm:$0xff] }
 0x24e   :  { %2944 = vmatprep.subr.bf16.mxu0 %v3499_v0 }
 0x24f   :  { %2901 = vmatpush3.bf16.msra.mxu1 %v339_v51  ;;  %v703_v51 = vpack.c.bf16 %v2468_v49, %v2467_v48  ;;  %v2520_v48 = vld [vmem:[%s4951_s14 + $0xb0] sm:$0xff]  ;;  %v2521_v49 = vld [vmem:[%s4951_s14 + $0xb8] sm:$0xff] }
 0x250   :  { %2902 = vmatprep.subr.bf16.mxu1 %v3499_v0 }
 0x251   :  { %2945 = vmatpush3.bf16.msra.mxu0 %v387_v56  ;;  %v2470_v56 = vld [vmem:[%s4996_s23 + $0xa8] sm:$0xff] }
 0x252   :  { %2946 = vmatprep.subr.bf16.mxu0 %v3499_v0 }
 0x253   :  { %2903 = vmatpush3.bf16.msra.mxu1 %v340_v59  ;;  %v2506_v59 = vld [vmem:[%s4950_s13 + $0xc0] sm:$0xff] }
 0x254   :  { %2904 = vmatprep.subr.bf16.mxu1 %v3499_v0  ;;  %v758_v63 = vpack.c.bf16 %v2507_v60, %v2506_v59  ;;  %v2487_v59 = vld [vmem:[%s4999_s22 + $0xb0] sm:$0xff]  ;;  %v2488_v60 = vld [vmem:[%s4999_s22 + $0xb8] sm:$0xff] }
 0x255   :  { %2947 = vmatpush3.bf16.msra.mxu0 %v388_v62  ;;  %v2472_v62 = vld [vmem:[%s4996_s23 + $0xb8] sm:$0xff] }
 0x256   :  { %2948 = vmatprep.subr.bf16.mxu0 %v3499_v0  ;;  %v705_v1 = vpack.c.bf16 %v2472_v62, %v2471_v61  ;;  %v2524_v61 = vld [vmem:[%s4951_s14 + $0xd0] sm:$0xff]  ;;  %v2525_v62 = vld [vmem:[%s4951_s14 + $0xd8] sm:$0xff] }
 0x257   :  { %2905 = vmatpush3.bf16.msra.mxu1 %v341_v2  ;;  %v2508_v2 = vld [vmem:[%s4950_s13 + $0xd0] sm:$0xff] }
 0x258   :  { %2906 = vmatprep.subr.bf16.mxu1 %v3499_v0  ;;  %v759_v6 = vpack.c.bf16 %v2509_v3, %v2508_v2  ;;  %v2489_v2 = vld [vmem:[%s4999_s22 + $0xc0] sm:$0xff]  ;;  %v2490_v3 = vld [vmem:[%s4999_s22 + $0xc8] sm:$0xff] }
 0x259   :  { %2949 = vmatpush3.bf16.msra.mxu0 %v389_v5  ;;  %v2474_v5 = vld [vmem:[%s4996_s23 + $0xc8] sm:$0xff] }
 0x25a   :  { %2950 = vmatprep.subr.bf16.mxu0 %v3499_v0  ;;  %v706_v7 = vpack.c.bf16 %v2474_v5, %v2473_v4  ;;  %v2526_v4 = vld [vmem:[%s4951_s14 + $0xe0] sm:$0xff]  ;;  %v2527_v5 = vld [vmem:[%s4951_s14 + $0xe8] sm:$0xff] }
 0x25b   :  { %2907 = vmatpush3.bf16.msra.mxu1 %v342_v8  ;;  %v2510_v8 = vld [vmem:[%s4950_s13 + $0xe0] sm:$0xff] }
 0x25c   :  { %2908 = vmatprep.subr.bf16.mxu1 %v3499_v0  ;;  %v760_v12 = vpack.c.bf16 %v2511_v9, %v2510_v8  ;;  %v2491_v8 = vld [vmem:[%s4999_s22 + $0xd0] sm:$0xff]  ;;  %v2492_v9 = vld [vmem:[%s4999_s22 + $0xd8] sm:$0xff] }
 0x25d   :  { %2951 = vmatpush3.bf16.msra.mxu0 %v390_v11  ;;  %v2476_v11 = vld [vmem:[%s4996_s23 + $0xd8] sm:$0xff] }
 0x25e   :  { %2952 = vmatprep.subr.bf16.mxu0 %v3499_v0  ;;  %v707_v13 = vpack.c.bf16 %v2476_v11, %v2475_v10  ;;  %v2528_v10 = vld [vmem:[%s4951_s14 + $0xf0] sm:$0xff]  ;;  %v2529_v11 = vld [vmem:[%s4951_s14 + $0xf8] sm:$0xff] }
 0x25f   :  { %2909 = vmatpush3.bf16.msra.mxu1 %v343_v14  ;;  %v2512_v14 = vld [vmem:[%s4950_s13 + $0xf0] sm:$0xff] }
 0x260   :  { %2960 = vmatprep.subr.bf16.mxu1 %v3499_v0 }
 0x261   :  { %2953 = vmatpush3.bf16.msra.mxu0 %v391_v16  ;;  %v2513_v16 = vld [vmem:[%s4950_s13 + $0xf8] sm:$0xff] }
 0x262   :  { %2911 = vmatmul.mubr.bf16.vlgmr.msra.gmra.mrb[4].mxu1 %v3831_v55  ;;  %2954 = vmatprep.subr.bf16.mxu0 %v3499_v0  ;;  %v761_v17 = vpack.c.bf16 %v2513_v16, %v2512_v14  ;;  %v2493_v14 = vld [vmem:[%s4999_s22 + $0xe0] sm:$0xff]  ;;  %v2494_v16 = vld [vmem:[%s4999_s22 + $0xe8] sm:$0xff] }
 0x263   :  { %2962 = vmatprep.mubr.msk.bf16.mxu1 %vm3500_vm0, %v3499_v0 }
 0x265   :  { %2955 = vmatpush3.bf16.msra.mxu0 %v392_v19  ;;  %v2478_v19 = vld [vmem:[%s4996_s23 + $0xe8] sm:$0xff] }
 0x266   :  { %3006 = vmatprep.subr.bf16.mxu0 %v3499_v0 }
 0x268   :  { %2957 = vmatmul.mubr.bf16.vlgmr.msra.gmra.mrb[12].mxu0 %v3824_v45 }
 0x269   :  { %3008 = vmatprep.mubr.msk.bf16.mxu0 %vm3500_vm0, %v3499_v0 }
 0x335   :  { %v540_v21 = vpop.f32.mrb[4].mxu1 }
 0x336   :  { %v3265_v22 = vadd.f32 %v2462_v20, %v540_v21  ;;  %v2912_v55 = vpop.f32.mrb[5].mxu1  ;;  %v2479_v21 = vld [vmem:[%s4996_s23 + $0xf0] sm:$0xff] }
 0x337   :  { %v543_v23 = vpop.f32.mrb[6].mxu1 }
 0x338   :  { %v3266_v24 = vadd.f32 %v2462_v20, %v543_v23  ;;  %v2913_v25 = vpop.f32.mrb[7].mxu1  ;;  %v681_v27 = vmax.f32 %v3265_v22, 0.0  ;;  %v708_v20 = vpack.c.bf16 %v2478_v19, %v2477_v18  ;;  %v2480_v22 = vld [vmem:[%s4996_s23 + $0xf8] sm:$0xff]  ;;  %v2514_v23 = vld [vmem:[%s4951_s14 + $0x80] sm:$0xff]  ;;  %v2495_v18 = vld [vmem:[%s4999_s22 + $0xf0] sm:$0xff] }
 0x339   :  { %v709_v55 = vpack.c.bf16 %v2480_v22, %v2479_v21  ;;  %v2496_v19 = vld [vmem:[%s4999_s22 + $0xf8] sm:$0xff]  ;;  %v1133_v21 = vld [vmem:[%s4953_s16] sm:$0xff]  ;;  %v1135_v22 = vld [vmem:[%s4953_s16 + $0x10] sm:$0xff] }
 0x33a   :  { %v682_v28 = vmax.f32 %v3266_v24, 0.0  ;;  %v2515_v24 = vld [vmem:[%s4951_s14 + $0x88] sm:$0xff] }
 0x33b   :  { %v673_v45 = vpop.f32.mrb[12].mxu0 }
 0x33c   :  { %v4040_v31 = vpack.c.bf16 %v682_v28, %v681_v27  ;;  %v3267_v32 = vadd.f32 %v2464_v26, %v673_v45  ;;  %v2958_v33 = vpop.f32.mrb[13].mxu0  ;;  %v779_v26 = vpack.c.bf16 %v2515_v24, %v2514_v23  ;;  %v2516_v45 = vld [vmem:[%s4951_s14 + $0x90] sm:$0xff]  ;;  %v1137_v24 = vld [vmem:[%s4953_s16 + $0x20] sm:$0xff] }
 0x33d   :  { %v676_v34 = vpop.f32.mrb[14].mxu0  ;;  %v780_v33 = vpack.c.bf16 %v2517_v29, %v2516_v45  ;;  %v1141_v29 = vld [vmem:[%s4953_s16 + $0x40] sm:$0xff] }
 0x33e   :  { %v680_v35 = vmax.f32 %v3267_v32, 0.0  ;;  %v2959_v36 = vpop.f32.mrb[15].mxu0  ;;  %3007 = vmatpush3.bf16.msra.mxu0 %v4040_v31  ;;  %v2481_v34 = vld [vmem:[%s4999_s22 + $0x80] sm:$0xff] }
 0x33f   :  { %3012 = vmatprep.subr.bf16.mxu0 %v3499_v0 }
 0x340   :  { %v4050_v40 = vpack.c.bf16 %v680_v35, %v680_v35  ;;  %v2482_v35 = vld [vmem:[%s4999_s22 + $0x88] sm:$0xff] }
 0x341   :  { %3009 = vmatmul.mubr.msk.bf16.vlgmr.msra.gmra.mrb[16].mxu0 %vm183_vm3, %v3759_v15  ;;  %v2503_v15 = vld [vmem:[%s4950_s13 + $0xa8] sm:$0xff]  ;;  %v727_v42 = vpack.c.bf16 %v2482_v35, %v2481_v34  ;;  %v1144_v34 = vld [vmem:[%s4953_s16 + $0x58] sm:$0xff] }
 0x342   :  { %v790_v43 = vsel %vm244_vm1, %v4050_v40, 0  ;;  %3013 = vmatpush3.bf16.msra.mxu0 %v754_v37  ;;  %3028 = vmatprep.mubr.msk.bf16.mxu0 %vm3500_vm0, %v3499_v0  ;;  %v756_v50 = vpack.c.bf16 %v2503_v15, %v2502_v47  ;;  %v2518_v37 = vld [vmem:[%s4951_s14 + $0xa0] sm:$0xff]  ;;  %v2483_v47 = vld [vmem:[%s4999_s22 + $0x90] sm:$0xff]  ;;  %v2484_v15 = vld [vmem:[%s4999_s22 + $0x98] sm:$0xff] }
 0x343   :  { %2961 = vmatpush3.bf16.msra.mxu1 %v790_v43  ;;  %3014 = vmatprep.subr.bf16.mxu0 %v3499_v0 }
 0x344   :  { %2966 = vmatprep.subr.bf16.mxu1 %v3499_v0 }
 0x346   :  { %2963 = vmatmul.mubr.msk.bf16.vlgmr.msra.gmra.mrb[8].mxu1 %vm410_vm5, %v3828_v52  ;;  %3015 = vmatpush3.bf16.msra.mxu0 %v755_v44  ;;  %v2469_v52 = vld [vmem:[%s4996_s23 + $0xa0] sm:$0xff] }
 0x347   :  { %2967 = vmatpush3.bf16.msra.mxu1 %v702_v46  ;;  %3016 = vmatprep.subr.bf16.mxu0 %v3499_v0  ;;  %v704_v58 = vpack.c.bf16 %v2470_v56, %v2469_v52  ;;  %v781_v46 = vpack.c.bf16 %v2519_v38, %v2518_v37  ;;  %v2522_v52 = vld [vmem:[%s4951_s14 + $0xc0] sm:$0xff]  ;;  %v2523_v56 = vld [vmem:[%s4951_s14 + $0xc8] sm:$0xff] }
 0x348   :  { %2968 = vmatprep.subr.bf16.mxu1 %v3499_v0  ;;  %2982 = vmatprep.mubr.msk.bf16.mxu1 %vm3500_vm0, %v3499_v0  ;;  %v1146_v37 = vld [vmem:[%s4953_s16 + $0x68] sm:$0xff] }
 0x34a   :  { %3017 = vmatpush3.bf16.msra.mxu0 %v756_v50  ;;  %v728_v50 = vpack.c.bf16 %v2484_v15, %v2483_v47 }
 0x34b   :  { %2969 = vmatpush3.bf16.msra.mxu1 %v703_v51  ;;  %3018 = vmatprep.subr.bf16.mxu0 %v3499_v0  ;;  %v782_v51 = vpack.c.bf16 %v2521_v49, %v2520_v48  ;;  %v1055_v49 = vld [vmem:[%s5001_s1] sm:$0x1] }
 0x34c   :  { %2970 = vmatprep.subr.bf16.mxu1 %v3499_v0 }
 0x34e   :  { %3019 = vmatpush3.bf16.msra.mxu0 %v757_v57  ;;  %v729_v57 = vpack.c.bf16 %v2486_v54, %v2485_v53  ;;  %v1161_v53 = vld [vmem:[%s4954_s17 + $0x18] sm:$0xff]  ;;  %v2532_v54 = vld [vmem:[%s5000_s3 + $0x1] ss:$0 sm:$0xff] }
 0x34f   :  { %2971 = vmatpush3.bf16.msra.mxu1 %v704_v58  ;;  %3020 = vmatprep.subr.bf16.mxu0 %v3499_v0  ;;  %v783_v58 = vpack.c.bf16 %v2523_v56, %v2522_v52 }
 0x350   :  { %2972 = vmatprep.subr.bf16.mxu1 %v3499_v0 }
 0x352   :  { %3021 = vmatpush3.bf16.msra.mxu0 %v758_v63  ;;  %v730_v63 = vpack.c.bf16 %v2488_v60, %v2487_v59  ;;  %v1162_v59 = vld [vmem:[%s4954_s17 + $0x20] sm:$0xff]  ;;  %v1163_v60 = vld [vmem:[%s4954_s17 + $0x28] sm:$0xff] }
 0x353   :  { %2973 = vmatpush3.bf16.msra.mxu1 %v705_v1  ;;  %3022 = vmatprep.subr.bf16.mxu0 %v3499_v0  ;;  %v784_v1 = vpack.c.bf16 %v2525_v62, %v2524_v61 }
 0x354   :  { %2974 = vmatprep.subr.bf16.mxu1 %v3499_v0 }
 0x356   :  { %3023 = vmatpush3.bf16.msra.mxu0 %v759_v6  ;;  %v731_v6 = vpack.c.bf16 %v2490_v3, %v2489_v2 }
 0x357   :  { %2975 = vmatpush3.bf16.msra.mxu1 %v706_v7  ;;  %3024 = vmatprep.subr.bf16.mxu0 %v3499_v0  ;;  %v785_v7 = vpack.c.bf16 %v2527_v5, %v2526_v4  ;;  %v1164_v5 = vld [vmem:[%s4954_s17 + $0x30] sm:$0xff] }
 0x358   :  { %2976 = vmatprep.subr.bf16.mxu1 %v3499_v0 }
 0x35a   :  { %3025 = vmatpush3.bf16.msra.mxu0 %v760_v12  ;;  %v732_v12 = vpack.c.bf16 %v2492_v9, %v2491_v8  ;;  %v1147_v8 = vld [vmem:[%s4953_s16 + $0x70] sm:$0xff]  ;;  %v1148_v9 = vld [vmem:[%s4953_s16 + $0x78] sm:$0xff] }
 0x35b   :  { %2977 = vmatpush3.bf16.msra.mxu1 %v707_v13  ;;  %3026 = vmatprep.subr.bf16.mxu0 %v3499_v0  ;;  %v786_v13 = vpack.c.bf16 %v2529_v11, %v2528_v10  ;;  %v1129_v10 = vld [vmem:[%s5002_s24] sm:$0x1]  ;;  %v1156_v11 = vpack.c.bf16 %v1148_v9, %v1147_v8  ;;  %v1356_v9 = vld [vmem:[%s4962_s25 + $0x10] sm:$0xff] }
 0x35c   :  { %2978 = vmatprep.subr.bf16.mxu1 %v3499_v0 }
 0x35e   :  { %3027 = vmatpush3.bf16.msra.mxu0 %v761_v17  ;;  %v733_v17 = vpack.c.bf16 %v2494_v16, %v2493_v14 }
 0x35f   :  { %3032 = vmatprep.subr.bf16.mxu0 %v3499_v0  ;;  %2979 = vmatpush3.bf16.msra.mxu1 %v708_v20  ;;  %v734_v20 = vpack.c.bf16 %v2496_v19, %v2495_v18 }
 0x360   :  { %2980 = vmatprep.subr.bf16.mxu1 %v3499_v0 }
 0x363   :  { %2981 = vmatpush3.bf16.msra.mxu1 %v709_v55 }
 0x364   :  { %2986 = vmatprep.subr.bf16.mxu1 %v3499_v0 }
 0x414   :  { %v958_v25 = vpop.f32.mrb[16].mxu0 }
 0x415   :  { %v964_v27 = vpack.c.bf16 %v958_v25, %v958_v25  ;;  %v3010_v28 = vpop.f32.mrb[17].mxu0  ;;  %v1138_v25 = vld [vmem:[%s4953_s16 + $0x28] sm:$0xff] }
 0x416   :  { %v961_v30 = vpop.f32.mrb[18].mxu0  ;;  %v1140_v28 = vld [vmem:[%s4953_s16 + $0x38] sm:$0xff] }
 0x417   :  { %v3011_v32 = vpop.f32.mrb[19].mxu0  ;;  %3029 = vmatmul.mubr.bf16.vlgmr.msra.gmra.mrb[20].mxu0 %v964_v27  ;;  %v1139_v27 = vld [vmem:[%s4953_s16 + $0x30] sm:$0xff]  ;;  %v1142_v30 = vld [vmem:[%s4953_s16 + $0x48] sm:$0xff] }
 0x418   :  { %3033 = vmatpush3.bf16.msra.mxu0 %v779_v26  ;;  %3048 = vmatprep.mubr.msk.bf16.mxu0 %vm3500_vm0, %v3499_v0  ;;  %v1151_v26 = vpack.c.bf16 %v1138_v25, %v1137_v24  ;;  %v1152_v45 = vpack.c.bf16 %v1140_v28, %v1139_v27  ;;  %v1153_v32 = vpack.c.bf16 %v1142_v30, %v1141_v29  ;;  %v1277_v30 = vld [vmem:[%s4958_s21] sm:$0xff] }
 0x419   :  { %v826_v36 = vpop.f32.mrb[8].mxu1  ;;  %3034 = vmatprep.subr.bf16.mxu0 %v3499_v0 }
 0x41a   :  { %v2964_v39 = vpop.f32.mrb[9].mxu1 }
 0x41b   :  { %v829_v41 = vpop.f32.mrb[10].mxu1  ;;  %v2534_v39 = vld [vmem:[%s4952_s15 + $0x1] ss:$0 sm:$0xff]  ;;  %s5004_s15 = sld [smem:[#allocation29_spill]] }
 0x41c   :  { %v833_v43 = vpack.c.bf16 %v829_v41, %v826_v36  ;;  %3035 = vmatpush3.bf16.msra.mxu0 %v780_v33  ;;  %v2965_v44 = vpop.f32.mrb[11].mxu1  ;;  %v1143_v33 = vld [vmem:[%s4953_s16 + $0x50] sm:$0xff]  ;;  %v1145_v36 = vld [vmem:[%s4953_s16 + $0x60] sm:$0xff] }
 0x41d   :  { %3036 = vmatprep.subr.bf16.mxu0 %v3499_v0  ;;  %v1154_v35 = vpack.c.bf16 %v1144_v34, %v1143_v33  ;;  %v1155_v38 = vpack.c.bf16 %v1146_v37, %v1145_v36  ;;  %v1279_v34 = vld [vmem:[%s4958_s21 + $0x10] sm:$0xff]  ;;  %v1281_v37 = vld [vmem:[%s4958_s21 + $0x20] sm:$0xff] }
 0x41e   :  { %2983 = vmatmul.mubr.bf16.vlgmr.msra.gmra.mrb[12].mxu1 %v833_v43  ;;  %v1159_v43 = vld [vmem:[%s4954_s17 + $0x8] sm:$0xff] }
 0x41f   :  { %2987 = vmatpush3.bf16.msra.mxu1 %v727_v42  ;;  %3002 = vmatprep.mubr.msk.bf16.mxu1 %vm3500_vm0, %v3499_v0  ;;  %v1158_v42 = vld [vmem:[%s4954_s17] sm:$0xff] }
 0x420   :  { %3037 = vmatpush3.bf16.msra.mxu0 %v781_v46  ;;  %2988 = vmatprep.subr.bf16.mxu1 %v3499_v0 }
 0x421   :  { %3038 = vmatprep.subr.bf16.mxu0 %v3499_v0 }
 0x423   :  { %2989 = vmatpush3.bf16.msra.mxu1 %v728_v50  ;;  %v1166_v50 = vpack.c.bf16 %v1159_v43, %v1158_v42  ;;  %v1284_v42 = vld [vmem:[%s4958_s21 + $0x38] sm:$0xff] }
 0x424   :  { %3039 = vmatpush3.bf16.msra.mxu0 %v782_v51  ;;  %2990 = vmatprep.subr.bf16.mxu1 %v3499_v0  ;;  %v1160_v51 = vld [vmem:[%s4954_s17 + $0x10] sm:$0xff] }
 0x425   :  { %3040 = vmatprep.subr.bf16.mxu0 %v3499_v0  ;;  %v1167_v56 = vpack.c.bf16 %v1161_v53, %v1160_v51 }
 0x427   :  { %2991 = vmatpush3.bf16.msra.mxu1 %v729_v57 }
 0x428   :  { %3041 = vmatpush3.bf16.msra.mxu0 %v783_v58  ;;  %2992 = vmatprep.subr.bf16.mxu1 %v3499_v0 }
 0x429   :  { %3042 = vmatprep.subr.bf16.mxu0 %v3499_v0 }
 0x42b   :  { %2993 = vmatpush3.bf16.msra.mxu1 %v730_v63 }
 0x42c   :  { %3043 = vmatpush3.bf16.msra.mxu0 %v784_v1  ;;  %2994 = vmatprep.subr.bf16.mxu1 %v3499_v0  ;;  %v1168_v1 = vpack.c.bf16 %v1163_v60, %v1162_v59 }
 0x42d   :  { %3044 = vmatprep.subr.bf16.mxu0 %v3499_v0 }
 0x42f   :  { %2995 = vmatpush3.bf16.msra.mxu1 %v731_v6  ;;  %v1165_v6 = vld [vmem:[%s4954_s17 + $0x38] sm:$0xff] }
 0x430   :  { %3045 = vmatpush3.bf16.msra.mxu0 %v785_v7  ;;  %2996 = vmatprep.subr.bf16.mxu1 %v3499_v0  ;;  %v1169_v7 = vpack.c.bf16 %v1165_v6, %v1164_v5  ;;  %v1354_v6 = vld [vmem:[%s4962_s25] sm:$0xff] }
 0x431   :  { %3046 = vmatprep.subr.bf16.mxu0 %v3499_v0 }
 0x433   :  { %2997 = vmatpush3.bf16.msra.mxu1 %v732_v12  ;;  %v4385_v12 = vpack.c.bf16 %v1129_v10, %v1129_v10  ;;  %v1357_v10 = vld [vmem:[%s4962_s25 + $0x18] sm:$0xff] }
 0x434   :  { %3047 = vmatpush3.bf16.msra.mxu0 %v786_v13  ;;  %2998 = vmatprep.subr.bf16.mxu1 %v3499_v0 }
 0x435   :  { %3069 = vmatprep.subr.bf16.mxu0 %v3499_v0 }
 0x437   :  { %2999 = vmatpush3.bf16.msra.mxu1 %v733_v17  ;;  %3049 = vmatmul.mubr.bf16.vlgmr.msra.gmra.mrb[20].mxu0 %v4050_v40  ;;  %v1134_v40 = vld [vmem:[%s4953_s16 + $0x8] sm:$0xff] }
 0x438   :  { %3000 = vmatprep.subr.bf16.mxu1 %v3499_v0  ;;  %3085 = vmatprep.mubr.msk.bf16.mxu0 %vm3500_vm0, %v3499_v0  ;;  %v1149_v55 = vpack.c.bf16 %v1134_v40, %v1133_v21  ;;  %v1254_v40 = vld [vmem:[%s4955_s18] sm:$0x1] }
 0x43a   :  { %3070 = vmatpush3.bf16.msra.mxu0 %v1149_v55 }
 0x43b   :  { %3001 = vmatpush3.bf16.msra.mxu1 %v734_v20  ;;  %3071 = vmatprep.subr.bf16.mxu0 %v3499_v0 }
 0x43c   :  { %3052 = vmatprep.subr.mxu1 %v3499_v0 }
 0x43e   :  { %3003 = vmatmul.mubr.bf16.vlgmr.msra.gmra.mrb[12].mxu1 %v4040_v31  ;;  %v1136_v31 = vld [vmem:[%s4953_s16 + $0x18] sm:$0xff] }
 0x43f   :  { %3054 = vmatprep.mubr.msk.f32.mxu1 %vm3500_vm0, %v3499_v0  ;;  %v1150_v23 = vpack.c.bf16 %v1136_v31, %v1135_v22 }
 0x441   :  { %3072 = vmatpush3.bf16.msra.mxu0 %v1150_v23 }
 0x442   :  { %3073 = vmatprep.subr.bf16.mxu0 %v3499_v0 }
 0x445   :  { %3074 = vmatpush3.bf16.msra.mxu0 %v1151_v26 }
 0x446   :  { %3075 = vmatprep.subr.bf16.mxu0 %v3499_v0 }
 0x449   :  { %3076 = vmatpush3.bf16.msra.mxu0 %v1152_v45 }
 0x44a   :  { %3077 = vmatprep.subr.bf16.mxu0 %v3499_v0 }
 0x44d   :  { %3078 = vmatpush3.bf16.msra.mxu0 %v1153_v32  ;;  %v1278_v32 = vld [vmem:[%s4958_s21 + $0x8] sm:$0xff] }
 0x44e   :  { %3079 = vmatprep.subr.bf16.mxu0 %v3499_v0  ;;  %v1285_v33 = vpack.c.bf16 %v1278_v32, %v1277_v30 }
 0x451   :  { %3080 = vmatpush3.bf16.msra.mxu0 %v1154_v35  ;;  %v1280_v35 = vld [vmem:[%s4958_s21 + $0x18] sm:$0xff] }
 0x452   :  { %3081 = vmatprep.subr.bf16.mxu0 %v3499_v0  ;;  %v1286_v36 = vpack.c.bf16 %v1280_v35, %v1279_v34 }
 0x455   :  { %3082 = vmatpush3.bf16.msra.mxu0 %v1155_v38  ;;  %v1282_v38 = vld [vmem:[%s4958_s21 + $0x28] sm:$0xff] }
 0x456   :  { %3083 = vmatprep.subr.bf16.mxu0 %v3499_v0 }
 0x459   :  { %3084 = vmatpush3.bf16.msra.mxu0 %v1156_v11  ;;  %v1359_v11 = vpack.c.bf16 %v1357_v10, %v1356_v9 }
 0x45a   :  { %3109 = vmatprep.subr.bf16.mxu0 %v3499_v0 }
 0x50a   :  { %v1045_v41 = vpop.f32.mrb[20].mxu0 }
 0x50b   :  { %v3270_v44 = vadd.f32 %v2534_v39, %v1045_v41  ;;  %v3050_v46 = vpop.f32.mrb[21].mxu0  ;;  %v1287_v39 = vpack.c.bf16 %v1282_v38, %v1281_v37  ;;  %v1283_v41 = vld [vmem:[%s4958_s21 + $0x30] sm:$0xff]  ;;  %v2543_v38 = vld [vmem:[%s4953_s16 + $0x98] sm:$0xff] }
 0x50c   :  { %v1048_v47 = vpop.f32.mrb[22].mxu0  ;;  %v1288_v43 = vpack.c.bf16 %v1284_v42, %v1283_v41  ;;  %v2542_v37 = vld [vmem:[%s4953_s16 + $0x90] sm:$0xff]  ;;  %v2544_v41 = vld [vmem:[%s4953_s16 + $0xa0] sm:$0xff]  ;;  %v2545_v42 = vld [vmem:[%s4953_s16 + $0xa8] sm:$0xff] }
 0x50d   :  { %v1052_v15 = vmax.f32 %v3270_v44, 0.0  ;;  %v3051_v48 = vpop.f32.mrb[23].mxu0 }
 0x50e   :  { %v1271_v48 = vld [vmem:[#allocation4] sm:$0x1] }
 0x50f   :  { %3053 = vmatpush3.msra.mxu1 %v1052_v15 }
 0x510   :  { %3055 = vmatmul.mubr.msk.f32.vlgmr.msra.gmra.mrb[16].mxu1 %vm410_vm5, %v1055_v49  ;;  %3057 = vmatprep.subr.bf16.mxu1 %v3499_v0 }
 0x511   :  { %v915_v52 = vpop.f32.mrb[12].mxu1  ;;  %3058 = vmatpush3.bf16.msra.mxu1 %v1166_v50  ;;  %3065 = vmatprep.mubr.msk.bf16.mxu1 %vm3500_vm0, %v3499_v0  ;;  %v1273_v50 = vld [vmem:[#allocation6] sm:$0x1] }
 0x512   :  { %v3268_v57 = vadd.f32 %v2532_v54, %v915_v52  ;;  %v3004_v58 = vpop.f32.mrb[13].mxu1  ;;  %3059 = vmatprep.subr.bf16.mxu1 %v3499_v0 }
 0x513   :  { %v918_v61 = vpop.f32.mrb[14].mxu1 }
 0x514   :  { %v3269_v62 = vadd.f32 %v2532_v54, %v918_v61  ;;  %v3005_v63 = vpop.f32.mrb[15].mxu1  ;;  %v1053_v2 = vmax.f32 %v3268_v57, 0.0 }
 0x515   :  { %3060 = vmatpush3.bf16.msra.mxu1 %v1167_v56  ;;  %v1289_v56 = vld [vmem:[#allocation7] sm:$0x1] }
 0x516   :  { %v1054_v3 = vmax.f32 %v3269_v62, 0.0  ;;  %3061 = vmatprep.subr.bf16.mxu1 %v3499_v0 }
 0x518   :  { %v4367_v4 = vpack.c.bf16 %v1054_v3, %v1053_v2 }
 0x519   :  { %3062 = vmatpush3.bf16.msra.mxu1 %v1168_v1 }
 0x51a   :  { %3063 = vmatprep.subr.bf16.mxu1 %v3499_v0 }
 0x51d   :  { %3064 = vmatpush3.bf16.msra.mxu1 %v1169_v7  ;;  %v1355_v7 = vld [vmem:[%s4962_s25 + $0x8] sm:$0xff] }
 0x51e   :  { %3089 = vmatprep.subr.bf16.mxu1 %v3499_v0  ;;  %v1358_v8 = vpack.c.bf16 %v1355_v7, %v1354_v6 }
 0x520   :  { %3066 = vmatmul.mubr.msk.bf16.vlgmr.msra.gmra.mrb[20].mxu1 %vm1170_vm6, %v4385_v12 }
 0x521   :  { %3097 = vmatprep.mubr.msk.bf16.mxu1 %vm3500_vm0, %v3499_v0  ;;  %3090 = vmatpush3.bf16.msra.mxu1 %v1285_v33  ;;  %v2540_v33 = vld [vmem:[%s4953_s16 + $0x80] sm:$0xff] }
 0x522   :  { %3091 = vmatprep.subr.bf16.mxu1 %v3499_v0 }
 0x525   :  { %3092 = vmatpush3.bf16.msra.mxu1 %v1286_v36 }
 0x526   :  { %3093 = vmatprep.subr.bf16.mxu1 %v3499_v0 }
 0x529   :  { %3094 = vmatpush3.bf16.msra.mxu1 %v1287_v39  ;;  %v1431_v39 = vpack.c.bf16 %v2543_v38, %v2542_v37 }
 0x52a   :  { %3095 = vmatprep.subr.bf16.mxu1 %v3499_v0 }
 0x52d   :  { %3096 = vmatpush3.bf16.msra.mxu1 %v1288_v43  ;;  %v1432_v43 = vpack.c.bf16 %v2545_v42, %v2544_v41  ;;  %v1551_v42 = vld [vmem:[#allocation6 + $0x1] sm:$0x1] }
 0x52e   :  { %3101 = vmatprep.subr.bf16.mxu1 %v3499_v0 }
 0x5e3   :  { %v1125_v13 = vpop.f32.mrb[16].mxu1 }
 0x5e4   :  { %v4393_v14 = vpack.c.bf16 %v1125_v13, %v1125_v13  ;;  %v3056_v16 = vpop.f32.mrb[17].mxu1  ;;  %v2556_v13 = vld [vmem:[%s4954_s17 + $0x40] sm:$0xff] }
 0x5e5   :  { %v2557_v16 = vld [vmem:[%s4954_s17 + $0x48] sm:$0xff] }
 0x5e6   :  { %3086 = vmatmul.mubr.bf16.vlgmr.msra.gmra.mrb[24].mxu0 %v4393_v14 }
 0x5e7   :  { %3117 = vmatprep.mubr.msk.bf16.mxu0 %vm3500_vm0, %v3499_v0 }
 0x5f3   :  { %v1208_v17 = vpop.f32.mrb[20].mxu1 }
 0x5f4   :  { %v3067_v18 = vpop.f32.mrb[21].mxu1 }
 0x5f5   :  { %v1211_v19 = vpop.f32.mrb[22].mxu1  ;;  %v2558_v18 = vld [vmem:[%s4954_s17 + $0x50] sm:$0xff] }
 0x5f6   :  { %v3068_v20 = vpop.f32.mrb[23].mxu1  ;;  %v2559_v19 = vld [vmem:[%s4954_s17 + $0x58] sm:$0xff] }
 0x5f7   :  { %v1448_v20 = vpack.c.bf16 %v2559_v19, %v2558_v18 }
 0x6b9   :  { %v1248_v21 = vpop.f32.mrb[24].mxu0 }
 0x6ba   :  { %v1249_v22 = vadd.f32 %v1248_v21, %v1208_v17  ;;  %v3087_v55 = vpop.f32.mrb[25].mxu0  ;;  %v1447_v17 = vpack.c.bf16 %v2557_v16, %v2556_v13  ;;  %v2560_v21 = vld [vmem:[%s4954_s17 + $0x60] sm:$0xff] }
 0x6bb   :  { %v1251_v31 = vpop.f32.mrb[26].mxu0  ;;  %v2562_v55 = vld [vmem:[%s4954_s17 + $0x70] sm:$0xff]  ;;  %v2565_v13 = vld [vmem:[%s4955_s18 + $0x1] sm:$0x1] }
 0x6bc   :  { %v1255_v23 = vadd.f32 %v1254_v40, %v1249_v22  ;;  %v3088_v24 = vpop.f32.mrb[27].mxu0  ;;  %3110 = vmatpush3.bf16.msra.mxu0 %v1447_v17  ;;  %v2561_v40 = vld [vmem:[%s4954_s17 + $0x68] sm:$0xff]  ;;  %v2563_v31 = vld [vmem:[%s4954_s17 + $0x78] sm:$0xff] }
 0x6bd   :  { %3111 = vmatprep.subr.bf16.mxu0 %v3499_v0  ;;  %v1449_v22 = vpack.c.bf16 %v2561_v40, %v2560_v21 }
 0x6be   :  { %v1257_v25 = vsel %vm1256_vm7, %v1255_v23, 0.0 }
 0x6bf   :  { %1258 = vadd.xlane.f32.xlu0 %v1257_v25 }
 0x6c0   :  { %3112 = vmatpush3.bf16.msra.mxu0 %v1448_v20 }
 0x6c1   :  { %3113 = vmatprep.subr.bf16.mxu0 %v3499_v0 }
 0x6c4   :  { %3114 = vmatpush3.bf16.msra.mxu0 %v1449_v22 }
 0x6c5   :  { %3115 = vmatprep.subr.bf16.mxu0 %v3499_v0 }
 0x74c   :  { %v1259_v26 = vpop.xlane.xlu0 %1258 }
 0x74d   :  { %v1261_v27 = vmul.f32 0.015625, %v1259_v26 }
 0x74f   :  { %v1262_v28 = vsub.f32 %v1255_v23, %v1261_v27  ;;  %v1450_v23 = vpack.c.bf16 %v2563_v31, %v2562_v55 }
 0x751   :  { %v1263_v45 = vmul.f32 %v1262_v28, %v1262_v28  ;;  %3116 = vmatpush3.bf16.msra.mxu0 %v1450_v23 }
 0x752   :  { %3141 = vmatprep.subr.bf16.mxu0 %v3499_v0 }
 0x753   :  { %v1264_v29 = vsel %vm1256_vm7, %v1263_v45, 0.0 }
 0x754   :  { %1265 = vadd.xlane.f32.xlu1 %v1264_v29  ;;  %3118 = vmatmul.mubr.msk.bf16.vlgmr.msra.gmra.mrb[28].mxu0 %vm1170_vm6, %v4385_v12  ;;  %v1350_v29 = vld [vmem:[#allocation10] sm:$0x1]  ;;  %v2541_v12 = vld [vmem:[%s4953_s16 + $0x88] sm:$0xff] }
 0x755   :  { %3149 = vmatprep.mubr.msk.bf16.mxu0 %vm3500_vm0, %v3499_v0  ;;  %v1430_v35 = vpack.c.bf16 %v2541_v12, %v2540_v33  ;;  %v2572_v33 = vld [vmem:[%s4958_s21 + $0x70] sm:$0xff]  ;;  %v2573_v12 = vld [vmem:[%s4958_s21 + $0x78] sm:$0xff] }
 0x7e1   :  { %v1266_v44 = vpop.xlane.xlu1 %1265 }
 0x7e2   :  { %v1267_v46 = vmul.f32 0.015625, %v1266_v44  ;;  %v2546_v44 = vld [vmem:[%s4953_s16 + $0xb0] sm:$0xff] }
 0x7e4   :  { %v1268_v47 = vadd.f32 1e-05, %v1267_v46  ;;  %v2547_v46 = vld [vmem:[%s4953_s16 + $0xb8] sm:$0xff] }
 0x7e6   :  { %3301 = vrsqrt.f32 %v1268_v47  ;;  %v1433_v47 = vpack.c.bf16 %v2547_v46, %v2546_v44 }
 0x7f0   :  { %v3302_v15 = vpop.eup %3301 }
 0x7f1   :  { %v1270_v49 = vmul.f32 %v3302_v15, %v1262_v28  ;;  %v1348_v28 = vld [vmem:[#allocation9] sm:$0x1]  ;;  %v2548_v15 = vld [vmem:[%s4953_s16 + $0xc0] sm:$0xff] }
 0x7f3   :  { %v1272_v51 = vmul.f32 %v1271_v48, %v1270_v49  ;;  %v2549_v48 = vld [vmem:[%s4953_s16 + $0xc8] sm:$0xff] }
 0x7f4   :  { %v1434_v49 = vpack.c.bf16 %v2549_v48, %v2548_v15  ;;  %v1569_v15 = vld [vmem:[#allocation7 + $0x1] sm:$0x1] }
 0x7f5   :  { %v1274_v53 = vadd.f32 %v1273_v50, %v1272_v51  ;;  %v2550_v50 = vld [vmem:[%s4953_s16 + $0xd0] sm:$0xff]  ;;  %v2551_v51 = vld [vmem:[%s4953_s16 + $0xd8] sm:$0xff] }
 0x7f7   :  { %v1275_v54 = vmax.f32 %v1274_v53, 0.0  ;;  %v1435_v53 = vpack.c.bf16 %v2551_v51, %v2550_v50 }
 0x7f9   :  { %v1276_v52 = vpack.c.bf16 %v1275_v54, %v1275_v54  ;;  %v2552_v54 = vld [vmem:[%s4953_s16 + $0xe0] sm:$0xff] }
 0x7fb   :  { %3098 = vmatmul.mubr.msk.bf16.vlgmr.msra.gmra.mrb[24].mxu1 %vm1170_vm6, %v1276_v52  ;;  %v2553_v52 = vld [vmem:[%s4953_s16 + $0xe8] sm:$0xff] }
 0x7fc   :  { %3105 = vmatprep.mubr.msk.bf16.mxu1 %vm3500_vm0, %v3499_v0  ;;  %3102 = vmatpush3.bf16.msra.mxu1 %v1358_v8 }
 0x7fd   :  { %3103 = vmatprep.subr.bf16.mxu1 %v3499_v0 }
 0x800   :  { %3104 = vmatpush3.bf16.msra.mxu1 %v1359_v11 }
 0x801   :  { %3121 = vmatprep.subr.bf16.mxu1 %v3499_v0 }
 0x8ce   :  { %v1327_v57 = vpop.f32.mrb[24].mxu1 }
 0x8cf   :  { %v1328_v58 = vadd.f32 %v1327_v57, %v1289_v56  ;;  %v3099_v59 = vpop.f32.mrb[25].mxu1  ;;  %v1436_v56 = vpack.c.bf16 %v2553_v52, %v2552_v54  ;;  %v2554_v57 = vld [vmem:[%s4953_s16 + $0xf0] sm:$0xff] }
 0x8d0   :  { %v1330_v60 = vpop.f32.mrb[26].mxu1 }
 0x8d1   :  { %v3100_v61 = vpop.f32.mrb[27].mxu1  ;;  %v1334_v62 = vsel %vm1333_vm8, %v1328_v58, 0.0  ;;  %v1485_v60 = vpop.f32.mrb[28].mxu0 }
 0x8d2   :  { %1335 = vadd.xlane.f32.xlu1 %v1334_v62  ;;  %v3119_v61 = vpop.f32.mrb[29].mxu0 }
 0x8d3   :  { %v1488_v62 = vpop.f32.mrb[30].mxu0  ;;  %v2576_v61 = vld [vmem:[%s4962_s25 + $0x28] sm:$0xff] }
 0x95f   :  { %v1336_v63 = vpop.xlane.xlu1 %1335 }
 0x960   :  { %v1338_v1 = vmul.f32 0.03125, %v1336_v63  ;;  %v3120_v63 = vpop.f32.mrb[31].mxu0 }
 0x961   :  { %v2577_v63 = vld [vmem:[%s4962_s25 + $0x30] sm:$0xff] }
 0x962   :  { %v1339_v2 = vsub.f32 %v1328_v58, %v1338_v1  ;;  %v2555_v58 = vld [vmem:[%s4953_s16 + $0xf8] sm:$0xff]  ;;  %v1360_v1 = vld [vmem:[%s4963_s26] sm:$0x1] }
 0x963   :  { %v1437_v59 = vpack.c.bf16 %v2555_v58, %v2554_v57 }
 0x964   :  { %v1340_v3 = vmul.f32 %v1339_v2, %v1339_v2 }
 0x966   :  { %v1341_v5 = vsel %vm1333_vm8, %v1340_v3, 0.0 }
 0x967   :  { %1342 = vadd.xlane.f32.xlu1 %v1341_v5 }
 0x9f4   :  { %v1343_v24 = vpop.xlane.xlu1 %1342 }
 0x9f5   :  { %v1344_v25 = vmul.f32 0.03125, %v1343_v24  ;;  %v2566_v24 = vld [vmem:[%s4958_s21 + $0x40] sm:$0xff] }
 0x9f7   :  { %v1345_v26 = vadd.f32 1e-05, %v1344_v25  ;;  %v2567_v25 = vld [vmem:[%s4958_s21 + $0x48] sm:$0xff] }
 0x9f9   :  { %3303 = vrsqrt.f32 %v1345_v26  ;;  %v1564_v26 = vpack.c.bf16 %v2567_v25, %v2566_v24  ;;  %v1630_v24 = vld [vmem:[#allocation10 + $0x1] sm:$0x1] }
 0x9fb   :  { %3142 = vmatpush3.bf16.msra.mxu0 %v1564_v26 }
 0x9fc   :  { %3143 = vmatprep.subr.bf16.mxu0 %v3499_v0 }
 0xa03   :  { %v3304_v27 = vpop.eup %3303 }
 0xa04   :  { %v1347_v45 = vmul.f32 %v3304_v27, %v1339_v2  ;;  %v2568_v27 = vld [vmem:[%s4958_s21 + $0x50] sm:$0xff] }
 0xa06   :  { %v1349_v30 = vmul.f32 %v1348_v28, %v1347_v45  ;;  %v2569_v28 = vld [vmem:[%s4958_s21 + $0x58] sm:$0xff] }
 0xa07   :  { %v1565_v45 = vpack.c.bf16 %v2569_v28, %v2568_v27  ;;  %v2582_v27 = vld [vmem:[%s4953_s16 + $0x100] sm:$0xff]  ;;  %v2583_v28 = vld [vmem:[%s4953_s16 + $0x108] sm:$0xff] }
 0xa08   :  { %v1351_v32 = vadd.f32 %v1350_v29, %v1349_v30  ;;  %v2570_v29 = vld [vmem:[%s4958_s21 + $0x60] sm:$0xff]  ;;  %v2571_v30 = vld [vmem:[%s4958_s21 + $0x68] sm:$0xff] }
 0xa09   :  { %3144 = vmatpush3.bf16.msra.mxu0 %v1565_v45 }
 0xa0a   :  { %v1352_v34 = vmax.f32 %v1351_v32, 0.0  ;;  %3145 = vmatprep.subr.bf16.mxu0 %v3499_v0  ;;  %v1566_v32 = vpack.c.bf16 %v2571_v30, %v2570_v29  ;;  %v1716_v29 = vpack.c.bf16 %v2583_v28, %v2582_v27  ;;  %v2615_v27 = vld [vmem:[%s4958_s21 + $0xa0] sm:$0xff]  ;;  %v2616_v28 = vld [vmem:[%s4958_s21 + $0xa8] sm:$0xff] }
 0xa0c   :  { %v1353_v36 = vpack.c.bf16 %v1352_v34, %v1352_v34  ;;  %v1567_v34 = vpack.c.bf16 %v2573_v12, %v2572_v33  ;;  %v2585_v33 = vld [vmem:[%s4953_s16 + $0x118] sm:$0xff] }
 0xa0d   :  { %3146 = vmatpush3.bf16.msra.mxu0 %v1566_v32  ;;  %v2584_v32 = vld [vmem:[%s4953_s16 + $0x110] sm:$0xff] }
 0xa0e   :  { %3106 = vmatmul.mubr.msk.bf16.vlgmr.msra.gmra.mrb[28].mxu1 %vm1361_vm9, %v1353_v36  ;;  %3147 = vmatprep.subr.bf16.mxu0 %v3499_v0  ;;  %v1717_v12 = vpack.c.bf16 %v2585_v33, %v2584_v32 }
 0xa0f   :  { %3122 = vmatpush3.bf16.msra.mxu1 %v1430_v35  ;;  %3137 = vmatprep.mubr.msk.bf16.mxu1 %vm3500_vm0, %v3499_v0 }
 0xa10   :  { %3123 = vmatprep.subr.bf16.mxu1 %v3499_v0 }
 0xa11   :  { %3148 = vmatpush3.bf16.msra.mxu0 %v1567_v34  ;;  %v2586_v34 = vld [vmem:[%s4953_s16 + $0x120] sm:$0xff] }
 0xa12   :  { %3153 = vmatprep.subr.bf16.mxu0 %v3499_v0 }
 0xa13   :  { %3124 = vmatpush3.bf16.msra.mxu1 %v1431_v39  ;;  %v1548_v39 = vld [vmem:[#allocation4 + $0x1] sm:$0x1] }
 0xa14   :  { %3125 = vmatprep.subr.bf16.mxu1 %v3499_v0 }
 0xa17   :  { %3126 = vmatpush3.bf16.msra.mxu1 %v1432_v43 }
 0xa18   :  { %3127 = vmatprep.subr.bf16.mxu1 %v3499_v0 }
 0xa1b   :  { %3128 = vmatpush3.bf16.msra.mxu1 %v1433_v47 }
 0xa1c   :  { %3129 = vmatprep.subr.bf16.mxu1 %v3499_v0 }
 0xa1f   :  { %3130 = vmatpush3.bf16.msra.mxu1 %v1434_v49 }
 0xa20   :  { %3131 = vmatprep.subr.bf16.mxu1 %v3499_v0 }
 0xa23   :  { %3132 = vmatpush3.bf16.msra.mxu1 %v1435_v53 }
 0xa24   :  { %3133 = vmatprep.subr.bf16.mxu1 %v3499_v0 }
 0xa27   :  { %3134 = vmatpush3.bf16.msra.mxu1 %v1436_v56 }
 0xa28   :  { %3135 = vmatprep.subr.bf16.mxu1 %v3499_v0 }
 0xa2b   :  { %3136 = vmatpush3.bf16.msra.mxu1 %v1437_v59 }
 0xa2c   :  { %3161 = vmatprep.subr.bf16.mxu1 %v3499_v0 }
 0xa2e   :  { %3138 = vmatmul.mubr.bf16.vlgmr.msra.gmra.mrb[32].mxu1 %v4393_v14 }
 0xa2f   :  { %3169 = vmatprep.mubr.msk.bf16.mxu1 %vm3500_vm0, %v3499_v0 }
 0xae1   :  { %v1399_v2 = vpop.f32.mrb[28].mxu1 }
 0xae2   :  { %v1400_v3 = vadd.f32 %v1399_v2, %v1360_v1  ;;  %v3107_v5 = vpop.f32.mrb[29].mxu1  ;;  %v2578_v1 = vld [vmem:[%s4962_s25 + $0x38] sm:$0xff] }
 0xae3   :  { %v1402_v6 = vpop.f32.mrb[30].mxu1  ;;  %v1640_v2 = vpack.c.bf16 %v2578_v1, %v2577_v63  ;;  %v2599_v5 = vld [vmem:[%s4954_s17 + $0x88] sm:$0xff]  ;;  %v2608_v63 = vld [vmem:[%s4955_s18 + $0x2] ss:$0 sm:$0xff] }
 0xae4   :  { %v2539_v7 = vmul.f32 -1.442695, %v1400_v3  ;;  %v3108_v8 = vpop.f32.mrb[31].mxu1  ;;  %v2598_v3 = vld [vmem:[%s4954_s17 + $0x80] sm:$0xff] }
 0xae5   :  { %v1734_v6 = vpack.c.bf16 %v2599_v5, %v2598_v3  ;;  %v2601_v8 = vld [vmem:[%s4954_s17 + $0x98] sm:$0xff] }
 0xae6   :  { %3305 = vpow2.f32 %v2539_v7  ;;  %v2600_v7 = vld [vmem:[%s4954_s17 + $0x90] sm:$0xff] }
 0xae7   :  { %3162 = vmatpush3.bf16.msra.mxu1 %v1734_v6 }
 0xae8   :  { %3163 = vmatprep.subr.bf16.mxu1 %v3499_v0 }
 0xaf0   :  { %v3306_v9 = vpop.eup %3305 }
 0xaf1   :  { %v1408_v14 = vadd.f32 1.0, %v3306_v9  ;;  %v1735_v9 = vpack.c.bf16 %v2601_v8, %v2600_v7 }
 0xaf3   :  { %3307 = vrcp.f32 %v1408_v14  ;;  %3164 = vmatpush3.bf16.msra.mxu1 %v1735_v9  ;;  %v2602_v14 = vld [vmem:[%s4954_s17 + $0xa0] sm:$0xff] }
 0xaf4   :  { %3165 = vmatprep.subr.bf16.mxu1 %v3499_v0 }
 0xafd   :  { %v3308_v10 = vpop.eup %3307 }
 0xafe   :  { %1412 = vst.msk [vmem:[%s4964_s27] sm:$0x1] %vm1411_vm10, %v3308_v10  ;;  %v2603_v10 = vld [vmem:[%s4954_s17 + $0xa8] sm:$0xff] }
 0xb01   :  { %v1525_v11 = vpop.f32.mrb[32].mxu1 }
 0xb02   :  { %v1526_v16 = vadd.f32 %v1525_v11, %v1485_v60  ;;  %v3139_v17 = vpop.f32.mrb[33].mxu1  ;;  %v2575_v60 = vld [vmem:[%s4962_s25 + $0x20] sm:$0xff]  ;;  %v1736_v11 = vpack.c.bf16 %v2603_v10, %v2602_v14 }
 0xb03   :  { %v1528_v18 = vpop.f32.mrb[34].mxu1  ;;  %v1639_v62 = vpack.c.bf16 %v2576_v61, %v2575_v60 }
 0xb04   :  { %v3140_v19 = vpop.f32.mrb[35].mxu1  ;;  %v1533_v20 = vadd.f32 %v2565_v13, %v1526_v16  ;;  %3166 = vmatpush3.bf16.msra.mxu1 %v1736_v11  ;;  %v2604_v13 = vld [vmem:[%s4954_s17 + $0xb0] sm:$0xff]  ;;  %v2605_v16 = vld [vmem:[%s4954_s17 + $0xb8] sm:$0xff]  ;;  %v1130_v18 = vld [vmem:[%s5003_s12] sm:$0xff] }
 0xb05   :  { %3167 = vmatprep.subr.bf16.mxu1 %v3499_v0  ;;  %v1737_v17 = vpack.c.bf16 %v2605_v16, %v2604_v13  ;;  %v1131_v19 = vld [vmem:[%s5003_s12 + $0x8] sm:$0xff] }
 0xb06   :  { %v1534_v21 = vsel %vm1256_vm7, %v1533_v20, 0.0 }
 0xb07   :  { %1535 = vadd.xlane.f32.xlu1 %v1534_v21 }
 0xb08   :  { %3168 = vmatpush3.bf16.msra.mxu1 %v1737_v17 }
 0xb09   :  { %3193 = vmatprep.subr.bf16.mxu1 %v3499_v0 }
 0xb94   :  { %v1536_v40 = vpop.xlane.xlu1 %1535 }
 0xb95   :  { %v1537_v22 = vmul.f32 0.015625, %v1536_v40 }
 0xb97   :  { %v1538_v55 = vsub.f32 %v1533_v20, %v1537_v22  ;;  %v4636_v20 = vpack.c.bf16 %v1131_v19, %v1130_v18 }
 0xb99   :  { %v1539_v31 = vmul.f32 %v1538_v55, %v1538_v55  ;;  %3170 = vmatmul.mubr.msk.bf16.vlgmr.msra.gmra.mrb[36].mxu1 %vm1170_vm6, %v4636_v20 }
 0xb9a   :  { %3201 = vmatprep.mubr.msk.bf16.mxu1 %vm3500_vm0, %v3499_v0 }
 0xb9b   :  { %v1540_v23 = vsel %vm1256_vm7, %v1539_v31, 0.0  ;;  %v1627_v31 = vld [vmem:[#allocation9 + $0x1] sm:$0x1] }
 0xb9c   :  { %1541 = vadd.xlane.f32.xlu1 %v1540_v23 }
 0xc29   :  { %v1542_v35 = vpop.xlane.xlu1 %1541 }
 0xc2a   :  { %v1543_v36 = vmul.f32 0.015625, %v1542_v35  ;;  %v2587_v35 = vld [vmem:[%s4953_s16 + $0x128] sm:$0xff] }
 0xc2c   :  { %v1544_v37 = vadd.f32 1e-05, %v1543_v36  ;;  %v1718_v36 = vpack.c.bf16 %v2587_v35, %v2586_v34 }
 0xc2e   :  { %3309 = vrsqrt.f32 %v1544_v37  ;;  %v2588_v37 = vld [vmem:[%s4953_s16 + $0x130] sm:$0xff] }
 0xc38   :  { %v3310_v38 = vpop.eup %3309 }
 0xc39   :  { %v1546_v41 = vmul.f32 %v3310_v38, %v1538_v55  ;;  %v2589_v38 = vld [vmem:[%s4953_s16 + $0x138] sm:$0xff] }
 0xc3b   :  { %v1549_v43 = vmul.f32 %v1548_v39, %v1546_v41  ;;  %v1719_v39 = vpack.c.bf16 %v2589_v38, %v2588_v37  ;;  %v2590_v41 = vld [vmem:[%s4953_s16 + $0x140] sm:$0xff] }
 0xc3d   :  { %v1552_v44 = vadd.f32 %v1551_v42, %v1549_v43  ;;  %v2591_v42 = vld [vmem:[%s4953_s16 + $0x148] sm:$0xff] }
 0xc3e   :  { %v1720_v43 = vpack.c.bf16 %v2591_v42, %v2590_v41 }
 0xc3f   :  { %v1553_v46 = vmax.f32 %v1552_v44, 0.0  ;;  %v2592_v44 = vld [vmem:[%s4953_s16 + $0x150] sm:$0xff] }
 0xc41   :  { %v1554_v47 = vpack.c.bf16 %v1553_v46, %v1553_v46  ;;  %v2593_v46 = vld [vmem:[%s4953_s16 + $0x158] sm:$0xff] }
 0xc43   :  { %3150 = vmatmul.mubr.msk.bf16.vlgmr.msra.gmra.mrb[32].mxu0 %vm1170_vm6, %v1554_v47  ;;  %v1721_v47 = vpack.c.bf16 %v2593_v46, %v2592_v44 }
 0xc44   :  { %3157 = vmatprep.mubr.msk.bf16.mxu0 %vm3500_vm0, %v3499_v0  ;;  %3154 = vmatpush3.bf16.msra.mxu0 %v1639_v62 }
 0xc45   :  { %3155 = vmatprep.subr.bf16.mxu0 %v3499_v0 }
 0xc48   :  { %3156 = vmatpush3.bf16.msra.mxu0 %v1640_v2 }
 0xc49   :  { %3173 = vmatprep.subr.bf16.mxu0 %v3499_v0 }
 0xd16   :  { %v1607_v48 = vpop.f32.mrb[32].mxu0 }
 0xd17   :  { %v1608_v49 = vadd.f32 %v1607_v48, %v1569_v15  ;;  %v3151_v50 = vpop.f32.mrb[33].mxu0  ;;  %v2594_v15 = vld [vmem:[%s4953_s16 + $0x160] sm:$0xff]  ;;  %v2595_v48 = vld [vmem:[%s4953_s16 + $0x168] sm:$0xff] }
 0xd18   :  { %v1610_v51 = vpop.f32.mrb[34].mxu0  ;;  %v2596_v50 = vld [vmem:[%s4953_s16 + $0x170] sm:$0xff] }
 0xd19   :  { %v3152_v53 = vpop.f32.mrb[35].mxu0  ;;  %v1613_v54 = vsel %vm1333_vm8, %v1608_v49, 0.0  ;;  %v2597_v51 = vld [vmem:[%s4953_s16 + $0x178] sm:$0xff] }
 0xd1a   :  { %1614 = vadd.xlane.f32.xlu0 %v1613_v54  ;;  %v1723_v53 = vpack.c.bf16 %v2597_v51, %v2596_v50  ;;  %v1775_v54 = vpop.f32.mrb[36].mxu1 }
 0xda7   :  { %v1615_v52 = vpop.xlane.xlu0 %1614 }
 0xda8   :  { %v1616_v56 = vmul.f32 0.03125, %v1615_v52  ;;  %v3171_v52 = vpop.f32.mrb[37].mxu1 }
 0xdaa   :  { %v1617_v57 = vsub.f32 %v1608_v49, %v1616_v56  ;;  %v1722_v49 = vpack.c.bf16 %v2595_v48, %v2594_v15  ;;  %v1778_v56 = vpop.f32.mrb[38].mxu1 }
 0xdac   :  { %v1618_v58 = vmul.f32 %v1617_v57, %v1617_v57 }
 0xdae   :  { %v1619_v59 = vsel %vm1333_vm8, %v1618_v58, 0.0 }
 0xdaf   :  { %1620 = vadd.xlane.f32.xlu1 %v1619_v59 }
 0xe3c   :  { %v1621_v21 = vpop.xlane.xlu1 %1620 }
 0xe3d   :  { %v1622_v40 = vmul.f32 0.03125, %v1621_v21 }
 0xe3f   :  { %v1623_v22 = vadd.f32 1e-05, %v1622_v40 }
 0xe41   :  { %3311 = vrsqrt.f32 %v1623_v22 }
 0xe4b   :  { %v3312_v55 = vpop.eup %3311 }
 0xe4c   :  { %v1625_v23 = vmul.f32 %v3312_v55, %v1617_v57  ;;  %v3172_v57 = vpop.f32.mrb[39].mxu1  ;;  %v2611_v55 = vld [vmem:[%s4958_s21 + $0x80] sm:$0xff] }
 0xe4e   :  { %v1628_v25 = vmul.f32 %v1627_v31, %v1625_v23  ;;  %v2612_v31 = vld [vmem:[%s4958_s21 + $0x88] sm:$0xff] }
 0xe4f   :  { %v1891_v23 = vpack.c.bf16 %v2612_v31, %v2611_v55  ;;  %v2651_v55 = vld [vmem:[%s4954_s17 + $0xd8] sm:$0xff] }
 0xe50   :  { %v1631_v26 = vadd.f32 %v1630_v24, %v1628_v25  ;;  %v2613_v24 = vld [vmem:[%s4958_s21 + $0x90] sm:$0xff]  ;;  %v2614_v25 = vld [vmem:[%s4958_s21 + $0x98] sm:$0xff] }
 0xe51   :  { %3194 = vmatpush3.bf16.msra.mxu1 %v1891_v23  ;;  %v2652_v23 = vld [vmem:[%s4954_s17 + $0xe0] sm:$0xff] }
 0xe52   :  { %v1632_v45 = vmax.f32 %v1631_v26, 0.0  ;;  %3195 = vmatprep.subr.bf16.mxu1 %v3499_v0  ;;  %v1892_v26 = vpack.c.bf16 %v2614_v25, %v2613_v24  ;;  %v2653_v24 = vld [vmem:[%s4954_s17 + $0xe8] sm:$0xff] }
 0xe53   :  { %v2106_v25 = vpack.c.bf16 %v2653_v24, %v2652_v23 }
 0xe54   :  { %v1633_v30 = vpack.c.bf16 %v1632_v45, %v1632_v45  ;;  %v1893_v45 = vpack.c.bf16 %v2616_v28, %v2615_v27  ;;  %v2655_v27 = vld [vmem:[%s4954_s17 + $0xf8] sm:$0xff] }
 0xe55   :  { %3196 = vmatpush3.bf16.msra.mxu1 %v1892_v26  ;;  %v2654_v26 = vld [vmem:[%s4954_s17 + $0xf0] sm:$0xff] }
 0xe56   :  { %3158 = vmatmul.mubr.msk.bf16.vlgmr.msra.gmra.mrb[36].mxu0 %vm1361_vm9, %v1633_v30  ;;  %3197 = vmatprep.subr.bf16.mxu1 %v3499_v0  ;;  %v2618_v30 = vld [vmem:[%s4958_s21 + $0xb8] sm:$0xff]  ;;  %v2107_v28 = vpack.c.bf16 %v2655_v27, %v2654_v26 }
 0xe57   :  { %3174 = vmatpush3.bf16.msra.mxu0 %v1716_v29  ;;  %3189 = vmatprep.mubr.msk.bf16.mxu0 %vm3500_vm0, %v3499_v0  ;;  %v2617_v29 = vld [vmem:[%s4958_s21 + $0xb0] sm:$0xff] }
 0xe58   :  { %3175 = vmatprep.subr.bf16.mxu0 %v3499_v0  ;;  %v1894_v32 = vpack.c.bf16 %v2618_v30, %v2617_v29 }
 0xe59   :  { %3198 = vmatpush3.bf16.msra.mxu1 %v1893_v45 }
 0xe5a   :  { %3199 = vmatprep.subr.bf16.mxu1 %v3499_v0 }
 0xe5b   :  { %3176 = vmatpush3.bf16.msra.mxu0 %v1717_v12 }
 0xe5c   :  { %3177 = vmatprep.subr.bf16.mxu0 %v3499_v0 }
 0xe5d   :  { %3200 = vmatpush3.bf16.msra.mxu1 %v1894_v32 }
 0xe5e   :  { %3205 = vmatprep.subr.bf16.mxu1 %v3499_v0 }
 0xe5f   :  { %3178 = vmatpush3.bf16.msra.mxu0 %v1718_v36 }
 0xe60   :  { %3179 = vmatprep.subr.bf16.mxu0 %v3499_v0 }
 0xe63   :  { %3180 = vmatpush3.bf16.msra.mxu0 %v1719_v39  ;;  %v2609_v39 = vld [vmem:[#allocation4 + $0x2] ss:$0 sm:$0xff] }
 0xe64   :  { %3181 = vmatprep.subr.bf16.mxu0 %v3499_v0 }
 0xe67   :  { %3182 = vmatpush3.bf16.msra.mxu0 %v1720_v43  ;;  %v2610_v43 = vld [vmem:[#allocation6 + $0x2] ss:$0 sm:$0xff] }
 0xe68   :  { %3183 = vmatprep.subr.bf16.mxu0 %v3499_v0 }
 0xe6b   :  { %3184 = vmatpush3.bf16.msra.mxu0 %v1721_v47 }
 0xe6c   :  { %3185 = vmatprep.subr.bf16.mxu0 %v3499_v0 }
 0xe6f   :  { %3186 = vmatpush3.bf16.msra.mxu0 %v1722_v49 }
 0xe70   :  { %3187 = vmatprep.subr.bf16.mxu0 %v3499_v0 }
 0xe73   :  { %3188 = vmatpush3.bf16.msra.mxu0 %v1723_v53  ;;  %v2619_v53 = vld [vmem:[#allocation7 + $0x2] ss:$0 sm:$0xff] }
 0xe74   :  { %3213 = vmatprep.subr.bf16.mxu0 %v3499_v0 }
 0xe76   :  { %3190 = vmatmul.mubr.bf16.vlgmr.msra.gmra.mrb[40].mxu0 %v4367_v4 }
 0xe77   :  { %3221 = vmatprep.mubr.msk.bf16.mxu0 %vm3500_vm0, %v3499_v0 }
 0xf29   :  { %v4704_v58 = vpop.f32.mrb[36].mxu0 }
 0xf2a   :  { %v3159_v59 = vpop.f32.mrb[37].mxu0 }
 0xf2b   :  { %v1683_v60 = vpop.f32.mrb[38].mxu0 }
 0xf2c   :  { %v3160_v61 = vpop.f32.mrb[39].mxu0 }
 0xf49   :  { %v1816_v62 = vpop.f32.mrb[40].mxu0 }
 0xf4a   :  { %v1817_v1 = vadd.f32 %v1816_v62, %v1775_v54  ;;  %v3191_v2 = vpop.f32.mrb[41].mxu0 }
 0xf4b   :  { %v1819_v3 = vpop.f32.mrb[42].mxu0 }
 0xf4c   :  { %v1820_v5 = vadd.f32 %v1819_v3, %v1778_v56  ;;  %v3192_v6 = vpop.f32.mrb[43].mxu0  ;;  %v1831_v7 = vadd.f32 %v2608_v63, %v1817_v1 }
 0xf4e   :  { %v1833_v8 = vsel %vm1170_vm6, %v1831_v7, 0.0  ;;  %v1832_v9 = vadd.f32 %v2608_v63, %v1820_v5 }
 0xf4f   :  { %1834 = vadd.xlane.f32.xlu0 %v1833_v8 }
 0xf50   :  { %v1836_v14 = vsel %vm1170_vm6, %v1832_v9, 0.0 }
 0xf51   :  { %1837 = vadd.xlane.f32.xlu1 %v1836_v14 }
 0xfdc   :  { %v1835_v10 = vpop.xlane.xlu0 %1834 }
 0xfdd   :  { %v1839_v11 = vmul.f32 0.015625, %v1835_v10  ;;  %v2623_v10 = vld [vmem:[%s4962_s25 + $0x40] sm:$0xff] }
 0xfde   :  { %v1838_v13 = vpop.xlane.xlu1 %1837 }
 0xfdf   :  { %v1841_v16 = vsub.f32 %v1831_v7, %v1839_v11  ;;  %v1840_v17 = vmul.f32 0.015625, %v1838_v13  ;;  %v2624_v11 = vld [vmem:[%s4962_s25 + $0x48] sm:$0xff] }
 0xfe0   :  { %v2001_v13 = vpack.c.bf16 %v2624_v11, %v2623_v10 }
 0xfe1   :  { %v1842_v18 = vsub.f32 %v1832_v9, %v1840_v17  ;;  %v1843_v19 = vmul.f32 %v1841_v16, %v1841_v16  ;;  %v2626_v17 = vld [vmem:[%s4962_s25 + $0x58] sm:$0xff] }
 0xfe3   :  { %v1845_v21 = vsel %vm1170_vm6, %v1843_v19, 0.0  ;;  %v1844_v40 = vmul.f32 %v1842_v18, %v1842_v18  ;;  %v2648_v19 = vld [vmem:[%s4954_s17 + $0xc0] sm:$0xff] }
 0xfe4   :  { %1846 = vadd.xlane.f32.xlu0 %v1845_v21  ;;  %v2649_v21 = vld [vmem:[%s4954_s17 + $0xc8] sm:$0xff] }
 0xfe5   :  { %v1848_v22 = vsel %vm1170_vm6, %v1844_v40, 0.0  ;;  %v2104_v40 = vpack.c.bf16 %v2649_v21, %v2648_v19 }
 0xfe6   :  { %1849 = vadd.xlane.f32.xlu1 %v1848_v22  ;;  %v2650_v22 = vld [vmem:[%s4954_s17 + $0xd0] sm:$0xff] }
 0xfe7   :  { %3214 = vmatpush3.bf16.msra.mxu0 %v2104_v40  ;;  %v2105_v31 = vpack.c.bf16 %v2651_v55, %v2650_v22 }
 0xfe8   :  { %3215 = vmatprep.subr.bf16.mxu0 %v3499_v0 }
 0xfeb   :  { %3216 = vmatpush3.bf16.msra.mxu0 %v2105_v31 }
 0xfec   :  { %3217 = vmatprep.subr.bf16.mxu0 %v3499_v0 }
 0xfef   :  { %3218 = vmatpush3.bf16.msra.mxu0 %v2106_v25 }
 0xff0   :  { %3219 = vmatprep.subr.bf16.mxu0 %v3499_v0 }
 0xff3   :  { %3220 = vmatpush3.bf16.msra.mxu0 %v2107_v28 }
 0xff4   :  { %3245 = vmatprep.subr.bf16.mxu0 %v3499_v0 }
 0xff6   :  { %3222 = vmatmul.mubr.msk.bf16.vlgmr.msra.gmra.mrb[44].mxu0 %vm1170_vm6, %v4636_v20 }
 0xff7   :  { %3253 = vmatprep.mubr.msk.bf16.mxu0 %vm3500_vm0, %v3499_v0 }
0x1071   :  { %v1847_v33 = vpop.xlane.xlu0 %1846 }
0x1072   :  { %v1851_v12 = vmul.f32 0.015625, %v1847_v33 }
0x1073   :  { %v1850_v34 = vpop.xlane.xlu1 %1849 }
0x1074   :  { %v1853_v35 = vadd.f32 1e-05, %v1851_v12  ;;  %v1852_v36 = vmul.f32 0.015625, %v1850_v34 }
0x1076   :  { %3313 = vrsqrt.f32 %v1853_v35  ;;  %v1854_v37 = vadd.f32 1e-05, %v1852_v36  ;;  %v2621_v35 = vld [vmem:[#allocation9 + $0x2] ss:$0 sm:$0xff] }
0x1078   :  { %3315 = vrsqrt.f32 %v1854_v37 }
0x1080   :  { %v3314_v38 = vpop.eup %3313 }
0x1081   :  { %v1857_v41 = vmul.f32 %v3314_v38, %v1841_v16  ;;  %v2625_v16 = vld [vmem:[%s4962_s25 + $0x50] sm:$0xff]  ;;  %v2622_v38 = vld [vmem:[#allocation10 + $0x2] ss:$0 sm:$0xff] }
0x1082   :  { %v3316_v42 = vpop.eup %3315 }
0x1083   :  { %v1867_v44 = vmul.f32 %v2609_v39, %v1857_v41  ;;  %v1858_v46 = vmul.f32 %v3316_v42, %v1842_v18  ;;  %v2002_v18 = vpack.c.bf16 %v2626_v17, %v2625_v16  ;;  %v2628_v17 = vld [vmem:[%s4963_s26 + $0x2] ss:$0 sm:$0xff] }
0x1085   :  { %v1868_v47 = vmul.f32 %v2609_v39, %v1858_v46  ;;  %v1877_v15 = vadd.f32 %v2610_v43, %v1867_v44  ;;  %v2632_v44 = vld [vmem:[%s4953_s16 + $0x180] sm:$0xff]  ;;  %v2633_v46 = vld [vmem:[%s4953_s16 + $0x188] sm:$0xff] }
0x1087   :  { %v1878_v48 = vadd.f32 %v2610_v43, %v1868_v47  ;;  %v1879_v49 = vmax.f32 %v1877_v15, 0.0 }
0x1089   :  { %v1880_v50 = vmax.f32 %v1878_v48, 0.0  ;;  %v2087_v48 = vpack.c.bf16 %v2633_v46, %v2632_v44 }
0x108b   :  { %v1881_v51 = vpack.c.bf16 %v1880_v50, %v1879_v49  ;;  %v2634_v50 = vld [vmem:[%s4953_s16 + $0x190] sm:$0xff] }
0x108d   :  { %3202 = vmatmul.mubr.msk.bf16.vlgmr.msra.gmra.mrb[40].mxu1 %vm1170_vm6, %v1881_v51  ;;  %v2635_v51 = vld [vmem:[%s4953_s16 + $0x198] sm:$0xff] }
0x108e   :  { %3209 = vmatprep.mubr.msk.bf16.mxu1 %vm3500_vm0, %v3499_v0  ;;  %3206 = vmatpush3.bf16.msra.mxu1 %v2001_v13 }
0x108f   :  { %3207 = vmatprep.subr.bf16.mxu1 %v3499_v0 }
0x1092   :  { %3208 = vmatpush3.bf16.msra.mxu1 %v2002_v18 }
0x1093   :  { %3225 = vmatprep.subr.bf16.mxu1 %v3499_v0 }
0x10c9   :  { %v2142_v10 = vpop.f32.mrb[44].mxu0 }
0x10ca   :  { %v3223_v11 = vpop.f32.mrb[45].mxu0 }
0x10cb   :  { %v2145_v13 = vpop.f32.mrb[46].mxu0 }
0x10cc   :  { %v3224_v16 = vpop.f32.mrb[47].mxu0 }
0x1160   :  { %v1940_v54 = vpop.f32.mrb[40].mxu1 }
0x1161   :  { %v1941_v52 = vadd.f32 %v2619_v53, %v1940_v54  ;;  %v3203_v56 = vpop.f32.mrb[41].mxu1  ;;  %v2636_v54 = vld [vmem:[%s4953_s16 + $0x1a0] sm:$0xff] }
0x1162   :  { %v1943_v57 = vpop.f32.mrb[42].mxu1 }
0x1163   :  { %v1944_v59 = vadd.f32 %v2619_v53, %v1943_v57  ;;  %v3204_v60 = vpop.f32.mrb[43].mxu1  ;;  %v1947_v61 = vsel %vm1361_vm9, %v1941_v52, 0.0  ;;  %v2088_v53 = vpack.c.bf16 %v2635_v51, %v2634_v50  ;;  %v2638_v57 = vld [vmem:[%s4953_s16 + $0x1b0] sm:$0xff]  ;;  %v2662_v50 = vld [vmem:[%s4958_s21 + $0xc8] sm:$0xff] }
0x1164   :  { %1948 = vadd.xlane.f32.xlu0 %v1947_v61  ;;  %v2640_v61 = vld [vmem:[%s4953_s16 + $0x1c0] sm:$0xff] }
0x1165   :  { %v1950_v62 = vsel %vm1361_vm9, %v1944_v59, 0.0 }
0x1166   :  { %1951 = vadd.xlane.f32.xlu1 %v1950_v62  ;;  %v2641_v62 = vld [vmem:[%s4953_s16 + $0x1c8] sm:$0xff] }
0x11f1   :  { %v1949_v63 = vpop.xlane.xlu0 %1948 }
0x11f2   :  { %v1953_v1 = vmul.f32 0.03125, %v1949_v63  ;;  %v2091_v63 = vpack.c.bf16 %v2641_v62, %v2640_v61  ;;  %v2668_v61 = vld [vmem:[%s4958_s21 + $0xf8] sm:$0xff] }
0x11f3   :  { %v1952_v2 = vpop.xlane.xlu1 %1951 }
0x11f4   :  { %v1955_v3 = vsub.f32 %v1941_v52, %v1953_v1  ;;  %v1954_v5 = vmul.f32 0.03125, %v1952_v2  ;;  %v2637_v52 = vld [vmem:[%s4953_s16 + $0x1a8] sm:$0xff]  ;;  %v2642_v1 = vld [vmem:[%s4953_s16 + $0x1d0] sm:$0xff]  ;;  %v2643_v2 = vld [vmem:[%s4953_s16 + $0x1d8] sm:$0xff] }
0x11f5   :  { %v2089_v56 = vpack.c.bf16 %v2637_v52, %v2636_v54  ;;  %v2664_v54 = vld [vmem:[%s4958_s21 + $0xd8] sm:$0xff] }
0x11f6   :  { %v1956_v6 = vsub.f32 %v1944_v59, %v1954_v5  ;;  %v1957_v7 = vmul.f32 %v1955_v3, %v1955_v3  ;;  %v2639_v59 = vld [vmem:[%s4953_s16 + $0x1b8] sm:$0xff]  ;;  %v2644_v5 = vld [vmem:[%s4953_s16 + $0x1e0] sm:$0xff] }
0x11f7   :  { %v2090_v60 = vpack.c.bf16 %v2639_v59, %v2638_v57  ;;  %v2666_v57 = vld [vmem:[%s4958_s21 + $0xe8] sm:$0xff] }
0x11f8   :  { %v1959_v8 = vsel %vm1361_vm9, %v1957_v7, 0.0  ;;  %v1958_v9 = vmul.f32 %v1956_v6, %v1956_v6 }
0x11f9   :  { %1960 = vadd.xlane.f32.xlu0 %v1959_v8  ;;  %v2646_v8 = vld [vmem:[%s4953_s16 + $0x1f0] sm:$0xff] }
0x11fa   :  { %v1962_v14 = vsel %vm1361_vm9, %v1958_v9, 0.0  ;;  %v2647_v9 = vld [vmem:[%s4953_s16 + $0x1f8] sm:$0xff] }
0x11fb   :  { %1963 = vadd.xlane.f32.xlu1 %v1962_v14  ;;  %v2094_v14 = vpack.c.bf16 %v2647_v9, %v2646_v8  ;;  %v2659_v8 = vld [vmem:[#allocation4 + $0x3] ss:$0 sm:$0xff] }
0x1286   :  { %v1961_v45 = vpop.xlane.xlu0 %1960 }
0x1287   :  { %v1965_v29 = vmul.f32 0.03125, %v1961_v45 }
0x1288   :  { %v1964_v30 = vpop.xlane.xlu1 %1963 }
0x1289   :  { %v1967_v32 = vadd.f32 1e-05, %v1965_v29  ;;  %v1966_v33 = vmul.f32 0.03125, %v1964_v30  ;;  %v2658_v29 = vld [vmem:[%s4955_s18 + $0x3] ss:$0 sm:$0xff] }
0x128b   :  { %3317 = vrsqrt.f32 %v1967_v32  ;;  %v1968_v12 = vadd.f32 1e-05, %v1966_v33 }
0x128d   :  { %3319 = vrsqrt.f32 %v1968_v12 }
0x1295   :  { %v3318_v34 = vpop.eup %3317 }
0x1296   :  { %v1971_v36 = vmul.f32 %v3318_v34, %v1955_v3  ;;  %v2092_v3 = vpack.c.bf16 %v2643_v2, %v2642_v1 }
0x1297   :  { %v3320_v37 = vpop.eup %3319 }
0x1298   :  { %v1981_v39 = vmul.f32 %v2621_v35, %v1971_v36  ;;  %v1972_v41 = vmul.f32 %v3320_v37, %v1956_v6  ;;  %v2645_v6 = vld [vmem:[%s4953_s16 + $0x1e8] sm:$0xff] }
0x1299   :  { %v2093_v7 = vpack.c.bf16 %v2645_v6, %v2644_v5 }
0x129a   :  { %v1982_v42 = vmul.f32 %v2621_v35, %v1972_v41  ;;  %v1991_v20 = vadd.f32 %v2622_v38, %v1981_v39 }
0x129c   :  { %v1992_v43 = vadd.f32 %v2622_v38, %v1982_v42  ;;  %v1993_v47 = vmax.f32 %v1991_v20, 0.0 }
0x129e   :  { %v1994_v15 = vmax.f32 %v1992_v43, 0.0 }
0x12a0   :  { %v1995_v49 = vpack.c.bf16 %v1994_v15, %v1993_v47 }
0x12a2   :  { %3210 = vmatmul.mubr.msk.bf16.vlgmr.msra.gmra.mrb[44].mxu1 %vm1361_vm9, %v1995_v49  ;;  %v2661_v49 = vld [vmem:[%s4958_s21 + $0xc0] sm:$0xff] }
0x12a3   :  { %3226 = vmatpush3.bf16.msra.mxu1 %v2087_v48  ;;  %3241 = vmatprep.mubr.msk.bf16.mxu1 %vm3500_vm0, %v3499_v0  ;;  %v2258_v51 = vpack.c.bf16 %v2662_v50, %v2661_v49 }
0x12a4   :  { %3227 = vmatprep.subr.bf16.mxu1 %v3499_v0 }
0x12a5   :  { %3246 = vmatpush3.bf16.msra.mxu0 %v2258_v51 }
0x12a6   :  { %3247 = vmatprep.subr.bf16.mxu0 %v3499_v0 }
0x12a7   :  { %3228 = vmatpush3.bf16.msra.mxu1 %v2088_v53  ;;  %v2663_v53 = vld [vmem:[%s4958_s21 + $0xd0] sm:$0xff] }
0x12a8   :  { %3229 = vmatprep.subr.bf16.mxu1 %v3499_v0  ;;  %v2259_v52 = vpack.c.bf16 %v2664_v54, %v2663_v53 }
0x12aa   :  { %3248 = vmatpush3.bf16.msra.mxu0 %v2259_v52 }
0x12ab   :  { %3230 = vmatpush3.bf16.msra.mxu1 %v2089_v56  ;;  %3249 = vmatprep.subr.bf16.mxu0 %v3499_v0  ;;  %v2665_v56 = vld [vmem:[%s4958_s21 + $0xe0] sm:$0xff] }
0x12ac   :  { %3231 = vmatprep.subr.bf16.mxu1 %v3499_v0  ;;  %v2260_v59 = vpack.c.bf16 %v2666_v57, %v2665_v56  ;;  %v2671_v57 = vld [vmem:[#allocation9 + $0x3] ss:$0 sm:$0xff] }
0x12ae   :  { %3250 = vmatpush3.bf16.msra.mxu0 %v2260_v59 }
0x12af   :  { %3232 = vmatpush3.bf16.msra.mxu1 %v2090_v60  ;;  %v2667_v60 = vld [vmem:[%s4958_s21 + $0xf0] sm:$0xff]  ;;  %3251 = vmatprep.subr.bf16.mxu0 %v3499_v0 }
0x12b0   :  { %3233 = vmatprep.subr.bf16.mxu1 %v3499_v0  ;;  %v2261_v62 = vpack.c.bf16 %v2668_v61, %v2667_v60 }
0x12b2   :  { %3252 = vmatpush3.bf16.msra.mxu0 %v2261_v62 }
0x12b3   :  { %3234 = vmatpush3.bf16.msra.mxu1 %v2091_v63  ;;  %3257 = vmatprep.subr.bf16.mxu0 %v3499_v0 }
0x12b4   :  { %3235 = vmatprep.subr.bf16.mxu1 %v3499_v0 }
0x12b7   :  { %3236 = vmatpush3.bf16.msra.mxu1 %v2092_v3 }
0x12b8   :  { %3237 = vmatprep.subr.bf16.mxu1 %v3499_v0 }
0x12bb   :  { %3238 = vmatpush3.bf16.msra.mxu1 %v2093_v7 }
0x12bc   :  { %3239 = vmatprep.subr.bf16.mxu1 %v3499_v0 }
0x12bf   :  { %3240 = vmatpush3.bf16.msra.mxu1 %v2094_v14 }
0x12c2   :  { %3242 = vmatmul.mubr.bf16.vlgmr.msra.gmra.mrb[48].mxu1 %v4367_v4 }
0x1375   :  { %v2048_v18 = vpop.f32.mrb[44].mxu1 }
0x1376   :  { %v2049_v19 = vadd.f32 %v2628_v17, %v2048_v18  ;;  %v3211_v21 = vpop.f32.mrb[45].mxu1 }
0x1377   :  { %v2051_v40 = vpop.f32.mrb[46].mxu1 }
0x1378   :  { %v2630_v22 = vmul.f32 -1.442695, %v2049_v19  ;;  %v2052_v55 = vadd.f32 %v2628_v17, %v2051_v40  ;;  %v3212_v31 = vpop.f32.mrb[47].mxu1 }
0x137a   :  { %3321 = vpow2.f32 %v2630_v22  ;;  %v2631_v23 = vmul.f32 -1.442695, %v2052_v55  ;;  %v2669_v22 = vld [vmem:[#allocation7 + $0x3] ss:$0 sm:$0xff] }
0x137c   :  { %3323 = vpow2.f32 %v2631_v23 }
0x1384   :  { %v3322_v24 = vpop.eup %3321 }
0x1385   :  { %v2061_v4 = vadd.f32 1.0, %v3322_v24 }
0x1386   :  { %v3324_v25 = vpop.eup %3323 }
0x1387   :  { %3325 = vrcp.f32 %v2061_v4  ;;  %v2062_v26 = vadd.f32 1.0, %v3324_v25 }
0x1389   :  { %3327 = vrcp.f32 %v2062_v26 }
0x1391   :  { %v3326_v27 = vpop.eup %3325 }
0x1392   :  { %2068 = vst.msk [vmem:[%s5004_s15] sm:$0xff] %vm2067_vm11, %v3326_v27 }
0x1393   :  { %v3328_v28 = vpop.eup %3327 }
0x1394   :  { %2069 = vst.msk [vmem:[%s5004_s15 + $0x8] sm:$0xff] %vm2067_vm11, %v3328_v28  ;;  %v2579_v28 = vld [vmem:[%s4963_s26 + $0x1] sm:$0x1] }
0x1395   :  { %v2183_v45 = vpop.f32.mrb[48].mxu1 }
0x1396   :  { %v2184_v30 = vadd.f32 %v2183_v45, %v2142_v10  ;;  %v3243_v32 = vpop.f32.mrb[49].mxu1  ;;  %v2660_v10 = vld [vmem:[#allocation6 + $0x3] ss:$0 sm:$0xff]  ;;  %v1681_v45 = vadd.f32 %v2579_v28, %v4704_v58 }
0x1397   :  { %v2186_v33 = vpop.f32.mrb[50].mxu1 }
0x1398   :  { %v2187_v12 = vadd.f32 %v2186_v33, %v2145_v13  ;;  %v3244_v34 = vpop.f32.mrb[51].mxu1  ;;  %v2198_v35 = vadd.f32 %v2658_v29, %v2184_v30 }
0x139a   :  { %v2200_v36 = vsel %vm1170_vm6, %v2198_v35, 0.0  ;;  %v2199_v37 = vadd.f32 %v2658_v29, %v2187_v12  ;;  %v2581_v29 = vmul.f32 -1.442695, %v1681_v45 }
0x139b   :  { %2201 = vadd.xlane.f32.xlu0 %v2200_v36 }
0x139c   :  { %v2203_v38 = vsel %vm1170_vm6, %v2199_v37, 0.0 }
0x139d   :  { %2204 = vadd.xlane.f32.xlu1 %v2203_v38 }
0x1428   :  { %v2202_v39 = vpop.xlane.xlu0 %2201 }
0x1429   :  { %v2206_v41 = vmul.f32 0.015625, %v2202_v39 }
0x142a   :  { %v2205_v42 = vpop.xlane.xlu1 %2204 }
0x142b   :  { %v2208_v20 = vsub.f32 %v2198_v35, %v2206_v41  ;;  %v2207_v43 = vmul.f32 0.015625, %v2205_v42 }
0x142d   :  { %v2209_v44 = vsub.f32 %v2199_v37, %v2207_v43  ;;  %v2210_v46 = vmul.f32 %v2208_v20, %v2208_v20  ;;  %v2674_v43 = vld [vmem:[%s4962_s25 + $0x68] sm:$0xff] }
0x142f   :  { %v2212_v47 = vsel %vm1170_vm6, %v2210_v46, 0.0  ;;  %v2211_v15 = vmul.f32 %v2209_v44, %v2209_v44  ;;  %v2675_v46 = vld [vmem:[%s4962_s25 + $0x70] sm:$0xff] }
0x1430   :  { %2213 = vadd.xlane.f32.xlu0 %v2212_v47  ;;  %v2676_v47 = vld [vmem:[%s4962_s25 + $0x78] sm:$0xff] }
0x1431   :  { %v2215_v48 = vsel %vm1170_vm6, %v2211_v15, 0.0  ;;  %v2369_v15 = vpack.c.bf16 %v2676_v47, %v2675_v46 }
0x1432   :  { %2216 = vadd.xlane.f32.xlu1 %v2215_v48 }
0x14bd   :  { %v2214_v63 = vpop.xlane.xlu0 %2213 }
0x14be   :  { %v2218_v1 = vmul.f32 0.015625, %v2214_v63 }
0x14bf   :  { %v2217_v2 = vpop.xlane.xlu1 %2216 }
0x14c0   :  { %v2220_v3 = vadd.f32 1e-05, %v2218_v1  ;;  %v2219_v5 = vmul.f32 0.015625, %v2217_v2 }
0x14c2   :  { %3329 = vrsqrt.f32 %v2220_v3  ;;  %v2221_v6 = vadd.f32 1e-05, %v2219_v5 }
0x14c4   :  { %3331 = vrsqrt.f32 %v2221_v6 }
0x14c5   :  { %3333 = vpow2.f32 %v2581_v29 }
0x14cc   :  { %v3330_v7 = vpop.eup %3329 }
0x14cd   :  { %v2224_v9 = vmul.f32 %v3330_v7, %v2208_v20  ;;  %v2673_v20 = vld [vmem:[%s4962_s25 + $0x60] sm:$0xff] }
0x14ce   :  { %v3332_v14 = vpop.eup %3331  ;;  %v2678_v7 = vld [vmem:[%s4963_s26 + $0x3] ss:$0 sm:$0xff] }
0x14cf   :  { %v2234_v11 = vmul.f32 %v2659_v8, %v2224_v9  ;;  %v2225_v13 = vmul.f32 %v3332_v14, %v2209_v44  ;;  %v3334_v41 = vpop.eup %3333  ;;  %v2368_v44 = vpack.c.bf16 %v2674_v43, %v2673_v20 }
0x14d0   :  { %v1689_v42 = vadd.f32 1.0, %v3334_v41 }
0x14d1   :  { %v2235_v16 = vmul.f32 %v2659_v8, %v2225_v13  ;;  %v2244_v17 = vadd.f32 %v2660_v10, %v2234_v11 }
0x14d2   :  { %3335 = vrcp.f32 %v1689_v42 }
0x14d3   :  { %v2245_v18 = vadd.f32 %v2660_v10, %v2235_v16  ;;  %v2246_v19 = vmax.f32 %v2244_v17, 0.0 }
0x14d5   :  { %v2247_v21 = vmax.f32 %v2245_v18, 0.0 }
0x14d7   :  { %v2248_v40 = vpack.c.bf16 %v2247_v21, %v2246_v19 }
0x14d9   :  { %3254 = vmatmul.mubr.msk.bf16.vlgmr.msra.gmra.mrb[48].mxu0 %vm1170_vm6, %v2248_v40 }
0x14da   :  { %3261 = vmatprep.mubr.msk.bf16.mxu0 %vm3500_vm0, %v3499_v0  ;;  %3258 = vmatpush3.bf16.msra.mxu0 %v2368_v44 }
0x14db   :  { %3259 = vmatprep.subr.bf16.mxu0 %v3499_v0  ;;  %v2672_v0 = vld [vmem:[#allocation10 + $0x3] ss:$0 sm:$0xff] }
0x14dc   :  { %v3336_v58 = vpop.eup %3335 }
0x14de   :  { %3260 = vmatpush3.bf16.msra.mxu0 %v2369_v15 }
0x15ac   :  { %v2307_v55 = vpop.f32.mrb[48].mxu0 }
0x15ad   :  { %v2308_v31 = vadd.f32 %v2669_v22, %v2307_v55  ;;  %v3255_v23 = vpop.f32.mrb[49].mxu0 }
0x15ae   :  { %v2310_v24 = vpop.f32.mrb[50].mxu0 }
0x15af   :  { %v2311_v4 = vadd.f32 %v2669_v22, %v2310_v24  ;;  %v3256_v25 = vpop.f32.mrb[51].mxu0  ;;  %v2314_v26 = vsel %vm1361_vm9, %v2308_v31, 0.0 }
0x15b0   :  { %2315 = vadd.xlane.f32.xlu0 %v2314_v26 }
0x15b1   :  { %v2317_v27 = vsel %vm1361_vm9, %v2311_v4, 0.0 }
0x15b2   :  { %2318 = vadd.xlane.f32.xlu1 %v2317_v27 }
0x163d   :  { %v2316_v30 = vpop.xlane.xlu0 %2315 }
0x163e   :  { %v2320_v32 = vmul.f32 0.03125, %v2316_v30 }
0x163f   :  { %v2319_v33 = vpop.xlane.xlu1 %2318 }
0x1640   :  { %v2322_v12 = vsub.f32 %v2308_v31, %v2320_v32  ;;  %v2321_v34 = vmul.f32 0.03125, %v2319_v33 }
0x1642   :  { %v2323_v35 = vsub.f32 %v2311_v4, %v2321_v34  ;;  %v2324_v36 = vmul.f32 %v2322_v12, %v2322_v12 }
0x1644   :  { %v2326_v37 = vsel %vm1361_vm9, %v2324_v36, 0.0  ;;  %v2325_v38 = vmul.f32 %v2323_v35, %v2323_v35 }
0x1645   :  { %2327 = vadd.xlane.f32.xlu0 %v2326_v37 }
0x1646   :  { %v2329_v39 = vsel %vm1361_vm9, %v2325_v38, 0.0 }
0x1647   :  { %2330 = vadd.xlane.f32.xlu1 %v2329_v39 }
0x165b   :  { %1693 = vrot.lane.b32.xlu0 %v3336_v58, %s3491_s7 }
0x16d2   :  { %v2328_v48 = vpop.xlane.xlu0 %2327 }
0x16d3   :  { %v2332_v49 = vmul.f32 0.03125, %v2328_v48 }
0x16d4   :  { %v2331_v50 = vpop.xlane.xlu1 %2330 }
0x16d5   :  { %v2334_v51 = vadd.f32 1e-05, %v2332_v49  ;;  %v2333_v53 = vmul.f32 0.03125, %v2331_v50 }
0x16d6   :  { %v1694_v54 = vpop.permute.xlu0 %1693 }
0x16d7   :  { %3337 = vrsqrt.f32 %v2334_v51  ;;  %v2335_v52 = vadd.f32 1e-05, %v2333_v53  ;;  %1697 = vst.msk [vmem:[%s4964_s27] sm:$0x1] %vm1696_vm12, %v1694_v54 }
0x16d9   :  { %3339 = vrsqrt.f32 %v2335_v52 }
0x16e1   :  { %v3338_v56 = vpop.eup %3337 }
0x16e2   :  { %v2338_v59 = vmul.f32 %v3338_v56, %v2322_v12 }
0x16e3   :  { %v3340_v60 = vpop.eup %3339 }
0x16e4   :  { %v2348_v61 = vmul.f32 %v2671_v57, %v2338_v59  ;;  %v2339_v62 = vmul.f32 %v3340_v60, %v2323_v35 }
0x16e6   :  { %v2349_v63 = vmul.f32 %v2671_v57, %v2339_v62  ;;  %v2358_v1 = vadd.f32 %v2672_v0, %v2348_v61 }
0x16e8   :  { %v2359_v2 = vadd.f32 %v2672_v0, %v2349_v63  ;;  %v2360_v3 = vmax.f32 %v2358_v1, 0.0 }
0x16ea   :  { %v2361_v5 = vmax.f32 %v2359_v2, 0.0 }
0x16ec   :  { %v2362_v6 = vpack.c.bf16 %v2361_v5, %v2360_v3 }
0x16ee   :  { %3262 = vmatmul.mubr.msk.bf16.vlgmr.msra.gmra.mrb[52].mxu0 %vm1361_vm9, %v2362_v6 }
0x17c1   :  { %v2415_v8 = vpop.f32.mrb[52].mxu0 }
0x17c2   :  { %v2416_v9 = vadd.f32 %v2678_v7, %v2415_v8  ;;  %v3263_v14 = vpop.f32.mrb[53].mxu0 }
0x17c3   :  { %v2418_v10 = vpop.f32.mrb[54].mxu0 }
0x17c4   :  { %v2680_v11 = vmul.f32 -1.442695, %v2416_v9  ;;  %v2419_v13 = vadd.f32 %v2678_v7, %v2418_v10  ;;  %v3264_v16 = vpop.f32.mrb[55].mxu0 }
0x17c6   :  { %3341 = vpow2.f32 %v2680_v11  ;;  %v2681_v17 = vmul.f32 -1.442695, %v2419_v13 }
0x17c8   :  { %3343 = vpow2.f32 %v2681_v17 }
0x17d0   :  { %v3342_v18 = vpop.eup %3341 }
0x17d1   :  { %v2428_v19 = vadd.f32 1.0, %v3342_v18 }
0x17d2   :  { %v3344_v21 = vpop.eup %3343 }
0x17d3   :  { %3345 = vrcp.f32 %v2428_v19  ;;  %v2429_v40 = vadd.f32 1.0, %v3344_v21 }
0x17d5   :  { %3347 = vrcp.f32 %v2429_v40 }
0x17dd   :  { %v3346_v22 = vpop.eup %3345 }
0x17de   :  { %2436 = vrot.lane.b32.xlu1 %v3346_v22, %s3491_s7 }
0x17df   :  { %v3348_v55 = vpop.eup %3347 }
0x17e2   :  { %2438 = vrot.lane.b32.xlu1 %v3348_v55, %s3491_s7 }
0x1850   :  { %v2437_v31 = vpop.permute.xlu1 %2436 }
0x1851   :  { %2443 = vst.msk [vmem:[%s5004_s15] sm:$0xff] %vm2442_vm13, %v2437_v31 }
0x1854   :  { %v2439_v23 = vpop.permute.xlu1 %2438 }
0x1855   :  { %2444 = vst.msk [vmem:[%s5004_s15 + $0x8] sm:$0xff] %vm2442_vm13, %v2439_v23 }
0x1856   :  { %2453 = vsyncpa [#allocation3], 1 }
0x1857   :  { %2454 = vsyncpa [#allocation5], 1 }
0x1858   :  { %2455 = vsyncpa [#allocation8], 1 }
0x1859   :  { %2456 = vsyncpa [#allocation11], 1 }

</bundles_post_ra>
